<compile_context>
chip_gen: v7x
topology: tpu7x:2x2x1
jax: 0.10.0
libtpu: 0.0.40
codegen_flags: <defaults>
</compile_context>

<pallas_src>
import jax
import jax.numpy as jnp
from jax import lax
from jax.experimental import pallas as pl
from jax.experimental.pallas import tpu as pltpu


def _bottleneck_kernel(x_ref, w1_ref, w2_ref, w3_ref, b1_ref, b2_ref, b3_ref,
                       out_ref, mid_ref):
    """One block of `NB` images per grid step.

    x_ref:   (NB, H, W, Cin)     bf16 input block (Cin = 4*planes)
    w1_ref:  (Cin, P)            bf16 conv1 weights, bn1 scale folded in
    w2_ref:  (9*P, P)            bf16 conv2 weights (tap-major im2col), bn2 folded
    w3_ref:  (P, Cout)           bf16 conv3 weights, bn3 scale folded in
    b*_ref:  (1, C)              f32 folded BN shifts
    out_ref: (NB, H, W, Cout)    bf16 output block
    mid_ref: (NB, H+2, W+2, P)   bf16 VMEM scratch: zero-padded conv1 activation
    """
    NB, H, W, Cin = x_ref.shape
    P = w1_ref.shape[1]
    Cout = w3_ref.shape[1]
    M = NB * H * W

    # Zero only the 1-pixel border of the scratch (interior is fully
    # overwritten below).  Done every step -- NOT under program_id()==0 -- so
    # it stays correct when the parallel axis is sharded across TensorCores,
    # each owning a private scratch buffer.
    zdt = mid_ref.dtype
    mid_ref[:, pl.ds(0, 1), :, :] = jnp.zeros((NB, 1, W + 2, P), zdt)
    mid_ref[:, pl.ds(H + 1, 1), :, :] = jnp.zeros((NB, 1, W + 2, P), zdt)
    mid_ref[:, :, pl.ds(0, 1), :] = jnp.zeros((NB, H + 2, 1, P), zdt)
    mid_ref[:, :, pl.ds(W + 1, 1), :] = jnp.zeros((NB, H + 2, 1, P), zdt)

    # ---- conv1 (1x1) + bn1-shift + relu : one (M,Cin)x(Cin,P) MXU matmul ----
    y1 = jnp.dot(x_ref[...].reshape(M, Cin), w1_ref[...],
                 preferred_element_type=jnp.float32)
    y1 = jnp.maximum(y1 + b1_ref[...], 0.0)
    mid_ref[:, pl.ds(1, H), pl.ds(1, W), :] = (
        y1.reshape(NB, H, W, P).astype(mid_ref.dtype))      # interior of padded buf

    # ---- conv2 (3x3, pad=1) + bn2-shift + relu ------------------------------
    if P % 128 == 0:
        # Lane-aligned planes: fold all 9 taps into the contraction dim
        # (im2col, K = 9*P) -> a single MXU matmul.
        taps = [mid_ref[:, pl.ds(dy, H), pl.ds(dx, W), :]
                for dy in range(3) for dx in range(3)]
        lhs2 = jnp.concatenate(taps, axis=-1).reshape(M, 9 * P)
        y2 = jnp.dot(lhs2, w2_ref[...], preferred_element_type=jnp.float32)
    else:
        # Small planes (e.g. 32): the lane-dim concat of 9 narrow taps lowers
        # to XLU/copy relayouts; accumulate 9 (M,P)x(P,P) matmuls instead.
        y2 = jnp.zeros((M, P), jnp.float32)
        for t in range(9):
            dy, dx = divmod(t, 3)
            tap = mid_ref[:, pl.ds(dy, H), pl.ds(dx, W), :].reshape(M, P)
            y2 = y2 + jnp.dot(tap, w2_ref[pl.ds(t * P, P), :],
                              preferred_element_type=jnp.float32)
    y2 = jnp.maximum(y2 + b2_ref[...], 0.0)

    # ---- conv3 (1x1) + bn3-shift + residual add + relu ----------------------
    y3 = jnp.dot(y2.astype(w3_ref.dtype), w3_ref[...],
                 preferred_element_type=jnp.float32)
    y3 = y3 + b3_ref[...]
    # Re-read the input block here (instead of keeping it live across conv2/3)
    # to shorten its live range; the reload hides under the conv3 MXU work.
    residual = x_ref[...].reshape(M, Cin).astype(jnp.float32)
    out = jnp.maximum(y3 + residual, 0.0)
    out_ref[...] = out.reshape(NB, H, W, Cout).astype(out_ref.dtype)


# ------------------------- VMEM budgeting helpers ----------------------------

_VMEM_BUDGET = 36 * 1024 * 1024   # ~0.55 x v7x's 64 MiB physical VMEM (safe on all gens)


def _round_up(v, m):
    return (v + m - 1) // m * m


def _padded_bytes(shape, itemsize):
    """Conservative VMEM footprint: last dim padded to 128 lanes, second-to-last
    dim to the dtype's sublane tile (8 for f32, 16 for bf16)."""
    *lead, s, l = shape
    n = 1
    for d in lead:
        n *= d
    sub = 8 if itemsize == 4 else 16
    return n * _round_up(max(s, 1), sub) * _round_up(max(l, 1), 128) * itemsize


def _block_vmem_bytes(block_n, H, W, Cin, P, Cout):
    M = block_n * H * W
    # pipelined (double-buffered) input / output blocks
    io = 2 * (_padded_bytes((block_n, H, W, Cin), 2)
              + _padded_bytes((block_n, H, W, Cout), 2))
    # weights + BN shifts (constant index_map, still budgeted x2)
    w = 2 * (_padded_bytes((Cin, P), 2) + _padded_bytes((9 * P, P), 2)
             + _padded_bytes((P, Cout), 2) + 3 * _padded_bytes((1, Cout), 4))
    # padded conv1-activation scratch (includes hidden lane/sublane padding)
    scratch = _padded_bytes((block_n, H + 2, W + 2, P), 2)
    # in-kernel temporaries (f32 y1/y2/out, bf16 im2col lhs), conservative
    tmp = (2 * _padded_bytes((M, P), 4) + 2 * _padded_bytes((M, Cout), 4)
           + _padded_bytes((M, 9 * P), 2))
    return io + w + scratch + tmp


def _pick_block_n(N, H, W, Cin, P, Cout):
    for cand in range(N, 0, -1):
        if N % cand:
            continue
        if N >= 2 and N // cand < 2:
            # Keep >= 2 parallel grid steps: v7x has 2 TensorCores, and a grid
            # of 1 also gives the software pipeline nothing to overlap.
            continue
        if _block_vmem_bytes(cand, H, W, Cin, P, Cout) <= _VMEM_BUDGET:
            return cand
    return 1


# --------------------------------- wrapper -----------------------------------

def bottleneck_forward_nhwc(x_nhwc, w1_hwio, w2_hwio, w3_hwio,
                            s1, b1, s2, b2, s3, b3, *, block_n=None):
    """Fused Bottleneck forward.

    x_nhwc:  (N, H, W, Cin) activations, NHWC (Cin = 4*planes); cast to bf16 once.
    w*_hwio: conv weights in HWIO, f32.
    s*, b*:  per-channel BN scale / shift (eval-mode BatchNorm folded), f32.
    Returns (N, H, W, Cout) bf16.
    """
    N, H, W, Cin = x_nhwc.shape
    P = w1_hwio.shape[-1]            # planes
    Cout = w3_hwio.shape[-1]         # planes * expansion
    # TODO(synk): stride != 1 / downsample projection not implemented.
    assert Cin == Cout == 4 * P, "downsample=None requires inplanes == planes*4"

    if block_n is None:
        block_n = _pick_block_n(N, H, W, Cin, P, Cout)
    assert N % block_n == 0

    x = x_nhwc.astype(jnp.bfloat16)

    # Fold the BN scales into the conv output channels in f32, then cast bf16.
    w1 = (w1_hwio.reshape(Cin, P) * s1[None, :]).astype(jnp.bfloat16)
    w2 = (w2_hwio * s2[None, None, None, :]).reshape(9 * P, P).astype(jnp.bfloat16)
    w3 = (w3_hwio.reshape(P, Cout) * s3[None, :]).astype(jnp.bfloat16)
    shift = lambda v, c: v.reshape(1, c).astype(jnp.float32)

    vmem_limit = int(min(60 * 1024 * 1024,
                         max(32 * 1024 * 1024,
                             1.25 * _block_vmem_bytes(block_n, H, W, Cin, P, Cout))))

    out = pl.pallas_call(
        _bottleneck_kernel,
        out_shape=jax.ShapeDtypeStruct((N, H, W, Cout), jnp.bfloat16),
        grid_spec=pltpu.PrefetchScalarGridSpec(
            num_scalar_prefetch=0,
            grid=(N // block_n,),
            in_specs=[
                pl.BlockSpec((block_n, H, W, Cin), lambda n: (n, 0, 0, 0)),
                pl.BlockSpec((Cin, P), lambda n: (0, 0)),
                pl.BlockSpec((9 * P, P), lambda n: (0, 0)),
                pl.BlockSpec((P, Cout), lambda n: (0, 0)),
                pl.BlockSpec((1, P), lambda n: (0, 0)),
                pl.BlockSpec((1, P), lambda n: (0, 0)),
                pl.BlockSpec((1, Cout), lambda n: (0, 0)),
            ],
            out_specs=pl.BlockSpec((block_n, H, W, Cout), lambda n: (n, 0, 0, 0)),
            scratch_shapes=[pltpu.VMEM((block_n, H + 2, W + 2, P), jnp.bfloat16)],
        ),
        compiler_params=pltpu.CompilerParams(
            dimension_semantics=("parallel",),
            vmem_limit_bytes=vmem_limit,
        ),
    )(x, w1, w2, w3, shift(b1, P), shift(b2, P), shift(b3, Cout))

    return out


# -------------------------------- reference ----------------------------------

def _reference_forward_nhwc(x_nhwc, w1_hwio, w2_hwio, w3_hwio,
                            s1, b1, s2, b2, s3, b3):
    """Plain-JAX reference (lax conv).  Uses the same scale-folded bf16-rounded
    weights and bf16-rounded activations as the kernel, so only accumulation
    order and the final bf16 output cast differ."""
    dn = ("NHWC", "HWIO", "NHWC")
    hp = lax.Precision.HIGHEST
    fold = lambda w, s: (w * s).astype(jnp.bfloat16).astype(jnp.float32)
    rb = lambda a: a.astype(jnp.bfloat16).astype(jnp.float32)

    x = rb(x_nhwc)
    y = lax.conv_general_dilated(x, fold(w1_hwio, s1[None, None, None, :]),
                                 (1, 1), "SAME", dimension_numbers=dn, precision=hp)
    y = jnp.maximum(y + b1, 0.0)
    y = lax.conv_general_dilated(rb(y), fold(w2_hwio, s2[None, None, None, :]),
                                 (1, 1), "SAME", dimension_numbers=dn, precision=hp)
    y = jnp.maximum(y + b2, 0.0)
    y = lax.conv_general_dilated(rb(y), fold(w3_hwio, s3[None, None, None, :]),
                                 (1, 1), "SAME", dimension_numbers=dn, precision=hp)
    y = y + b3
    return jnp.maximum(y + x, 0.0)


if __name__ == "__main__":
    key = jax.random.PRNGKey(0)
    N, planes, H, W = 2, 32, 16, 16
    inplanes = planes * 4                 # = 128 -> lane-dense residual / output

    ks = jax.random.split(key, 16)
    x = jax.random.normal(ks[0], (N, H, W, inplanes), jnp.float32)     # NHWC

    # kaiming_normal_(mode='fan_out', nonlinearity='relu'): std = sqrt(2/(Cout*kh*kw))
    w1 = jax.random.normal(ks[1], (1, 1, inplanes, planes), jnp.float32) * (2.0 / planes) ** 0.5
    w2 = jax.random.normal(ks[2], (3, 3, planes, planes), jnp.float32) * (2.0 / (planes * 9)) ** 0.5
    w3 = jax.random.normal(ks[3], (1, 1, planes, inplanes), jnp.float32) * (2.0 / inplanes) ** 0.5

    # mynn.Norm2d modeled as eval-mode BatchNorm2d, folded to scale/shift.
    eps = 1e-5

    def bn_params(kg, kb, km, kv, c):
        gamma = 1.0 + 0.1 * jax.random.normal(kg, (c,), jnp.float32)
        beta = 0.1 * jax.random.normal(kb, (c,), jnp.float32)
        mean = 0.1 * jax.random.normal(km, (c,), jnp.float32)
        var = 1.0 + 0.1 * jax.random.uniform(kv, (c,), jnp.float32)
        s = gamma / jnp.sqrt(var + eps)
        b = beta - mean * s
        return s, b

    s1, b1 = bn_params(ks[4], ks[5], ks[6], ks[7], planes)
    s2, b2 = bn_params(ks[8], ks[9], ks[10], ks[11], planes)
    s3, b3 = bn_params(ks[12], ks[13], ks[14], ks[15], inplanes)

    out = bottleneck_forward_nhwc(x, w1, w2, w3, s1, b1, s2, b2, s3, b3)
    out = jax.block_until_ready(out)

    ref = _reference_forward_nhwc(x, w1, w2, w3, s1, b1, s2, b2, s3, b3)
    out_f32 = out.astype(jnp.float32)
    max_err = float(jnp.max(jnp.abs(out_f32 - ref)))
    assert jnp.allclose(out_f32, ref, atol=2e-2, rtol=2e-2), f"max_err={max_err}"

    print("KERNEL_OK")
</pallas_src>

<mosaic_0001>
module attributes {stable_mosaic.version = 11 : i64} {
  func.func @_bottleneck_kernel(%arg0: i32, %arg1: memref<1x16x16x128xbf16, #tpu.memory_space<vmem>>, %arg2: memref<128x32xbf16, #tpu.memory_space<vmem>>, %arg3: memref<288x32xbf16, #tpu.memory_space<vmem>>, %arg4: memref<32x128xbf16, #tpu.memory_space<vmem>>, %arg5: memref<1x32xf32, #tpu.memory_space<vmem>>, %arg6: memref<1x32xf32, #tpu.memory_space<vmem>>, %arg7: memref<1x128xf32, #tpu.memory_space<vmem>>, %arg8: memref<1x16x16x128xbf16, #tpu.memory_space<vmem>>, %arg9: memref<1x18x18x32xbf16, #tpu.memory_space<vmem>>) attributes {dimension_semantics = [#tpu.dimension_semantics<parallel>], iteration_bounds = array<i64: 2>, scalar_prefetch = 0 : i64, scratch_operands = 1 : i64, tpu.core_type = #tpu.core_type<tc>, window_params = [{transform_indices = @transform_0, window_bounds = array<i64: 1, 16, 16, 128>}, {pipeline_mode = #tpu.pipeline_mode<synchronous>, transform_indices = @transform_1, window_bounds = array<i64: 128, 32>}, {pipeline_mode = #tpu.pipeline_mode<synchronous>, transform_indices = @transform_2, window_bounds = array<i64: 288, 32>}, {pipeline_mode = #tpu.pipeline_mode<synchronous>, transform_indices = @transform_3, window_bounds = array<i64: 32, 128>}, {pipeline_mode = #tpu.pipeline_mode<synchronous>, transform_indices = @transform_4, window_bounds = array<i64: 1, 32>}, {pipeline_mode = #tpu.pipeline_mode<synchronous>, transform_indices = @transform_5, window_bounds = array<i64: 1, 32>}, {pipeline_mode = #tpu.pipeline_mode<synchronous>, transform_indices = @transform_6, window_bounds = array<i64: 1, 128>}, {transform_indices = @transform_7, window_bounds = array<i64: 1, 16, 16, 128>}]} {
    %cst = arith.constant 0.000000e+00 : bf16
    %0 = vector.broadcast %cst : bf16 to vector<1x1x18x32xbf16>
    %c0 = arith.constant 0 : index
    %c0_0 = arith.constant 0 : index
    %c0_1 = arith.constant 0 : index
    %c0_2 = arith.constant 0 : index
    %1 = vector.load %arg9[%c0, %c0_0, %c0_1, %c0_2] : memref<1x18x18x32xbf16, #tpu.memory_space<vmem>>, vector<1x1x18x32xbf16>
    tpu.vector_store %arg9[%c0, %c0_0, %c0_1, %c0_2], %0 {strides = array<i32>} : memref<1x18x18x32xbf16, #tpu.memory_space<vmem>>, vector<1x1x18x32xbf16>,
    %cst_3 = arith.constant 0.000000e+00 : bf16
    %2 = vector.broadcast %cst_3 : bf16 to vector<1x1x18x32xbf16>
    %c0_4 = arith.constant 0 : index
    %c17 = arith.constant 17 : index
    %c0_5 = arith.constant 0 : index
    %c0_6 = arith.constant 0 : index
    %3 = vector.load %arg9[%c0_4, %c17, %c0_5, %c0_6] : memref<1x18x18x32xbf16, #tpu.memory_space<vmem>>, vector<1x1x18x32xbf16>
    tpu.vector_store %arg9[%c0_4, %c17, %c0_5, %c0_6], %2 {strides = array<i32>} : memref<1x18x18x32xbf16, #tpu.memory_space<vmem>>, vector<1x1x18x32xbf16>,
    %cst_7 = arith.constant 0.000000e+00 : bf16
    %4 = vector.broadcast %cst_7 : bf16 to vector<1x18x1x32xbf16>
    %c0_8 = arith.constant 0 : index
    %c0_9 = arith.constant 0 : index
    %c0_10 = arith.constant 0 : index
    %c0_11 = arith.constant 0 : index
    %5 = vector.load %arg9[%c0_8, %c0_9, %c0_10, %c0_11] : memref<1x18x18x32xbf16, #tpu.memory_space<vmem>>, vector<1x18x1x32xbf16>
    tpu.vector_store %arg9[%c0_8, %c0_9, %c0_10, %c0_11], %4 {strides = array<i32>} : memref<1x18x18x32xbf16, #tpu.memory_space<vmem>>, vector<1x18x1x32xbf16>,
    %cst_12 = arith.constant 0.000000e+00 : bf16
    %6 = vector.broadcast %cst_12 : bf16 to vector<1x18x1x32xbf16>
    %c0_13 = arith.constant 0 : index
    %c0_14 = arith.constant 0 : index
    %c17_15 = arith.constant 17 : index
    %c0_16 = arith.constant 0 : index
    %7 = vector.load %arg9[%c0_13, %c0_14, %c17_15, %c0_16] : memref<1x18x18x32xbf16, #tpu.memory_space<vmem>>, vector<1x18x1x32xbf16>
    tpu.vector_store %arg9[%c0_13, %c0_14, %c17_15, %c0_16], %6 {strides = array<i32>} : memref<1x18x18x32xbf16, #tpu.memory_space<vmem>>, vector<1x18x1x32xbf16>,
    %c0_17 = arith.constant 0 : index
    %c0_18 = arith.constant 0 : index
    %c0_19 = arith.constant 0 : index
    %c0_20 = arith.constant 0 : index
    %8 = vector.load %arg1[%c0_17, %c0_18, %c0_19, %c0_20] : memref<1x16x16x128xbf16, #tpu.memory_space<vmem>>, vector<1x16x16x128xbf16>
    %9 = vector.shape_cast %8 : vector<1x16x16x128xbf16> to vector<256x128xbf16>
    %c0_21 = arith.constant 0 : index
    %c0_22 = arith.constant 0 : index
    %10 = vector.load %arg2[%c0_21, %c0_22] : memref<128x32xbf16, #tpu.memory_space<vmem>>, vector<128x32xbf16>
    %cst_23 = arith.constant dense<0.000000e+00> : vector<256x32xf32>
    %11 = tpu.matmul %9, %10, %cst_23 {dimension_numbers = #tpu.dot_dimension_numbers<[1], [0], [0], [1], [0, 0, 1, 1], [], []>} : vector<256x128xbf16>, vector<128x32xbf16>, vector<256x32xf32> -> vector<256x32xf32>
    %c0_24 = arith.constant 0 : index
    %c0_25 = arith.constant 0 : index
    %12 = vector.load %arg5[%c0_24, %c0_25] : memref<1x32xf32, #tpu.memory_space<vmem>>, vector<1x32xf32>
    %13 = vector.broadcast %12 : vector<1x32xf32> to vector<256x32xf32>
    %14 = arith.addf %11, %13 : vector<256x32xf32>
    %cst_26 = arith.constant 0.000000e+00 : f32
    %15 = vector.broadcast %cst_26 : f32 to vector<256x32xf32>
    %16 = arith.maximumf %14, %15 : vector<256x32xf32>
    %17 = vector.shape_cast %16 : vector<256x32xf32> to vector<1x16x16x32xf32>
    %18 = arith.truncf %17 : vector<1x16x16x32xf32> to vector<1x16x16x32xbf16>
    %c0_27 = arith.constant 0 : index
    %c1 = arith.constant 1 : index
    %c1_28 = arith.constant 1 : index
    %c0_29 = arith.constant 0 : index
    %19 = vector.load %arg9[%c0_27, %c1, %c1_28, %c0_29] : memref<1x18x18x32xbf16, #tpu.memory_space<vmem>>, vector<1x16x16x32xbf16>
    tpu.vector_store %arg9[%c0_27, %c1, %c1_28, %c0_29], %18 {strides = array<i32>} : memref<1x18x18x32xbf16, #tpu.memory_space<vmem>>, vector<1x16x16x32xbf16>,
    %cst_30 = arith.constant 0.000000e+00 : f32
    %20 = vector.broadcast %cst_30 : f32 to vector<256x32xf32>
    %c0_31 = arith.constant 0 : index
    %c0_32 = arith.constant 0 : index
    %c0_33 = arith.constant 0 : index
    %c0_34 = arith.constant 0 : index
    %21 = vector.load %arg9[%c0_31, %c0_32, %c0_33, %c0_34] : memref<1x18x18x32xbf16, #tpu.memory_space<vmem>>, vector<1x16x16x32xbf16>
    %22 = vector.shape_cast %21 : vector<1x16x16x32xbf16> to vector<256x32xbf16>
    %c0_35 = arith.constant 0 : index
    %c0_36 = arith.constant 0 : index
    %23 = vector.load %arg3[%c0_35, %c0_36] : memref<288x32xbf16, #tpu.memory_space<vmem>>, vector<32x32xbf16>
    %cst_37 = arith.constant dense<0.000000e+00> : vector<256x32xf32>
    %24 = tpu.matmul %22, %23, %cst_37 {dimension_numbers = #tpu.dot_dimension_numbers<[1], [0], [0], [1], [0, 0, 1, 1], [], []>} : vector<256x32xbf16>, vector<32x32xbf16>, vector<256x32xf32> -> vector<256x32xf32>
    %25 = arith.addf %20, %24 : vector<256x32xf32>
    %c0_38 = arith.constant 0 : index
    %c0_39 = arith.constant 0 : index
    %c1_40 = arith.constant 1 : index
    %c0_41 = arith.constant 0 : index
    %26 = vector.load %arg9[%c0_38, %c0_39, %c1_40, %c0_41] : memref<1x18x18x32xbf16, #tpu.memory_space<vmem>>, vector<1x16x16x32xbf16>
    %27 = vector.shape_cast %26 : vector<1x16x16x32xbf16> to vector<256x32xbf16>
    %c32 = arith.constant 32 : index
    %c0_42 = arith.constant 0 : index
    %28 = vector.load %arg3[%c32, %c0_42] : memref<288x32xbf16, #tpu.memory_space<vmem>>, vector<32x32xbf16>
    %cst_43 = arith.constant dense<0.000000e+00> : vector<256x32xf32>
    %29 = tpu.matmul %27, %28, %cst_43 {dimension_numbers = #tpu.dot_dimension_numbers<[1], [0], [0], [1], [0, 0, 1, 1], [], []>} : vector<256x32xbf16>, vector<32x32xbf16>, vector<256x32xf32> -> vector<256x32xf32>
    %30 = arith.addf %25, %29 : vector<256x32xf32>
    %c0_44 = arith.constant 0 : index
    %c0_45 = arith.constant 0 : index
    %c2 = arith.constant 2 : index
    %c0_46 = arith.constant 0 : index
    %31 = vector.load %arg9[%c0_44, %c0_45, %c2, %c0_46] : memref<1x18x18x32xbf16, #tpu.memory_space<vmem>>, vector<1x16x16x32xbf16>
    %32 = vector.shape_cast %31 : vector<1x16x16x32xbf16> to vector<256x32xbf16>
    %c64 = arith.constant 64 : index
    %c0_47 = arith.constant 0 : index
    %33 = vector.load %arg3[%c64, %c0_47] : memref<288x32xbf16, #tpu.memory_space<vmem>>, vector<32x32xbf16>
    %cst_48 = arith.constant dense<0.000000e+00> : vector<256x32xf32>
    %34 = tpu.matmul %32, %33, %cst_48 {dimension_numbers = #tpu.dot_dimension_numbers<[1], [0], [0], [1], [0, 0, 1, 1], [], []>} : vector<256x32xbf16>, vector<32x32xbf16>, vector<256x32xf32> -> vector<256x32xf32>
    %35 = arith.addf %30, %34 : vector<256x32xf32>
    %c0_49 = arith.constant 0 : index
    %c1_50 = arith.constant 1 : index
    %c0_51 = arith.constant 0 : index
    %c0_52 = arith.constant 0 : index
    %36 = vector.load %arg9[%c0_49, %c1_50, %c0_51, %c0_52] : memref<1x18x18x32xbf16, #tpu.memory_space<vmem>>, vector<1x16x16x32xbf16>
    %37 = vector.shape_cast %36 : vector<1x16x16x32xbf16> to vector<256x32xbf16>
    %c96 = arith.constant 96 : index
    %c0_53 = arith.constant 0 : index
    %38 = vector.load %arg3[%c96, %c0_53] : memref<288x32xbf16, #tpu.memory_space<vmem>>, vector<32x32xbf16>
    %cst_54 = arith.constant dense<0.000000e+00> : vector<256x32xf32>
    %39 = tpu.matmul %37, %38, %cst_54 {dimension_numbers = #tpu.dot_dimension_numbers<[1], [0], [0], [1], [0, 0, 1, 1], [], []>} : vector<256x32xbf16>, vector<32x32xbf16>, vector<256x32xf32> -> vector<256x32xf32>
    %40 = arith.addf %35, %39 : vector<256x32xf32>
    %c0_55 = arith.constant 0 : index
    %c1_56 = arith.constant 1 : index
    %c1_57 = arith.constant 1 : index
    %c0_58 = arith.constant 0 : index
    %41 = vector.load %arg9[%c0_55, %c1_56, %c1_57, %c0_58] : memref<1x18x18x32xbf16, #tpu.memory_space<vmem>>, vector<1x16x16x32xbf16>
    %42 = vector.shape_cast %41 : vector<1x16x16x32xbf16> to vector<256x32xbf16>
    %c128 = arith.constant 128 : index
    %c0_59 = arith.constant 0 : index
    %43 = vector.load %arg3[%c128, %c0_59] : memref<288x32xbf16, #tpu.memory_space<vmem>>, vector<32x32xbf16>
    %cst_60 = arith.constant dense<0.000000e+00> : vector<256x32xf32>
    %44 = tpu.matmul %42, %43, %cst_60 {dimension_numbers = #tpu.dot_dimension_numbers<[1], [0], [0], [1], [0, 0, 1, 1], [], []>} : vector<256x32xbf16>, vector<32x32xbf16>, vector<256x32xf32> -> vector<256x32xf32>
    %45 = arith.addf %40, %44 : vector<256x32xf32>
    %c0_61 = arith.constant 0 : index
    %c1_62 = arith.constant 1 : index
    %c2_63 = arith.constant 2 : index
    %c0_64 = arith.constant 0 : index
    %46 = vector.load %arg9[%c0_61, %c1_62, %c2_63, %c0_64] : memref<1x18x18x32xbf16, #tpu.memory_space<vmem>>, vector<1x16x16x32xbf16>
    %47 = vector.shape_cast %46 : vector<1x16x16x32xbf16> to vector<256x32xbf16>
    %c160 = arith.constant 160 : index
    %c0_65 = arith.constant 0 : index
    %48 = vector.load %arg3[%c160, %c0_65] : memref<288x32xbf16, #tpu.memory_space<vmem>>, vector<32x32xbf16>
    %cst_66 = arith.constant dense<0.000000e+00> : vector<256x32xf32>
    %49 = tpu.matmul %47, %48, %cst_66 {dimension_numbers = #tpu.dot_dimension_numbers<[1], [0], [0], [1], [0, 0, 1, 1], [], []>} : vector<256x32xbf16>, vector<32x32xbf16>, vector<256x32xf32> -> vector<256x32xf32>
    %50 = arith.addf %45, %49 : vector<256x32xf32>
    %c0_67 = arith.constant 0 : index
    %c2_68 = arith.constant 2 : index
    %c0_69 = arith.constant 0 : index
    %c0_70 = arith.constant 0 : index
    %51 = vector.load %arg9[%c0_67, %c2_68, %c0_69, %c0_70] : memref<1x18x18x32xbf16, #tpu.memory_space<vmem>>, vector<1x16x16x32xbf16>
    %52 = vector.shape_cast %51 : vector<1x16x16x32xbf16> to vector<256x32xbf16>
    %c192 = arith.constant 192 : index
    %c0_71 = arith.constant 0 : index
    %53 = vector.load %arg3[%c192, %c0_71] : memref<288x32xbf16, #tpu.memory_space<vmem>>, vector<32x32xbf16>
    %cst_72 = arith.constant dense<0.000000e+00> : vector<256x32xf32>
    %54 = tpu.matmul %52, %53, %cst_72 {dimension_numbers = #tpu.dot_dimension_numbers<[1], [0], [0], [1], [0, 0, 1, 1], [], []>} : vector<256x32xbf16>, vector<32x32xbf16>, vector<256x32xf32> -> vector<256x32xf32>
    %55 = arith.addf %50, %54 : vector<256x32xf32>
    %c0_73 = arith.constant 0 : index
    %c2_74 = arith.constant 2 : index
    %c1_75 = arith.constant 1 : index
    %c0_76 = arith.constant 0 : index
    %56 = vector.load %arg9[%c0_73, %c2_74, %c1_75, %c0_76] : memref<1x18x18x32xbf16, #tpu.memory_space<vmem>>, vector<1x16x16x32xbf16>
    %57 = vector.shape_cast %56 : vector<1x16x16x32xbf16> to vector<256x32xbf16>
    %c224 = arith.constant 224 : index
    %c0_77 = arith.constant 0 : index
    %58 = vector.load %arg3[%c224, %c0_77] : memref<288x32xbf16, #tpu.memory_space<vmem>>, vector<32x32xbf16>
    %cst_78 = arith.constant dense<0.000000e+00> : vector<256x32xf32>
    %59 = tpu.matmul %57, %58, %cst_78 {dimension_numbers = #tpu.dot_dimension_numbers<[1], [0], [0], [1], [0, 0, 1, 1], [], []>} : vector<256x32xbf16>, vector<32x32xbf16>, vector<256x32xf32> -> vector<256x32xf32>
    %60 = arith.addf %55, %59 : vector<256x32xf32>
    %c0_79 = arith.constant 0 : index
    %c2_80 = arith.constant 2 : index
    %c2_81 = arith.constant 2 : index
    %c0_82 = arith.constant 0 : index
    %61 = vector.load %arg9[%c0_79, %c2_80, %c2_81, %c0_82] : memref<1x18x18x32xbf16, #tpu.memory_space<vmem>>, vector<1x16x16x32xbf16>
    %62 = vector.shape_cast %61 : vector<1x16x16x32xbf16> to vector<256x32xbf16>
    %c256 = arith.constant 256 : index
    %c0_83 = arith.constant 0 : index
    %63 = vector.load %arg3[%c256, %c0_83] : memref<288x32xbf16, #tpu.memory_space<vmem>>, vector<32x32xbf16>
    %cst_84 = arith.constant dense<0.000000e+00> : vector<256x32xf32>
    %64 = tpu.matmul %62, %63, %cst_84 {dimension_numbers = #tpu.dot_dimension_numbers<[1], [0], [0], [1], [0, 0, 1, 1], [], []>} : vector<256x32xbf16>, vector<32x32xbf16>, vector<256x32xf32> -> vector<256x32xf32>
    %65 = arith.addf %60, %64 : vector<256x32xf32>
    %c0_85 = arith.constant 0 : index
    %c0_86 = arith.constant 0 : index
    %66 = vector.load %arg6[%c0_85, %c0_86] : memref<1x32xf32, #tpu.memory_space<vmem>>, vector<1x32xf32>
    %67 = vector.broadcast %66 : vector<1x32xf32> to vector<256x32xf32>
    %68 = arith.addf %65, %67 : vector<256x32xf32>
    %cst_87 = arith.constant 0.000000e+00 : f32
    %69 = vector.broadcast %cst_87 : f32 to vector<256x32xf32>
    %70 = arith.maximumf %68, %69 : vector<256x32xf32>
    %71 = arith.truncf %70 : vector<256x32xf32> to vector<256x32xbf16>
    %c0_88 = arith.constant 0 : index
    %c0_89 = arith.constant 0 : index
    %72 = vector.load %arg4[%c0_88, %c0_89] : memref<32x128xbf16, #tpu.memory_space<vmem>>, vector<32x128xbf16>
    %cst_90 = arith.constant dense<0.000000e+00> : vector<256x128xf32>
    %73 = tpu.matmul %71, %72, %cst_90 {dimension_numbers = #tpu.dot_dimension_numbers<[1], [0], [0], [1], [0, 0, 1, 1], [], []>} : vector<256x32xbf16>, vector<32x128xbf16>, vector<256x128xf32> -> vector<256x128xf32>
    %c0_91 = arith.constant 0 : index
    %c0_92 = arith.constant 0 : index
    %74 = vector.load %arg7[%c0_91, %c0_92] : memref<1x128xf32, #tpu.memory_space<vmem>>, vector<1x128xf32>
    %75 = vector.broadcast %74 : vector<1x128xf32> to vector<256x128xf32>
    %76 = arith.addf %73, %75 : vector<256x128xf32>
    %c0_93 = arith.constant 0 : index
    %c0_94 = arith.constant 0 : index
    %c0_95 = arith.constant 0 : index
    %c0_96 = arith.constant 0 : index
    %77 = vector.load %arg1[%c0_93, %c0_94, %c0_95, %c0_96] : memref<1x16x16x128xbf16, #tpu.memory_space<vmem>>, vector<1x16x16x128xbf16>
    %78 = vector.shape_cast %77 : vector<1x16x16x128xbf16> to vector<256x128xbf16>
    %79 = arith.extf %78 : vector<256x128xbf16> to vector<256x128xf32>
    %80 = arith.addf %76, %79 : vector<256x128xf32>
    %cst_97 = arith.constant 0.000000e+00 : f32
    %81 = vector.broadcast %cst_97 : f32 to vector<256x128xf32>
    %82 = arith.maximumf %80, %81 : vector<256x128xf32>
    %83 = vector.shape_cast %82 : vector<256x128xf32> to vector<1x16x16x128xf32>
    %84 = arith.truncf %83 : vector<1x16x16x128xf32> to vector<1x16x16x128xbf16>
    %c0_98 = arith.constant 0 : index
    %c0_99 = arith.constant 0 : index
    %c0_100 = arith.constant 0 : index
    %c0_101 = arith.constant 0 : index
    %85 = vector.load %arg8[%c0_98, %c0_99, %c0_100, %c0_101] : memref<1x16x16x128xbf16, #tpu.memory_space<vmem>>, vector<1x16x16x128xbf16>
    tpu.vector_store %arg8[%c0_98, %c0_99, %c0_100, %c0_101], %84 {strides = array<i32>} : memref<1x16x16x128xbf16, #tpu.memory_space<vmem>>, vector<1x16x16x128xbf16>,
    return
  }
  func.func @transform_0(%arg0: i32) -> (i32, i32, i32, i32) {
    %c0_i32 = arith.constant 0 : i32
    %c0_i32_0 = arith.constant 0 : i32
    %c0_i32_1 = arith.constant 0 : i32
    %c0_i32_2 = arith.constant 0 : i32
    return %arg0, %c0_i32, %c0_i32_0, %c0_i32_1 : i32, i32, i32, i32
  }
  func.func @transform_1(%arg0: i32) -> (i32, i32) {
    %c0_i32 = arith.constant 0 : i32
    %c0_i32_0 = arith.constant 0 : i32
    %c0_i32_1 = arith.constant 0 : i32
    return %c0_i32, %c0_i32_0 : i32, i32
  }
  func.func @transform_2(%arg0: i32) -> (i32, i32) {
    %c0_i32 = arith.constant 0 : i32
    %c0_i32_0 = arith.constant 0 : i32
    %c0_i32_1 = arith.constant 0 : i32
    return %c0_i32, %c0_i32_0 : i32, i32
  }
  func.func @transform_3(%arg0: i32) -> (i32, i32) {
    %c0_i32 = arith.constant 0 : i32
    %c0_i32_0 = arith.constant 0 : i32
    %c0_i32_1 = arith.constant 0 : i32
    return %c0_i32, %c0_i32_0 : i32, i32
  }
  func.func @transform_4(%arg0: i32) -> (i32, i32) {
    %c0_i32 = arith.constant 0 : i32
    %c0_i32_0 = arith.constant 0 : i32
    %c0_i32_1 = arith.constant 0 : i32
    return %c0_i32, %c0_i32_0 : i32, i32
  }
  func.func @transform_5(%arg0: i32) -> (i32, i32) {
    %c0_i32 = arith.constant 0 : i32
    %c0_i32_0 = arith.constant 0 : i32
    %c0_i32_1 = arith.constant 0 : i32
    return %c0_i32, %c0_i32_0 : i32, i32
  }
  func.func @transform_6(%arg0: i32) -> (i32, i32) {
    %c0_i32 = arith.constant 0 : i32
    %c0_i32_0 = arith.constant 0 : i32
    %c0_i32_1 = arith.constant 0 : i32
    return %c0_i32, %c0_i32_0 : i32, i32
  }
  func.func @transform_7(%arg0: i32) -> (i32, i32, i32, i32) {
    %c0_i32 = arith.constant 0 : i32
    %c0_i32_0 = arith.constant 0 : i32
    %c0_i32_1 = arith.constant 0 : i32
    %c0_i32_2 = arith.constant 0 : i32
    return %arg0, %c0_i32, %c0_i32_0, %c0_i32_1 : i32, i32, i32, i32
  }
}

</mosaic_0001>

<bundles_post_ra>
// kernel: tpu_custom_call.1
= control target key start
LH: loop header
LB: loop body
LE: loop exit
PB: predicated region body
PF: predicated region fallthrough
CT: control target
= control target key end

     0   :  { %12 = vsyncpa [#allocation4], 0  ;;  %s10502_s0 = inlined_call_operand.vmem [shape: bf16[2,16,16,128], index: 0, kind: input, shape index: {}]   ;;  %s10503_s1 = inlined_call_operand.vmem [shape: bf16[128,32], index: 1, kind: input, shape index: {}]   ;;  %s10504_s2 = inlined_call_operand.vmem [shape: bf16[288,32], index: 2, kind: input, shape index: {}]   ;;  %s10505_s3 = inlined_call_operand.vmem [shape: bf16[32,128], index: 3, kind: input, shape index: {}]   ;;  %s10506_s4 = inlined_call_operand.vmem [shape: f32[1,32], index: 4, kind: input, shape index: {}]   ;;  %s10507_s5 = inlined_call_operand.vmem [shape: f32[1,32], index: 5, kind: input, shape index: {}]   ;;  %s10508_s6 = inlined_call_operand.vmem [shape: f32[1,128], index: 6, kind: input, shape index: {}]   ;;  %s10509_s7 = inlined_call_operand.hbm [shape: bf16[2,16,16,128], index: 7, kind: output, shape index: {}]  }
   0x1   :  { %14 = vsyncpa [#allocation4 + $0x1], 0  ;;  %s8529_s24 = smov 0   ;;  %s8531_s25 = smov 0  }
   0x2   :  { %s8533_s26 = smov 0   ;;  %s8535_s27 = smov 0  }
   0x3 LB: > { %s8550_s28 = sadd.s32 4294967295, %s8483_s27   ;;  %s6665_s29 = sadd.s32 4294967294, %s8483_s27   ;;  %s8483_s27 = sphi %s8535_s27, %s10618_s27   ;;  %s8479_s26 = sphi %s8533_s26, %s10617_s26   ;;  %s8475_s25 = sphi %s8531_s25, %s10616_s25   ;;  %s8471_s24 = sphi %s8529_s24, %s10615_s24  }
   0x4   : > { %s8554_s30 = sadd.s32 1, %s8483_s27   ;;  %s179_s8 = sadd.s32 1, %s8479_s26 }
   0x5   : > { %s176_s9 = ssub.s32 %s8483_s27, %s8554_s30  ;;  %p189_p0 = scmp.ne.s32.totalorder %s8479_s26, %s8475_s25 }
   0x6   : > { %p177_p1 = scmp.eq.s32.totalorder %s176_s9, 0  ;;  %p190_p2 = scmp.eq.s32.totalorder %s8550_s28, 1 }
   0x7   : > { %p195_p3 = scmp.ne.s32.totalorder %s8475_s25, %s8471_s24  ;;  %p196_p4 = scmp.eq.s32.totalorder %s6665_s29, 1 }
   0x8   : > { %s8565_s10 = scalar_select %p177_p1, %s8479_s26, %s179_s8  }
   0x9   : > { %p8567_p5 = por %p190_p2, %p189_p0  ;;  %p8571_p6 = por %p196_p4, %p195_p3 }
   0xa   : > { %p6668_p7 = scmp.ge.s32.totalorder %s8483_s27, 1  ;;  %p240_p8 = scmp.lt.s32.totalorder %s8483_s27, 3 }
   0xc   : > { %p241_p9 = pnand %p6668_p7, %p240_p8 }
   0xe   : > { %244 = sbr.rel (%p241_p9) target bundleno = 1207 (0x4b7), region = 48 }
  0x15   : > { %v8294_v0 = vld [vmem:[%s10503_s1] sm:$0xff]   ;;  %p272_p10 = scmp.lt.s32.totalorder %s8550_s28, 1  ;;  %v8295_v1 = vld [vmem:[%s10503_s1 + $0x8] sm:$0xff]   ;;  %v8296_v2 = vld [vmem:[%s10503_s1 + $0x10] sm:$0xff]   ;;  %vm281_vm0 = vcmask 253952   ;;  %v10534_v10 = vmov 0 }
  0x16   : > { %7584 = vmatprep.subr.bf16.mxu0 %v8294_v0  ;;  %v8297_v3 = vld [vmem:[%s10503_s1 + $0x18] sm:$0xff]   ;;  %v8298_v5 = vld [vmem:[%s10503_s1 + $0x20] sm:$0xff]   ;;  %v8299_v6 = vld [vmem:[%s10503_s1 + $0x28] sm:$0xff]   ;;  %vm288_vm1 = vsmask.f32 256  ;;  %v10537_v29 = vmov 0 }
  0x17   : > { %s273_s17 = scalar_select %p272_p10, %s8550_s28, 1  ;;  %7585 = vmatpush3.bf16.msra.mxu0 %v8294_v0  ;;  %v8300_v7 = vld [vmem:[%s10503_s1 + $0x30] sm:$0xff]   ;;  %v8301_v8 = vld [vmem:[%s10503_s1 + $0x38] sm:$0xff]   ;;  %vm8611_vm2 = vmand %vm281_vm0, %vm288_vm1  ;;  %vm344_vm3 = vsmask.f32 7938  ;;  %vm278_vm5 = vcmask 257024  }
  0x18   : > { %7586 = vmatprep.subr.bf16.mxu0 %v8295_v1  ;;  %v296_v9 = vld [vmem:[#allocation2 + $0x18] sm:$0x1]  ;;  %v10535_v10 = vsel %vm8611_vm2, 4294967295, %v10534_v10  ;;  %v293_v27 = vld [vmem:[#allocation2 + $0xc] sm:$0x1]  ;;  %vm8636_vm4 = vmand %vm281_vm0, %vm344_vm3  ;;  %v8485_v40 = vmov 0  }
  0x19   : > { %s7140_s20 = sshll.u32 %s273_s17, 7  ;;  %10536 = vst [vmem:[#allocation6_spill] sm:$0xff] %v10535_v10  ;;  %v297_v11 = vsel %vm8611_vm2, 0, %v296_v9  ;;  %v294_v28 = vsel %vm8611_vm2, 0, %v293_v27  ;;  %v10538_v29 = vsel %vm8636_vm4, 4294967295, %v10537_v29  ;;  %v8318_v55 = vld [vmem:[%s10504_s2 + $0x10] sm:$0xff]   ;;  %vm8750_vm11 = vmand %vm278_vm5, %vm344_vm3 }
  0x1a   : > { %s8591_s23 = scalar_lea.vmem %s10502_s0, %s7140_s20  ;;  %298 = vst [vmem:[#allocation2 + $0x18] sm:$0x1] %v297_v11  ;;  %10539 = vst [vmem:[#allocation7_spill] sm:$0xff] %v10538_v29  ;;  %v352_v30 = vld [vmem:[#allocation2 + $0x20] sm:$0x1]  ;;  %vm1828_vm9 = vcmask 261120  }
  0x1b   : > { %7587 = vmatpush3.bf16.msra.mxu0 %v8295_v1  ;;  %v8302_v4 = vld [vmem:[%s8591_s23] sm:$0xff]   ;;  %v8303_v12 = vld [vmem:[%s8591_s23 + $0x8] sm:$0xff]   ;;  %v8304_v13 = vld [vmem:[%s8591_s23 + $0x10] sm:$0xff]   ;;  %295 = vst [vmem:[#allocation2 + $0xc] sm:$0x1] %v294_v28  ;;  %v353_v31 = vsel %vm8636_vm4, 0, %v352_v30 }
  0x1c   : > { %7588 = vmatprep.subr.bf16.mxu0 %v8296_v2  ;;  %7600 = vmatprep.mubr.bf16.mxu0 %v8302_v4  ;;  %v8305_v14 = vld [vmem:[%s8591_s23 + $0x18] sm:$0xff]   ;;  %v8306_v15 = vld [vmem:[%s8591_s23 + $0x20] sm:$0xff]   ;;  %v8307_v16 = vld [vmem:[%s8591_s23 + $0x28] sm:$0xff]   ;;  %354 = vst [vmem:[#allocation2 + $0x20] sm:$0x1] %v353_v31  ;;  %vm2387_vm13 = vcmask 1042432  }
  0x1d   : > { %v8308_v17 = vld [vmem:[%s8591_s23 + $0x30] sm:$0xff]   ;;  %v8309_v18 = vld [vmem:[%s8591_s23 + $0x38] sm:$0xff]   ;;  %v8310_v19 = vld [vmem:[%s8591_s23 + $0x40] sm:$0xff]   ;;  %279 = vst.msk [vmem:[#allocation2] sm:$0xf] %vm278_vm5, %v8485_v40  ;;  %vm2388_vm14 = vcmask 1046532  }
  0x1e   : > { %v8311_v20 = vld [vmem:[%s8591_s23 + $0x48] sm:$0xff]   ;;  %v8312_v21 = vld [vmem:[%s8591_s23 + $0x50] sm:$0xff]   ;;  %v8313_v22 = vld [vmem:[%s8591_s23 + $0x58] sm:$0xff]   ;;  %280 = vst.msk [vmem:[#allocation2 + $0x4] sm:$0xf] %vm278_vm5, %v8485_v40  ;;  %s269_s22 = sand.u32 1, %s8475_s25  }
  0x1f   : > { %7589 = vmatpush3.bf16.msra.mxu0 %v8296_v2  ;;  %v8314_v23 = vld [vmem:[%s8591_s23 + $0x60] sm:$0xff]   ;;  %v8315_v24 = vld [vmem:[%s8591_s23 + $0x68] sm:$0xff]   ;;  %v8316_v25 = vld [vmem:[%s8591_s23 + $0x70] sm:$0xff]   ;;  %282 = vst.msk [vmem:[#allocation2 + $0x8] sm:$0x1] %vm281_vm0, %v8485_v40  ;;  %s6669_s29 = sshll.u32 %s269_s22, 7 }
  0x20   : > { %7590 = vmatprep.subr.bf16.mxu0 %v8297_v3  ;;  %v8317_v26 = vld [vmem:[%s8591_s23 + $0x78] sm:$0xff]   ;;  %v349_v32 = vld [vmem:[#allocation2 + $0x14] sm:$0x1]  ;;  %v302_v34 = vld [vmem:[#allocation2 + $0x30] sm:$0x1]  ;;  %s10394_s8 = scalar_lea.vmem [#allocation3], %s6669_s29 }
  0x21   : > { %v350_v33 = vsel %vm8636_vm4, 0, %v349_v32  ;;  %v303_v35 = vsel %vm8611_vm2, 0, %v302_v34  ;;  %v299_v36 = vld [vmem:[#allocation2 + $0x24] sm:$0x1]  ;;  %v358_v38 = vld [vmem:[#allocation2 + $0x38] sm:$0x1]  ;;  %vm9405_vm15 = vmor %vm2387_vm13, %vm2388_vm14 }
  0x22   : > { %351 = vst [vmem:[#allocation2 + $0x14] sm:$0x1] %v350_v33  ;;  %304 = vst [vmem:[#allocation2 + $0x30] sm:$0x1] %v303_v35  ;;  %v300_v37 = vsel %vm8611_vm2, 0, %v299_v36  ;;  %v359_v39 = vsel %vm8636_vm4, 0, %v358_v38 }
  0x23   : > { %7591 = vmatpush3.bf16.msra.mxu0 %v8297_v3  ;;  %301 = vst [vmem:[#allocation2 + $0x24] sm:$0x1] %v300_v37  ;;  %360 = vst [vmem:[#allocation2 + $0x38] sm:$0x1] %v359_v39  ;;  %v355_v41 = vld [vmem:[#allocation2 + $0x2c] sm:$0x1] }
  0x24   : > { %7592 = vmatprep.subr.bf16.mxu0 %v8298_v5  ;;  %284 = vst.msk [vmem:[#allocation2 + $0xcc] sm:$0xf] %vm278_vm5, %v8485_v40  ;;  %285 = vst.msk [vmem:[#allocation2 + $0xd0] sm:$0xf] %vm278_vm5, %v8485_v40  ;;  %v356_v42 = vsel %vm8636_vm4, 0, %v355_v41  ;;  %v8319_v3 = vld [vmem:[%s10504_s2 + $0x18] sm:$0xff]  }
  0x25   : > { %286 = vst.msk [vmem:[#allocation2 + $0xd4] sm:$0x1] %vm281_vm0, %v8485_v40  ;;  %357 = vst [vmem:[#allocation2 + $0x2c] sm:$0x1] %v356_v42  ;;  %v308_v43 = vld [vmem:[#allocation2 + $0x48] sm:$0x1] }
  0x26   : > { %v290_v44 = vld [vmem:[#allocation2] sm:$0x1]  ;;  %v309_v45 = vsel %vm8611_vm2, 0, %v308_v43  ;;  %v305_v46 = vld [vmem:[#allocation2 + $0x3c] sm:$0x1]  ;;  %s6603_s9 = sshll.u32 %s10394_s8, 4  ;;  %s10455_s9 = int_to_ptr.vmem [resolvable:$true] %s6603_s9 }
  0x27   : > { %7593 = vmatpush3.bf16.msra.mxu0 %v8298_v5  ;;  %v291_v47 = vsel %vm8611_vm2, 0, %v290_v44  ;;  %310 = vst [vmem:[#allocation2 + $0x48] sm:$0x1] %v309_v45  ;;  %v306_v48 = vsel %vm8611_vm2, 0, %v305_v46  ;;  %v364_v49 = vld [vmem:[#allocation2 + $0x50] sm:$0x1] }
  0x28   : > { %7594 = vmatprep.subr.bf16.mxu0 %v8299_v6  ;;  %292 = vst [vmem:[#allocation2] sm:$0x1] %v291_v47  ;;  %307 = vst [vmem:[#allocation2 + $0x3c] sm:$0x1] %v306_v48  ;;  %v365_v50 = vsel %vm8636_vm4, 0, %v364_v49  ;;  %v8321_v33 = vld [vmem:[%s10504_s2 + $0x38] sm:$0xff]  }
  0x29   : > { %366 = vst [vmem:[#allocation2 + $0x50] sm:$0x1] %v365_v50  ;;  %v361_v51 = vld [vmem:[#allocation2 + $0x44] sm:$0x1]  ;;  %v346_v52 = vld [vmem:[#allocation2 + $0x8] sm:$0x1] }
  0x2a   : > { %v362_v53 = vsel %vm8636_vm4, 0, %v361_v51  ;;  %v347_v54 = vsel %vm8636_vm4, 0, %v346_v52  ;;  %v314_v56 = vld [vmem:[#allocation2 + $0x60] sm:$0x1]  ;;  %v311_v59 = vld [vmem:[#allocation2 + $0x54] sm:$0x1] }
  0x2b   : > { %7595 = vmatpush3.bf16.msra.mxu0 %v8299_v6  ;;  %363 = vst [vmem:[#allocation2 + $0x44] sm:$0x1] %v362_v53  ;;  %348 = vst [vmem:[#allocation2 + $0x8] sm:$0x1] %v347_v54  ;;  %v315_v58 = vsel %vm8611_vm2, 0, %v314_v56  ;;  %v312_v61 = vsel %vm8611_vm2, 0, %v311_v59 }
  0x2c   : > { %7596 = vmatprep.subr.bf16.mxu0 %v8300_v7  ;;  %316 = vst [vmem:[#allocation2 + $0x60] sm:$0x1] %v315_v58  ;;  %v370_v62 = vld [vmem:[#allocation2 + $0x68] sm:$0x1]  ;;  %v1326_v63 = vld [vmem:[#allocation2 + $0x4] sm:$0xf] }
  0x2d   : > { %313 = vst [vmem:[#allocation2 + $0x54] sm:$0x1] %v312_v61  ;;  %v371_v1 = vsel %vm8636_vm4, 0, %v370_v62  ;;  %v367_v2 = vld [vmem:[#allocation2 + $0x5c] sm:$0x1]  ;;  %v1394_v9 = vshrl.u32 %v1326_v63, 16 }
  0x2e   : > { %372 = vst [vmem:[#allocation2 + $0x68] sm:$0x1] %v371_v1  ;;  %v368_v4 = vsel %vm8636_vm4, 0, %v367_v2  ;;  %vm1377_vm6 = vsmask.f32 3328  ;;  %v8717_v41 = vld [vmem:[%s10504_s2 + $0x40] sm:$0xff]  }
  0x2f   : > { %7597 = vmatpush3.bf16.msra.mxu0 %v8300_v7  ;;  %v1325_v57 = vld [vmem:[#allocation2] sm:$0xf]  ;;  %369 = vst [vmem:[#allocation2 + $0x5c] sm:$0x1] %v368_v4  ;;  %vm1378_vm7 = vsmask.f32 7440 }
  0x30   : > { %7598 = vmatprep.subr.bf16.mxu0 %v8301_v8  ;;  %v1381_v60 = vshrl.u32 %v1325_v57, 16  ;;  %v1384_v0 = vshll.u32 %v1325_v57, 16  ;;  %vm8694_vm8 = vmor %vm1377_vm6, %vm1378_vm7  ;;  %v373_v30 = vld [vmem:[#allocation2 + $0x74] sm:$0x1]  ;;  %v326_v34 = vld [vmem:[#allocation2 + $0x90] sm:$0x1] }
  0x31   : > { %v374_v32 = vsel %vm8636_vm4, 0, %v373_v30  ;;  %v327_v35 = vsel %vm8611_vm2, 0, %v326_v34  ;;  %v323_v36 = vld [vmem:[#allocation2 + $0x84] sm:$0x1]  ;;  %v382_v37 = vld [vmem:[#allocation2 + $0x98] sm:$0x1] }
  0x32   : > { %v1361_v5 = vld [vmem:[#allocation2 + $0x8] sm:$0x1]  ;;  %v1383_v6 = vrot.slane %v1381_v60, 4  ;;  %v1386_v7 = vrot.slane %v1384_v0, 5  ;;  %375 = vst [vmem:[#allocation2 + $0x74] sm:$0x1] %v374_v32 }
  0x33   : > { %7599 = vmatpush3.bf16.msra.mxu0 %v8301_v8  ;;  %v1390_v8 = vshll.u32 %v1326_v63, 16  ;;  %v1400_v11 = vshll.u32 %v1361_v5, 16  ;;  %328 = vst [vmem:[#allocation2 + $0x90] sm:$0x1] %v327_v35  ;;  %v324_v38 = vsel %vm8611_vm2, 0, %v323_v36  ;;  %v383_v39 = vsel %vm8636_vm4, 0, %v382_v37 }
  0x34   : > { %7632 = vmatprep.subr.bf16.mxu0 %v8318_v55  ;;  %v379_v40 = vld [vmem:[#allocation2 + $0x8c] sm:$0x1]  ;;  %325 = vst [vmem:[#allocation2 + $0x84] sm:$0x1] %v324_v38  ;;  %384 = vst [vmem:[#allocation2 + $0x98] sm:$0x1] %v383_v39 }
  0x35   : > { %v380_v42 = vsel %vm8636_vm4, 0, %v379_v40  ;;  %v332_v43 = vld [vmem:[#allocation2 + $0xa8] sm:$0x1]  ;;  %v329_v45 = vld [vmem:[#allocation2 + $0x9c] sm:$0x1]  ;;  %s8421_s16 = scalar_lea.vmem %s10455_s9, 2048 }
  0x36   : > { %7601 = vmatmul.mubr.bf16.vlgmr.msra.gmra.mrb[0].mxu0 %v8303_v12  ;;  %v1387_v12 = vor.u32 %v1386_v7, %v1383_v6  ;;  %381 = vst [vmem:[#allocation2 + $0x8c] sm:$0x1] %v380_v42  ;;  %v333_v44 = vsel %vm8611_vm2, 0, %v332_v43  ;;  %v388_v46 = vld [vmem:[#allocation2 + $0xb0] sm:$0x1]  ;;  %v330_v47 = vsel %vm8611_vm2, 0, %v329_v45  ;;  %p8422_p11 = scmp.ne.s32.totalorder %s10455_s9, %s8421_s16 }
  0x37   : > { %7604 = vmatprep.mubr.bf16.mxu0 %v8304_v13  ;;  %7633 = vmatpush3.bf16.msra.mxu0 %v8318_v55  ;;  %v1392_v13 = vrot.slane %v1390_v8, 5  ;;  %334 = vst [vmem:[#allocation2 + $0xa8] sm:$0x1] %v333_v44  ;;  %v389_v48 = vsel %vm8636_vm4, 0, %v388_v46  ;;  %331 = vst [vmem:[#allocation2 + $0x9c] sm:$0x1] %v330_v47 }
  0x38   : > { %7634 = vmatprep.subr.bf16.mxu0 %v8319_v3  ;;  %390 = vst [vmem:[#allocation2 + $0xb0] sm:$0x1] %v389_v48  ;;  %v385_v49 = vld [vmem:[#allocation2 + $0xa4] sm:$0x1]  ;;  %v338_v51 = vld [vmem:[#allocation2 + $0xc0] sm:$0x1]  ;;  %p8423_p12 = pnand %p8422_p11, %p8567_p5 }
  0x39   : > { %v386_v50 = vsel %vm8636_vm4, 0, %v385_v49  ;;  %v339_v52 = vsel %vm8611_vm2, 0, %v338_v51  ;;  %v335_v53 = vld [vmem:[#allocation2 + $0xb4] sm:$0x1]  ;;  %v394_v55 = vld [vmem:[#allocation2 + $0xc8] sm:$0x1] }
  0x3a   : > { %387 = vst [vmem:[#allocation2 + $0xa4] sm:$0x1] %v386_v50  ;;  %340 = vst [vmem:[#allocation2 + $0xc0] sm:$0x1] %v339_v52  ;;  %v336_v54 = vsel %vm8611_vm2, 0, %v335_v53  ;;  %v395_v56 = vsel %vm8636_vm4, 0, %v394_v55  ;;  %p8424_p13 = pneg %p8423_p12 }
  0x3b   : > { %7635 = vmatpush3.bf16.msra.mxu0 %v8319_v3  ;;  %337 = vst [vmem:[#allocation2 + $0xb4] sm:$0x1] %v336_v54  ;;  %396 = vst [vmem:[#allocation2 + $0xc8] sm:$0x1] %v395_v56  ;;  %v391_v57 = vld [vmem:[#allocation2 + $0xbc] sm:$0x1] }
  0x3c   : > { %v392_v58 = vsel %vm8636_vm4, 0, %v391_v57  ;;  %v8741_v59 = vld [vmem:[%s10506_s4] ss:$0 sm:$0xff]  ;;  %vm888_vm10 = vsmask.f32 4368  ;;  %s8486_s17 = smov [#allocation3]  }
  0x3d   : > { %393 = vst [vmem:[#allocation2 + $0xbc] sm:$0x1] %v392_v58  ;;  %v1213_v34 = vld [vmem:[#allocation2 + $0xc] sm:$0xf]  ;;  %vm8757_vm12 = vmor %vm288_vm1, %vm888_vm10  ;;  %v1224_v42 = vld [vmem:[#allocation2 + $0x20] sm:$0x1] }
  0x3e   : > { %7605 = vmatmul.mubr.bf16.gmra.mrb[4].mxu0 %v8305_v14  ;;  %v320_v14 = vld [vmem:[#allocation2 + $0x78] sm:$0x1]  ;;  %v1217_v48 = vld [vmem:[#allocation2 + $0x14] sm:$0x1]  ;;  %s8425_s18 = sshll.u32 %s8486_s17, 4  ;;  %s8426_s18 = int_to_ptr.vmem [resolvable:$false] %s8425_s18 }
  0x3f   : > { %7608 = vmatprep.mubr.bf16.mxu0 %v8306_v15  ;;  %v1396_v15 = vrot.slane %v1394_v9, 4  ;;  %s8427_s19 = scalar_lea.vmem %s8426_s18, 4096  ;;  %p8428_p0 = scmp.lt.s32.totalorder %s10455_s9, %s8426_s18 }
  0x40   : > { %p8429_p1 = scmp.lt.s32.totalorder %s8427_s19, %s8421_s16 }
  0x42   : > { %p8430_p2 = por %p8429_p1, %p8428_p0 }
  0x44   : > { %p8431_p3 = pnand %p8430_p2, %p8424_p13 }
  0x46   : > { %7609 = vmatmul.mubr.bf16.gmra.mrb[8].mxu0 %v8307_v16  ;;  %v321_v16 = vsel %vm8611_vm2, 0, %v320_v14 }
  0x47   : > { %7612 = vmatprep.mubr.bf16.mxu0 %v8308_v17  ;;  %v317_v17 = vld [vmem:[#allocation2 + $0x6c] sm:$0x1]  ;;  %322 = vst [vmem:[#allocation2 + $0x78] sm:$0x1] %v321_v16 }
  0x4e   : > { %7613 = vmatmul.mubr.bf16.gmra.mrb[12].mxu0 %v8309_v18  ;;  %v1388_v18 = vrot.slane %v1387_v12, 4 }
  0x4f   : > { %7616 = vmatprep.mubr.bf16.mxu0 %v8310_v19  ;;  %v318_v19 = vsel %vm8611_vm2, 0, %v317_v17 }
  0x50   : > { %319 = vst [vmem:[#allocation2 + $0x6c] sm:$0x1] %v318_v19 }
  0x56   : > { %7617 = vmatmul.mubr.bf16.gmra.mrb[16].mxu0 %v8311_v20  ;;  %v376_v20 = vld [vmem:[#allocation2 + $0x80] sm:$0x1] }
  0x57   : > { %7620 = vmatprep.mubr.bf16.mxu0 %v8312_v21  ;;  %v1397_v21 = vor.u32 %v1396_v15, %v1392_v13 }
  0x59   : > { %v1398_v27 = vrot.slane %v1397_v21, 4 }
  0x5e   : > { %7621 = vmatmul.mubr.bf16.gmra.mrb[20].mxu0 %v8313_v22  ;;  %v1402_v22 = vrot.slane %v1400_v11, 5 }
  0x5f   : > { %7624 = vmatprep.mubr.bf16.mxu0 %v8314_v23  ;;  %v8320_v23 = vld [vmem:[%s10504_s2 + $0x30] sm:$0xff]  }
  0x60   : > { %7992 = vmatprep.subr.bf16.mxu1 %v8320_v23  ;;  %v1403_v28 = vsel %vm8694_vm8, %v1398_v27, %v1402_v22 }
  0x61   : > { %7994 = vmatpush3.bf16.msra.mxu1 %v8320_v23 }
  0x62   : > { %7993 = vmatprep.subr.bf16.mxu1 %v8321_v33 }
  0x65   : > { %7995 = vmatpush3.bf16.msra.mxu1 %v8321_v33 }
  0x66   : > { %7625 = vmatmul.mubr.bf16.gmra.mrb[24].mxu0 %v8315_v24  ;;  %v377_v24 = vsel %vm8636_vm4, 0, %v376_v20  ;;  %7776 = vmatprep.subr.bf16.mxu1 %v8717_v41 }
  0x67   : > { %7628 = vmatprep.mubr.bf16.mxu0 %v8316_v25  ;;  %378 = vst [vmem:[#allocation2 + $0x80] sm:$0x1] %v377_v24  ;;  %v1220_v24 = vld [vmem:[#allocation2 + $0x18] sm:$0xf] }
  0x6e   : > { %7629 = vmatmul.mubr.bf16.gmra.mrb[28].mxu0 %v8317_v26  ;;  %v1393_v26 = vsel %vm8694_vm8, %v1388_v18, %v1392_v13 }
  0x6f   : > { %v6729_v31 = vcombine.low %v1393_v26, %v1403_v28 }
  0x71   : > { %7636 = vmatprep.mubr.msk.bf16.mxu0 %vm1828_vm9, %v6729_v31 }
 0x109   : > { %v7602_v60 = vpop.f32.mrb[0].mxu0 }
 0x10a   : > { %v642_v61 = vadd.f32 %v7602_v60, %v8741_v59  ;;  %v633_v62 = vpop.f32.mrb[1].mxu0 }
 0x10b   : > { %v634_v63 = vadd.f32 %v8741_v59, %v633_v62  ;;  %v7603_v0 = vpop.f32.mrb[2].mxu0 }
 0x10c   : > { %v762_v1 = vmax.f32 %v642_v61, 0.0  ;;  %v645_v2 = vadd.f32 %v7603_v0, %v8741_v59  ;;  %v636_v3 = vpop.f32.mrb[3].mxu0 }
 0x10d   : > { %v760_v4 = vmax.f32 %v634_v63, 0.0  ;;  %v637_v5 = vadd.f32 %v8741_v59, %v636_v3 }
 0x10e   : > { %v7143_v6 = vpack.c.bf16 %v762_v1, %v762_v1  ;;  %v763_v7 = vmax.f32 %v645_v2, 0.0 }
 0x10f   : > { %v7141_v8 = vpack.c.bf16 %v760_v4, %v760_v4  ;;  %v761_v9 = vmax.f32 %v637_v5, 0.0  ;;  %v1234_v4 = vld [vmem:[#allocation2 + $0x30] sm:$0xf] }
 0x110   : > { %v908_v11 = vshrl.u32 %v7143_v6, 16  ;;  %v7144_v12 = vpack.c.bf16 %v763_v7, %v763_v7  ;;  %v911_v13 = vshll.u32 %v7143_v6, 16 }
 0x111   : > { %v891_v14 = vshrl.u32 %v7141_v8, 16  ;;  %v894_v15 = vshll.u32 %v7141_v8, 16  ;;  %v7142_v16 = vpack.c.bf16 %v761_v9, %v761_v9  ;;  %v7606_v17 = vpop.f32.mrb[4].mxu0 }
 0x112   : > { %v910_v18 = vrot.slane %v908_v11, 7  ;;  %v916_v19 = vshrl.u32 %v7144_v12, 16  ;;  %v919_v20 = vshll.u32 %v7144_v12, 16  ;;  %v658_v21 = vadd.f32 %v7606_v17, %v8741_v59  ;;  %v649_v22 = vpop.f32.mrb[5].mxu0  ;;  %v1227_v12 = vld [vmem:[#allocation2 + $0x24] sm:$0xf] }
 0x113   : > { %v893_v26 = vrot.slane %v891_v14, 7  ;;  %v899_v27 = vshrl.u32 %v7142_v16, 16  ;;  %v902_v28 = vshll.u32 %v7142_v16, 16  ;;  %v650_v30 = vadd.f32 %v8741_v59, %v649_v22  ;;  %v7607_v31 = vpop.f32.mrb[6].mxu0 }
 0x114   : > { %v913_v32 = vor.u32 %v911_v13, %v910_v18  ;;  %v914_v33 = vrot.slane %v910_v18, 4  ;;  %v918_v35 = vrot.slane %v916_v19, 7  ;;  %v766_v36 = vmax.f32 %v658_v21, 0.0  ;;  %v652_v37 = vpop.f32.mrb[7].mxu0 }
 0x115   : > { %v896_v38 = vor.u32 %v894_v15, %v893_v26  ;;  %v897_v39 = vrot.slane %v893_v26, 4  ;;  %v901_v43 = vrot.slane %v899_v27, 7  ;;  %v764_v44 = vmax.f32 %v650_v30, 0.0 }
 0x116   : > { %v1221_v45 = vsel %vm8750_vm11, %v913_v32, %v1220_v24  ;;  %v921_v46 = vor.u32 %v919_v20, %v918_v35  ;;  %v923_v47 = vrot.slane %v918_v35, 4  ;;  %v7147_v49 = vpack.c.bf16 %v766_v36, %v766_v36  ;;  %v1238_v35 = vld [vmem:[#allocation2 + $0x38] sm:$0x1]  ;;  %v1231_v36 = vld [vmem:[#allocation2 + $0x2c] sm:$0x1] }
 0x117   : > { %1222 = vst [vmem:[#allocation2 + $0x18] sm:$0xf] %v1221_v45  ;;  %v1214_v50 = vsel %vm8750_vm11, %v896_v38, %v1213_v34  ;;  %v904_v51 = vor.u32 %v902_v28, %v901_v43  ;;  %v906_v52 = vrot.slane %v901_v43, 4  ;;  %v7145_v53 = vpack.c.bf16 %v764_v44, %v764_v44 }
 0x118   : > { %1215 = vst [vmem:[#allocation2 + $0xc] sm:$0xf] %v1214_v50  ;;  %v922_v54 = vsel %vm8757_vm12, %v914_v33, %v921_v46  ;;  %v1225_v55 = vsel %vm8611_vm2, %v923_v47, %v1224_v42  ;;  %v942_v56 = vshrl.u32 %v7147_v49, 16  ;;  %v945_v60 = vshll.u32 %v7147_v49, 16  ;;  %v1248_v50 = vld [vmem:[#allocation2 + $0x48] sm:$0xf] }
 0x119   : > { %1223 = vst.msk [vmem:[#allocation2 + $0x1c] sm:$0xf] %vm278_vm5, %v922_v54  ;;  %1226 = vst [vmem:[#allocation2 + $0x20] sm:$0x1] %v1225_v55  ;;  %v905_v57 = vsel %vm8757_vm12, %v897_v39, %v904_v51  ;;  %v1218_v58 = vsel %vm8611_vm2, %v906_v52, %v1217_v48  ;;  %v925_v61 = vshrl.u32 %v7145_v53, 16  ;;  %v7610_v62 = vpop.f32.mrb[8].mxu0  ;;  %v661_v0 = vadd.f32 %v7607_v31, %v8741_v59 }
 0x11a   : > { %1216 = vst.msk [vmem:[#allocation2 + $0x10] sm:$0xf] %vm278_vm5, %v905_v57  ;;  %1219 = vst [vmem:[#allocation2 + $0x14] sm:$0x1] %v1218_v58  ;;  %v8775_v63 = vrot.slane %v942_v56, 7  ;;  %v653_v1 = vadd.f32 %v8741_v59, %v652_v37  ;;  %v674_v2 = vadd.f32 %v7610_v62, %v8741_v59  ;;  %v665_v3 = vpop.f32.mrb[9].mxu0 }
 0x11b   : > { %v927_v5 = vrot.slane %v925_v61, 7  ;;  %v928_v6 = vshll.u32 %v7145_v53, 16  ;;  %v666_v7 = vadd.f32 %v8741_v59, %v665_v3  ;;  %v7611_v8 = vpop.f32.mrb[10].mxu0  ;;  %v767_v13 = vmax.f32 %v661_v0, 0.0 }
 0x11c   : > { %v947_v9 = vor.u32 %v945_v60, %v8775_v63  ;;  %v948_v11 = vrot.slane %v8775_v63, 4  ;;  %v765_v14 = vmax.f32 %v653_v1, 0.0  ;;  %v668_v15 = vpop.f32.mrb[11].mxu0  ;;  %v770_v18 = vmax.f32 %v674_v2, 0.0  ;;  %v1241_v60 = vld [vmem:[#allocation2 + $0x3c] sm:$0xf] }
 0x11d   : > { %v930_v16 = vor.u32 %v928_v6, %v927_v5  ;;  %v931_v17 = vrot.slane %v927_v5, 4  ;;  %v768_v19 = vmax.f32 %v666_v7, 0.0  ;;  %v7148_v21 = vpack.c.bf16 %v767_v13, %v767_v13  ;;  %v8810_v6 = vld [vmem:[%s10504_s2] sm:$0xff]  }
 0x11e   : > { %v1235_v20 = vsel %vm8750_vm11, %v947_v9, %v1234_v4  ;;  %v7146_v22 = vpack.c.bf16 %v765_v14, %v765_v14  ;;  %v677_v24 = vadd.f32 %v7611_v8, %v8741_v59  ;;  %v7151_v27 = vpack.c.bf16 %v770_v18, %v770_v18  ;;  %7668 = vmatprep.subr.bf16.mxu0 %v8810_v6 }
 0x11f   : > { %1236 = vst [vmem:[#allocation2 + $0x30] sm:$0xf] %v1235_v20  ;;  %v1228_v26 = vsel %vm8750_vm11, %v930_v16, %v1227_v12  ;;  %v7149_v28 = vpack.c.bf16 %v768_v19, %v768_v19  ;;  %v669_v30 = vadd.f32 %v8741_v59, %v668_v15  ;;  %v950_v31 = vshrl.u32 %v7148_v21, 16 }
 0x120   : > { %1229 = vst [vmem:[#allocation2 + $0x24] sm:$0xf] %v1228_v26  ;;  %v953_v32 = vshll.u32 %v7148_v21, 16  ;;  %v933_v33 = vshrl.u32 %v7146_v22, 16  ;;  %v936_v34 = vshll.u32 %v7146_v22, 16  ;;  %v976_v37 = vshrl.u32 %v7151_v27, 16 }
 0x121   : > { %v979_v38 = vshll.u32 %v7151_v27, 16  ;;  %v959_v39 = vshrl.u32 %v7149_v28, 16  ;;  %v962_v42 = vshll.u32 %v7149_v28, 16  ;;  %v7614_v43 = vpop.f32.mrb[12].mxu0  ;;  %v952_v44 = vrot.slane %v950_v31, 7 }
 0x122   : > { %v935_v45 = vrot.slane %v933_v33, 7  ;;  %v771_v46 = vmax.f32 %v677_v24, 0.0  ;;  %v769_v47 = vmax.f32 %v669_v30, 0.0  ;;  %v681_v48 = vpop.f32.mrb[13].mxu0  ;;  %v8789_v49 = vrot.slane %v976_v37, 7 }
 0x123   : > { %v8791_v51 = vrot.slane %v959_v39, 7  ;;  %v690_v52 = vadd.f32 %v7614_v43, %v8741_v59  ;;  %v682_v53 = vadd.f32 %v8741_v59, %v681_v48  ;;  %v7615_v54 = vpop.f32.mrb[14].mxu0  ;;  %v955_v55 = vor.u32 %v953_v32, %v952_v44  ;;  %v1252_v21 = vld [vmem:[#allocation2 + $0x50] sm:$0x1]  ;;  %v1245_v22 = vld [vmem:[#allocation2 + $0x44] sm:$0x1] }
 0x124   : > { %v957_v56 = vrot.slane %v952_v44, 4  ;;  %v938_v57 = vor.u32 %v936_v34, %v935_v45  ;;  %v940_v58 = vrot.slane %v935_v45, 4  ;;  %v684_v61 = vpop.f32.mrb[15].mxu0  ;;  %v981_v62 = vor.u32 %v979_v38, %v8789_v49  ;;  %v1262_v48 = vld [vmem:[#allocation2 + $0x60] sm:$0xf] }
 0x125   : > { %v982_v63 = vrot.slane %v8789_v49, 4  ;;  %v964_v0 = vor.u32 %v962_v42, %v8791_v51  ;;  %v965_v1 = vrot.slane %v8791_v51, 4  ;;  %v956_v2 = vsel %vm8757_vm12, %v948_v11, %v955_v55 }
 0x126   : > { %v1239_v3 = vsel %vm8611_vm2, %v957_v56, %v1238_v35  ;;  %v939_v4 = vsel %vm8757_vm12, %v931_v17, %v938_v57  ;;  %v1232_v5 = vsel %vm8611_vm2, %v940_v58, %v1231_v36  ;;  %1237 = vst.msk [vmem:[#allocation2 + $0x34] sm:$0xf] %vm278_vm5, %v956_v2  ;;  %v1249_v7 = vsel %vm8750_vm11, %v981_v62, %v1248_v50  ;;  %v1255_v56 = vld [vmem:[#allocation2 + $0x54] sm:$0xf]  ;;  %v1327_v62 = vld [vmem:[#allocation2 + $0xc] sm:$0xf] }
 0x127   : > { %1240 = vst [vmem:[#allocation2 + $0x38] sm:$0x1] %v1239_v3  ;;  %1230 = vst.msk [vmem:[#allocation2 + $0x28] sm:$0xf] %vm278_vm5, %v939_v4  ;;  %v1242_v8 = vsel %vm8750_vm11, %v964_v0, %v1241_v60  ;;  %v7152_v9 = vpack.c.bf16 %v771_v46, %v771_v46  ;;  %v7150_v11 = vpack.c.bf16 %v769_v47, %v769_v47  ;;  %v774_v12 = vmax.f32 %v690_v52, 0.0 }
 0x128   : > { %1233 = vst [vmem:[#allocation2 + $0x2c] sm:$0x1] %v1232_v5  ;;  %1250 = vst [vmem:[#allocation2 + $0x48] sm:$0xf] %v1249_v7  ;;  %v772_v13 = vmax.f32 %v682_v53, 0.0  ;;  %v693_v14 = vadd.f32 %v7615_v54, %v8741_v59  ;;  %v685_v15 = vadd.f32 %v8741_v59, %v684_v61 }
 0x129   : > { %1243 = vst [vmem:[#allocation2 + $0x3c] sm:$0xf] %v1242_v8  ;;  %v984_v16 = vshrl.u32 %v7152_v9, 16  ;;  %v987_v17 = vshll.u32 %v7152_v9, 16  ;;  %v967_v18 = vshrl.u32 %v7150_v11, 16  ;;  %v970_v19 = vshll.u32 %v7150_v11, 16 }
 0x12a   : > { %v7618_v20 = vpop.f32.mrb[16].mxu0  ;;  %v7155_v24 = vpack.c.bf16 %v774_v12, %v774_v12  ;;  %v7153_v26 = vpack.c.bf16 %v772_v13, %v772_v13  ;;  %v775_v27 = vmax.f32 %v693_v14, 0.0  ;;  %v773_v28 = vmax.f32 %v685_v15, 0.0  ;;  %v1266_v12 = vld [vmem:[#allocation2 + $0x68] sm:$0x1] }
 0x12b   : > { %v697_v30 = vpop.f32.mrb[17].mxu0  ;;  %v986_v31 = vrot.slane %v984_v16, 7  ;;  %v969_v32 = vrot.slane %v967_v18, 7  ;;  %v706_v33 = vadd.f32 %v7618_v20, %v8741_v59  ;;  %v1405_v20 = vshrl.u32 %v1327_v62, 16 }
 0x12c   : > { %v698_v34 = vadd.f32 %v8741_v59, %v697_v30  ;;  %v7619_v35 = vpop.f32.mrb[18].mxu0  ;;  %v1010_v36 = vshrl.u32 %v7155_v24, 16  ;;  %v1013_v37 = vshll.u32 %v7155_v24, 16  ;;  %v993_v38 = vshrl.u32 %v7153_v26, 16 }
 0x12d   : > { %v996_v39 = vshll.u32 %v7153_v26, 16  ;;  %v700_v42 = vpop.f32.mrb[19].mxu0  ;;  %v989_v43 = vor.u32 %v987_v17, %v986_v31  ;;  %v991_v44 = vrot.slane %v986_v31, 4  ;;  %v972_v45 = vor.u32 %v970_v19, %v969_v32  ;;  %v1259_v17 = vld [vmem:[#allocation2 + $0x5c] sm:$0x1] }
 0x12e   : > { %v974_v46 = vrot.slane %v969_v32, 4  ;;  %v1012_v47 = vrot.slane %v1010_v36, 7  ;;  %v995_v49 = vrot.slane %v993_v38, 7  ;;  %v7156_v50 = vpack.c.bf16 %v775_v27, %v775_v27 }
 0x12f   : > { %v7154_v51 = vpack.c.bf16 %v773_v28, %v773_v28  ;;  %v990_v52 = vsel %vm8757_vm12, %v982_v63, %v989_v43  ;;  %v1253_v53 = vsel %vm8611_vm2, %v991_v44, %v1252_v21  ;;  %v973_v54 = vsel %vm8757_vm12, %v965_v1, %v972_v45  ;;  %v1362_v43 = vld [vmem:[#allocation2 + $0x14] sm:$0x1] }
 0x130   : > { %v1246_v55 = vsel %vm8611_vm2, %v974_v46, %v1245_v22  ;;  %1251 = vst.msk [vmem:[#allocation2 + $0x4c] sm:$0xf] %vm278_vm5, %v990_v52  ;;  %1254 = vst [vmem:[#allocation2 + $0x50] sm:$0x1] %v1253_v53  ;;  %v1015_v57 = vor.u32 %v1013_v37, %v1012_v47  ;;  %v1016_v58 = vrot.slane %v1012_v47, 4  ;;  %v998_v60 = vor.u32 %v996_v39, %v995_v49 }
 0x131   : > { %1244 = vst.msk [vmem:[#allocation2 + $0x40] sm:$0xf] %vm278_vm5, %v973_v54  ;;  %1247 = vst [vmem:[#allocation2 + $0x44] sm:$0x1] %v1246_v55  ;;  %v999_v61 = vrot.slane %v995_v49, 4  ;;  %v1018_v63 = vshrl.u32 %v7156_v50, 16  ;;  %v709_v14 = vadd.f32 %v7619_v35, %v8741_v59  ;;  %v701_v15 = vadd.f32 %v8741_v59, %v700_v42 }
 0x132   : > { %v1021_v0 = vshll.u32 %v7156_v50, 16  ;;  %v1001_v2 = vshrl.u32 %v7154_v51, 16  ;;  %v1004_v3 = vshll.u32 %v7154_v51, 16  ;;  %v8833_v1 = vpop.f32.mrb[20].mxu0  ;;  %v1263_v4 = vsel %vm8750_vm11, %v1015_v57, %v1262_v48  ;;  %v1276_v39 = vld [vmem:[#allocation2 + $0x78] sm:$0xf] }
 0x133   : > { %v1256_v5 = vsel %vm8750_vm11, %v998_v60, %v1255_v56  ;;  %v778_v7 = vmax.f32 %v706_v33, 0.0  ;;  %v776_v8 = vmax.f32 %v698_v34, 0.0  ;;  %v8839_v9 = vpop.f32.mrb[21].mxu0  ;;  %1264 = vst [vmem:[#allocation2 + $0x60] sm:$0xf] %v1263_v4  ;;  %v1020_v11 = vrot.slane %v1018_v63, 7 }
 0x134   : > { %1257 = vst [vmem:[#allocation2 + $0x54] sm:$0xf] %v1256_v5  ;;  %v1003_v13 = vrot.slane %v1001_v2, 7  ;;  %v8843_v16 = vpop.f32.mrb[22].mxu0  ;;  %v1408_v21 = vshll.u32 %v1327_v62, 16  ;;  %v779_v47 = vmax.f32 %v709_v14, 0.0 }
 0x135   : > { %v7159_v18 = vpack.c.bf16 %v778_v7, %v778_v7  ;;  %v7157_v19 = vpack.c.bf16 %v776_v8, %v776_v8  ;;  %v8845_v22 = vpop.f32.mrb[23].mxu0  ;;  %v1023_v24 = vor.u32 %v1021_v0, %v1020_v11  ;;  %v1025_v26 = vrot.slane %v1020_v11, 4  ;;  %v1328_v34 = vld [vmem:[#allocation2 + $0x10] sm:$0xf]  ;;  %v1269_v42 = vld [vmem:[#allocation2 + $0x6c] sm:$0xf] }
 0x136   : > { %v1006_v27 = vor.u32 %v1004_v3, %v1003_v13  ;;  %v1008_v28 = vrot.slane %v1003_v13, 4  ;;  %v777_v48 = vmax.f32 %v701_v15, 0.0  ;;  %v8330_v50 = vld [vmem:[%s10504_s2 + $0x48] sm:$0xff]   ;;  %v1407_v51 = vrot.slane %v1405_v20, 4  ;;  %v1329_v3 = vld [vmem:[#allocation2 + $0x18] sm:$0xf] }
 0x137   : > { %v1044_v30 = vshrl.u32 %v7159_v18, 16  ;;  %v1047_v31 = vshll.u32 %v7159_v18, 16  ;;  %v1027_v32 = vshrl.u32 %v7157_v19, 16  ;;  %v1030_v33 = vshll.u32 %v7157_v19, 16  ;;  %v8324_v49 = vld [vmem:[#allocation2 + $0x48] sm:$0xff]   ;;  %v8336_v14 = vld [vmem:[%s10504_s2 + $0x50] sm:$0xff]  }
 0x138   : > { %v1024_v35 = vsel %vm8757_vm12, %v1016_v58, %v1023_v24  ;;  %v1267_v36 = vsel %vm8611_vm2, %v1025_v26, %v1266_v12  ;;  %v1007_v37 = vsel %vm8757_vm12, %v999_v61, %v1006_v27  ;;  %v1260_v38 = vsel %vm8611_vm2, %v1008_v28, %v1259_v17  ;;  %v8322_v44 = vld [vmem:[#allocation2 + $0x3c] sm:$0xff]   ;;  %v1273_v20 = vld [vmem:[#allocation2 + $0x74] sm:$0x1]  ;;  %v9231_v29 = vld [vmem:[#allocation2 + $0x50] sm:$0x1] }
 0x139   : > { %1265 = vst.msk [vmem:[#allocation2 + $0x64] sm:$0xf] %vm278_vm5, %v1024_v35  ;;  %1268 = vst [vmem:[#allocation2 + $0x68] sm:$0x1] %v1267_v36  ;;  %v8857_v45 = vrot.slane %v1044_v30, 7  ;;  %v8859_v46 = vrot.slane %v1027_v32, 7  ;;  %7752 = vmatprep.mubr.msk.bf16.mxu1 %vm1828_vm9, %v8322_v44  ;;  %v7160_v62 = vpack.c.bf16 %v779_v47, %v779_v47  ;;  %v7158_v63 = vpack.c.bf16 %v777_v48, %v777_v48 }
 0x13a   : > { %1258 = vst.msk [vmem:[#allocation2 + $0x58] sm:$0xf] %vm278_vm5, %v1007_v37  ;;  %1261 = vst [vmem:[#allocation2 + $0x5c] sm:$0x1] %v1260_v38  ;;  %v1410_v52 = vrot.slane %v1408_v21, 5  ;;  %v1414_v53 = vshll.u32 %v1328_v34, 16  ;;  %7753 = vmatmul.mubr.msk.bf16.vlgmr.msra.gmra.mrb[0].mxu1 %vm1828_vm9, %v8324_v49 }
 0x13b   : > { %v1418_v54 = vshrl.u32 %v1328_v34, 16  ;;  %v8865_v55 = vpop.f32.mrb[24].mxu0  ;;  %v1049_v56 = vor.u32 %v1047_v31, %v8857_v45  ;;  %v1050_v57 = vrot.slane %v8857_v45, 4  ;;  %v1032_v58 = vor.u32 %v1030_v33, %v8859_v46  ;;  %v1330_v4 = vld [vmem:[#allocation2 + $0x1c] sm:$0xf]  ;;  %7777 = vmatpush3.bf16.msra.mxu1 %v8717_v41  ;;  %10548 = vst [vmem:[#allocation10_spill] sm:$0xff] %v9231_v29 }
 0x13c   : > { %v1033_v60 = vrot.slane %v8859_v46, 4  ;;  %v8872_v61 = vpop.f32.mrb[25].mxu0  ;;  %v1411_v0 = vor.u32 %v1410_v52, %v1407_v51  ;;  %v1416_v2 = vrot.slane %v1414_v53, 5  ;;  %v1424_v12 = vshll.u32 %v1362_v43, 16  ;;  %7778 = vmatprep.subr.bf16.mxu1 %v8330_v50  ;;  %v1280_v19 = vld [vmem:[#allocation2 + $0x80] sm:$0x1] }
 0x13d   : > { %v8875_v5 = vpop.f32.mrb[26].mxu0  ;;  %v1277_v7 = vsel %vm8750_vm11, %v1049_v56, %v1276_v39  ;;  %v1270_v8 = vsel %vm8750_vm11, %v1032_v58, %v1269_v42  ;;  %v1420_v11 = vrot.slane %v1418_v54, 4  ;;  %v1052_v41 = vshrl.u32 %v7160_v62, 16  ;;  %v1363_v44 = vld [vmem:[#allocation2 + $0x20] sm:$0x1] }
 0x13e   : > { %v8881_v13 = vpop.f32.mrb[27].mxu0  ;;  %1278 = vst [vmem:[#allocation2 + $0x78] sm:$0xf] %v1277_v7  ;;  %1271 = vst [vmem:[#allocation2 + $0x6c] sm:$0xf] %v1270_v8  ;;  %v1055_v15 = vshll.u32 %v7160_v62, 16  ;;  %v714_v7 = vadd.f32 %v8741_v59, %v8839_v9  ;;  %v725_v8 = vadd.f32 %v8843_v16, %v8741_v59 }
 0x13f   : > { %v1035_v17 = vshrl.u32 %v7158_v63, 16  ;;  %v1038_v18 = vshll.u32 %v7158_v63, 16  ;;  %v1412_v21 = vrot.slane %v1411_v0, 4  ;;  %v1421_v24 = vor.u32 %v1420_v11, %v1416_v2  ;;  %7779 = vmatpush3.bf16.msra.mxu1 %v8330_v50  ;;  %v1331_v58 = vld [vmem:[#allocation2 + $0x24] sm:$0xf]  ;;  %v8338_v63 = vld [vmem:[%s10504_s2 + $0x8] sm:$0xff]  }
 0x140   : > { %v1426_v26 = vrot.slane %v1424_v12, 5  ;;  %v1429_v27 = vshrl.u32 %v1329_v3, 16  ;;  %v1054_v28 = vrot.slane %v1052_v41, 7  ;;  %v1432_v31 = vshll.u32 %v1329_v3, 16  ;;  %7812 = vmatprep.subr.bf16.mxu1 %v8336_v14  ;;  %v8326_v45 = vld [vmem:[#allocation2 + $0x60] sm:$0xff]  }
 0x141   : > { %v1037_v30 = vrot.slane %v1035_v17, 7  ;;  %v1438_v32 = vshll.u32 %v1330_v4, 16  ;;  %v1417_v33 = vsel %vm8694_vm8, %v1412_v21, %v1416_v2  ;;  %v1422_v34 = vrot.slane %v1421_v24, 4  ;;  %v8325_v37 = vld [vmem:[#allocation2 + $0x54] sm:$0xff]   ;;  %v8888_v46 = vpop.f32.mrb[28].mxu0 }
 0x142   : > { %v1431_v35 = vrot.slane %v1429_v27, 4  ;;  %v1442_v36 = vshrl.u32 %v1330_v4, 16  ;;  %v1057_v38 = vor.u32 %v1055_v15, %v1054_v28  ;;  %v1059_v39 = vrot.slane %v1054_v28, 4  ;;  %7756 = vmatprep.mubr.msk.bf16.mxu1 %vm1828_vm9, %v8325_v37  ;;  %v8893_v51 = vpop.f32.mrb[29].mxu0 }
 0x143   : > { %v1040_v42 = vor.u32 %v1038_v18, %v1037_v30  ;;  %v1042_v43 = vrot.slane %v1037_v30, 4  ;;  %v1427_v47 = vsel %vm8694_vm8, %v1422_v34, %v1426_v26  ;;  %v1434_v48 = vrot.slane %v1432_v31, 5  ;;  %7757 = vmatmul.mubr.msk.bf16.gmra.mrb[4].mxu1 %vm1828_vm9, %v8326_v45  ;;  %v8904_v62 = vpop.f32.mrb[30].mxu0  ;;  %v1364_v31 = vld [vmem:[#allocation2 + $0x2c] sm:$0x1] }
 0x144   : > { %v1440_v49 = vrot.slane %v1438_v32, 5  ;;  %v1444_v50 = vrot.slane %v1442_v36, 4  ;;  %v1058_v52 = vsel %vm8757_vm12, %v1050_v57, %v1057_v38  ;;  %v1281_v53 = vsel %vm8611_vm2, %v1059_v39, %v1280_v19  ;;  %v8911_v3 = vpop.f32.mrb[31].mxu0  ;;  %v1290_v38 = vld [vmem:[#allocation2 + $0x90] sm:$0xf] }
 0x145   : > { %v1041_v54 = vsel %vm8757_vm12, %v1033_v60, %v1040_v42  ;;  %v1274_v56 = vsel %vm8611_vm2, %v1042_v43, %v1273_v20  ;;  %1279 = vst.msk [vmem:[#allocation2 + $0x7c] sm:$0xf] %vm278_vm5, %v1058_v52  ;;  %1282 = vst [vmem:[#allocation2 + $0x80] sm:$0x1] %v1281_v53  ;;  %v6730_v57 = vcombine.low %v1417_v33, %v1427_v47  ;;  %v1448_v2 = vshll.u32 %v1363_v44, 16 }
 0x146   : > { %1272 = vst.msk [vmem:[#allocation2 + $0x70] sm:$0xf] %vm278_vm5, %v1041_v54  ;;  %1275 = vst [vmem:[#allocation2 + $0x74] sm:$0x1] %v1274_v56  ;;  %v1435_v60 = vor.u32 %v1434_v48, %v1431_v35  ;;  %v1445_v0 = vor.u32 %v1444_v50, %v1440_v49  ;;  %v722_v4 = vadd.f32 %v8833_v1, %v8741_v59  ;;  %v1453_v15 = vshrl.u32 %v1331_v58, 16 }
 0x147   : > { %v717_v11 = vadd.f32 %v8741_v59, %v8845_v22  ;;  %7637 = vmatmul.mubr.msk.bf16.vlgmr.msra.gmra.mrb[32].mxu0 %vm1828_vm9, %v6730_v57  ;;  %v1450_v41 = vrot.slane %v1448_v2, 5  ;;  %v780_v18 = vmax.f32 %v714_v7, 0.0  ;;  %v783_v19 = vmax.f32 %v725_v8, 0.0  ;;  %v1332_v1 = vld [vmem:[#allocation2 + $0x28] sm:$0xf] }
 0x148   : > { %v1436_v12 = vrot.slane %v1435_v60, 4  ;;  %v1446_v14 = vrot.slane %v1445_v0, 4  ;;  %v782_v17 = vmax.f32 %v722_v4, 0.0  ;;  %7669 = vmatpush3.bf16.msra.mxu0 %v8810_v6  ;;  %v1455_v22 = vrot.slane %v1453_v15, 4  ;;  %v1283_v53 = vld [vmem:[#allocation2 + $0x84] sm:$0xf] }
 0x149   : > { %v781_v20 = vmax.f32 %v717_v11, 0.0  ;;  %v1456_v21 = vshll.u32 %v1331_v58, 16  ;;  %7670 = vmatprep.subr.bf16.mxu0 %v8338_v63  ;;  %v7161_v27 = vpack.c.bf16 %v780_v18, %v780_v18  ;;  %v7164_v28 = vpack.c.bf16 %v783_v19, %v783_v19  ;;  %v1294_v4 = vld [vmem:[#allocation2 + $0x98] sm:$0x1]  ;;  %v1287_v7 = vld [vmem:[#allocation2 + $0x8c] sm:$0x1] }
 0x14a   : > { %v1441_v9 = vsel %vm8694_vm8, %v1436_v12, %v1440_v49  ;;  %v1451_v16 = vsel %vm8694_vm8, %v1446_v14, %v1450_v41  ;;  %v7163_v26 = vpack.c.bf16 %v782_v17, %v782_v17  ;;  %v1462_v33 = vshll.u32 %v1332_v1, 16  ;;  %v1333_v41 = vld [vmem:[#allocation2 + $0x30] sm:$0xf] }
 0x14b   : > { %v6731_v24 = vcombine.low %v1441_v9, %v1451_v16  ;;  %v7162_v30 = vpack.c.bf16 %v781_v20, %v781_v20  ;;  %v1458_v32 = vrot.slane %v1456_v21, 5  ;;  %v1466_v34 = vshrl.u32 %v1332_v1, 16  ;;  %v1334_v20 = vld [vmem:[#allocation2 + $0x34] sm:$0xf]  ;;  %v1365_v1 = vld [vmem:[#allocation2 + $0x38] sm:$0x1] }
 0x14c   : > { %v1078_v6 = vshrl.u32 %v7163_v26, 16  ;;  %v1081_v35 = vshll.u32 %v7163_v26, 16  ;;  %v1061_v36 = vshrl.u32 %v7161_v27, 16  ;;  %v1064_v37 = vshll.u32 %v7161_v27, 16  ;;  %7671 = vmatpush3.bf16.msra.mxu0 %v8338_v63  ;;  %v8328_v52 = vld [vmem:[#allocation2 + $0x78] sm:$0xff]  }
 0x14d   : > { %7640 = vmatprep.mubr.msk.bf16.mxu0 %vm1828_vm9, %v6731_v24  ;;  %v1086_v39 = vshrl.u32 %v7164_v28, 16  ;;  %v1089_v42 = vshll.u32 %v7164_v28, 16  ;;  %v1069_v43 = vshrl.u32 %v7162_v30, 16  ;;  %v1072_v44 = vshll.u32 %v7162_v30, 16  ;;  %v8327_v45 = vld [vmem:[#allocation2 + $0x6c] sm:$0xff]  }
 0x14e   : > { %v1080_v47 = vrot.slane %v1078_v6, 7  ;;  %v1063_v48 = vrot.slane %v1061_v36, 7  ;;  %v1459_v49 = vor.u32 %v1458_v32, %v1455_v22  ;;  %v1464_v50 = vrot.slane %v1462_v33, 5  ;;  %7760 = vmatprep.mubr.msk.bf16.mxu1 %vm1828_vm9, %v8327_v45 }
 0x14f   : > { %v1088_v54 = vrot.slane %v1086_v39, 7  ;;  %v1071_v56 = vrot.slane %v1069_v43, 7  ;;  %v1468_v58 = vrot.slane %v1466_v34, 4  ;;  %v1472_v57 = vshll.u32 %v1364_v31, 16  ;;  %7761 = vmatmul.mubr.msk.bf16.gmra.mrb[8].mxu1 %vm1828_vm9, %v8328_v52 }
 0x150   : > { %v1083_v60 = vor.u32 %v1081_v35, %v1080_v47  ;;  %v1084_v63 = vrot.slane %v1080_v47, 4  ;;  %v1066_v0 = vor.u32 %v1064_v37, %v1063_v48  ;;  %v1067_v2 = vrot.slane %v1063_v48, 4  ;;  %v1335_v37 = vld [vmem:[#allocation2 + $0x3c] sm:$0xf] }
 0x151   : > { %v1091_v8 = vor.u32 %v1089_v42, %v1088_v54  ;;  %v1093_v11 = vrot.slane %v1088_v54, 4  ;;  %v1074_v12 = vor.u32 %v1072_v44, %v1071_v56  ;;  %v1076_v14 = vrot.slane %v1071_v56, 4 }
 0x152   : > { %v1291_v15 = vsel %vm8750_vm11, %v1083_v60, %v1290_v38  ;;  %v1284_v17 = vsel %vm8750_vm11, %v1066_v0, %v1283_v53  ;;  %v1460_v18 = vrot.slane %v1459_v49, 4  ;;  %v1469_v19 = vor.u32 %v1468_v58, %v1464_v50 }
 0x153   : > { %1292 = vst [vmem:[#allocation2 + $0x90] sm:$0xf] %v1291_v15  ;;  %1285 = vst [vmem:[#allocation2 + $0x84] sm:$0xf] %v1284_v17  ;;  %v1092_v9 = vsel %vm8757_vm12, %v1084_v63, %v1091_v8  ;;  %v1295_v16 = vsel %vm8611_vm2, %v1093_v11, %v1294_v4  ;;  %v1075_v22 = vsel %vm8757_vm12, %v1067_v2, %v1074_v12  ;;  %v1474_v27 = vrot.slane %v1472_v57, 5 }
 0x154   : > { %v1288_v21 = vsel %vm8611_vm2, %v1076_v14, %v1287_v7  ;;  %1293 = vst.msk [vmem:[#allocation2 + $0x94] sm:$0xf] %vm278_vm5, %v1092_v9  ;;  %1296 = vst [vmem:[#allocation2 + $0x98] sm:$0x1] %v1295_v16  ;;  %v1465_v24 = vsel %vm8694_vm8, %v1460_v18, %v1464_v50  ;;  %v1470_v26 = vrot.slane %v1469_v19, 4  ;;  %v1477_v28 = vshrl.u32 %v1333_v41, 16 }
 0x155   : > { %1286 = vst.msk [vmem:[#allocation2 + $0x88] sm:$0xf] %vm278_vm5, %v1075_v22  ;;  %1289 = vst [vmem:[#allocation2 + $0x8c] sm:$0x1] %v1288_v21  ;;  %v1480_v30 = vshll.u32 %v1333_v41, 16  ;;  %v1486_v31 = vshll.u32 %v1334_v20, 16  ;;  %v738_v35 = vadd.f32 %v8865_v55, %v8741_v59  ;;  %v730_v36 = vadd.f32 %v8741_v59, %v8872_v61 }
 0x156   : > { %v1490_v32 = vshrl.u32 %v1334_v20, 16  ;;  %v1496_v33 = vshll.u32 %v1365_v1, 16  ;;  %v1475_v34 = vsel %vm8694_vm8, %v1470_v26, %v1474_v27  ;;  %v1479_v6 = vrot.slane %v1477_v28, 4  ;;  %v1297_v11 = vld [vmem:[#allocation2 + $0x9c] sm:$0xf] }
 0x157   : > { %v6732_v38 = vcombine.low %v1465_v24, %v1475_v34  ;;  %v1482_v39 = vrot.slane %v1480_v30, 5  ;;  %v1488_v42 = vrot.slane %v1486_v31, 5  ;;  %v786_v45 = vmax.f32 %v738_v35, 0.0  ;;  %v8961_v19 = vld [vmem:[#allocation2 + $0x40] sm:$0xf] }
 0x158   : > { %v1492_v43 = vrot.slane %v1490_v32, 4  ;;  %v1498_v44 = vrot.slane %v1496_v33, 5  ;;  %v784_v47 = vmax.f32 %v730_v36, 0.0  ;;  %v741_v48 = vadd.f32 %v8875_v5, %v8741_v59  ;;  %v1366_v21 = vld [vmem:[#allocation2 + $0x44] sm:$0x1] }
 0x159   : > { %7641 = vmatmul.mubr.msk.bf16.gmra.mrb[36].mxu0 %vm1828_vm9, %v6732_v38  ;;  %v1483_v49 = vor.u32 %v1482_v39, %v1479_v6  ;;  %v733_v55 = vadd.f32 %v8741_v59, %v8881_v13  ;;  %v1501_v52 = vshrl.u32 %v1335_v37, 16  ;;  %v7167_v61 = vpack.c.bf16 %v786_v45, %v786_v45  ;;  %v1304_v13 = vld [vmem:[#allocation2 + $0xa8] sm:$0xf]  ;;  %v1308_v35 = vld [vmem:[#allocation2 + $0xb0] sm:$0x1] }
 0x15a   : > { %v1493_v50 = vor.u32 %v1492_v43, %v1488_v42  ;;  %v7165_v53 = vpack.c.bf16 %v784_v47, %v784_v47  ;;  %v787_v54 = vmax.f32 %v741_v48, 0.0  ;;  %v1504_v56 = vshll.u32 %v1335_v37, 16  ;;  %v1301_v36 = vld [vmem:[#allocation2 + $0xa4] sm:$0x1]  ;;  %v8972_v45 = vld [vmem:[#allocation2 + $0x48] sm:$0xf] }
 0x15b   : > { %v1484_v58 = vrot.slane %v1483_v49, 4  ;;  %v785_v60 = vmax.f32 %v733_v55, 0.0  ;;  %v1503_v63 = vrot.slane %v1501_v52, 4  ;;  %v1112_v0 = vshrl.u32 %v7167_v61, 16  ;;  %v8331_v41 = vld [vmem:[#allocation2 + $0x90] sm:$0xff]  }
 0x15c   : > { %v1494_v57 = vrot.slane %v1493_v50, 4  ;;  %v1115_v2 = vshll.u32 %v7167_v61, 16  ;;  %v1095_v4 = vshrl.u32 %v7165_v53, 16  ;;  %v1098_v5 = vshll.u32 %v7165_v53, 16  ;;  %v8329_v7 = vld [vmem:[#allocation2 + $0x84] sm:$0xff]  }
 0x15d   : > { %v1489_v8 = vsel %vm8694_vm8, %v1484_v58, %v1488_v42  ;;  %v7168_v12 = vpack.c.bf16 %v787_v54, %v787_v54  ;;  %v7166_v14 = vpack.c.bf16 %v785_v60, %v785_v60  ;;  %v1114_v17 = vrot.slane %v1112_v0, 7  ;;  %7764 = vmatprep.mubr.msk.bf16.mxu1 %vm1828_vm9, %v8329_v7  ;;  %v8974_v47 = vld [vmem:[#allocation2 + $0x4c] sm:$0xf]  ;;  %v1367_v52 = vld [vmem:[#allocation2 + $0x50] sm:$0x1] }
 0x15e   : > { %v1499_v59 = vsel %vm8694_vm8, %v1494_v57, %v1498_v44  ;;  %v1097_v18 = vrot.slane %v1095_v4, 7  ;;  %v1506_v20 = vrot.slane %v1504_v56, 5  ;;  %7765 = vmatmul.mubr.msk.bf16.gmra.mrb[12].mxu1 %vm1828_vm9, %v8331_v41  ;;  %v1510_v33 = vshll.u32 %v8961_v19, 16 }
 0x15f   : > { %v6733_v15 = vcombine.low %v1489_v8, %v1499_v59  ;;  %v1120_v1 = vshrl.u32 %v7168_v12, 16  ;;  %v1123_v9 = vshll.u32 %v7168_v12, 16  ;;  %v1103_v16 = vshrl.u32 %v7166_v14, 16  ;;  %v8996_v8 = vld [vmem:[#allocation2 + $0x54] sm:$0xf] }
 0x160   : > { %v1106_v22 = vshll.u32 %v7166_v14, 16  ;;  %v1117_v24 = vor.u32 %v1115_v2, %v1114_v17  ;;  %v1118_v26 = vrot.slane %v1114_v17, 4  ;;  %v1100_v27 = vor.u32 %v1098_v5, %v1097_v18  ;;  %v8379_v5 = vld [vmem:[%s10506_s4] ss:$0 sm:$0xff] }
 0x161   : > { %7644 = vmatprep.mubr.msk.bf16.mxu0 %vm1828_vm9, %v6733_v15  ;;  %v1101_v28 = vrot.slane %v1097_v18, 4  ;;  %v1122_v30 = vrot.slane %v1120_v1, 7  ;;  %v1105_v31 = vrot.slane %v1103_v16, 7  ;;  %v1507_v32 = vor.u32 %v1506_v20, %v1503_v63  ;;  %v9002_v18 = vld [vmem:[%s10504_s2 + $0x20] sm:$0xff]  }
 0x162   : > { %v1305_v34 = vsel %vm8750_vm11, %v1117_v24, %v1304_v13  ;;  %v1298_v6 = vsel %vm8750_vm11, %v1100_v27, %v1297_v11  ;;  %v1514_v37 = vshrl.u32 %v8961_v19, 16  ;;  %v1520_v38 = vshll.u32 %v1366_v21, 16  ;;  %7704 = vmatprep.subr.bf16.mxu0 %v9002_v18 }
 0x163   : > { %1306 = vst [vmem:[#allocation2 + $0xa8] sm:$0xf] %v1305_v34  ;;  %1299 = vst [vmem:[#allocation2 + $0x9c] sm:$0xf] %v1298_v6  ;;  %v1125_v39 = vor.u32 %v1123_v9, %v1122_v30  ;;  %v1127_v42 = vrot.slane %v1122_v30, 4  ;;  %v1108_v43 = vor.u32 %v1106_v22, %v1105_v31  ;;  %v1110_v44 = vrot.slane %v1105_v31, 4 }
 0x164   : > { %v1508_v48 = vrot.slane %v1507_v32, 4  ;;  %v1512_v49 = vrot.slane %v1510_v33, 5  ;;  %v1516_v50 = vrot.slane %v1514_v37, 4  ;;  %v1522_v55 = vrot.slane %v1520_v38, 5  ;;  %v1318_v38 = vld [vmem:[#allocation2 + $0xc0] sm:$0xf] }
 0x165   : > { %v1126_v61 = vsel %vm8757_vm12, %v1118_v26, %v1125_v39  ;;  %v1309_v53 = vsel %vm8611_vm2, %v1127_v42, %v1308_v35  ;;  %v1109_v54 = vsel %vm8757_vm12, %v1101_v28, %v1108_v43  ;;  %v1302_v56 = vsel %vm8611_vm2, %v1110_v44, %v1301_v36 }
 0x166   : > { %1307 = vst.msk [vmem:[#allocation2 + $0xac] sm:$0xf] %vm278_vm5, %v1126_v61  ;;  %1310 = vst [vmem:[#allocation2 + $0xb0] sm:$0x1] %v1309_v53  ;;  %v1513_v58 = vsel %vm8694_vm8, %v1508_v48, %v1512_v49  ;;  %v1517_v57 = vor.u32 %v1516_v50, %v1512_v49  ;;  %v1525_v60 = vshrl.u32 %v8972_v45, 16  ;;  %v1528_v63 = vshll.u32 %v8972_v45, 16 }
 0x167   : > { %1300 = vst.msk [vmem:[#allocation2 + $0xa0] sm:$0xf] %vm278_vm5, %v1109_v54  ;;  %1303 = vst [vmem:[#allocation2 + $0xa4] sm:$0x1] %v1302_v56  ;;  %v1534_v0 = vshll.u32 %v8974_v47, 16  ;;  %v1538_v2 = vshrl.u32 %v8974_v47, 16  ;;  %v754_v7 = vadd.f32 %v8379_v5, %v8888_v46  ;;  %v746_v12 = vadd.f32 %v8379_v5, %v8893_v51 }
 0x168   : > { %v1544_v4 = vshll.u32 %v1367_v52, 16  ;;  %v1518_v59 = vrot.slane %v1517_v57, 4  ;;  %v1527_v13 = vrot.slane %v1525_v60, 4  ;;  %v1530_v11 = vrot.slane %v1528_v63, 5  ;;  %v1311_v53 = vld [vmem:[#allocation2 + $0xb4] sm:$0xf] }
 0x169   : > { %v1536_v14 = vrot.slane %v1534_v0, 5  ;;  %v1540_v41 = vrot.slane %v1538_v2, 4  ;;  %v790_v17 = vmax.f32 %v754_v7, 0.0  ;;  %v788_v1 = vmax.f32 %v746_v12, 0.0  ;;  %v1322_v63 = vld [vmem:[#allocation2 + $0xc8] sm:$0x1] }
 0x16a   : > { %v1546_v15 = vrot.slane %v1544_v4, 5  ;;  %v1523_v20 = vsel %vm8694_vm8, %v1518_v59, %v1522_v55  ;;  %v1531_v46 = vor.u32 %v1530_v11, %v1527_v13  ;;  %v757_v9 = vadd.f32 %v8379_v5, %v8904_v62  ;;  %v9015_v55 = vld [vmem:[#allocation2 + $0x58] sm:$0xf] }
 0x16b   : > { %v6734_v16 = vcombine.low %v1513_v58, %v1523_v20  ;;  %v1541_v22 = vor.u32 %v1540_v41, %v1536_v14  ;;  %v7171_v21 = vpack.c.bf16 %v790_v17, %v790_v17  ;;  %v749_v51 = vadd.f32 %v8379_v5, %v8911_v3  ;;  %v1368_v5 = vld [vmem:[#allocation2 + $0x5c] sm:$0x1] }
 0x16c   : > { %v1532_v24 = vrot.slane %v1531_v46, 4  ;;  %v7169_v26 = vpack.c.bf16 %v788_v1, %v788_v1  ;;  %v791_v27 = vmax.f32 %v757_v9, 0.0  ;;  %v1549_v28 = vshrl.u32 %v8996_v8, 16  ;;  %v9029_v9 = vld [vmem:[#allocation2 + $0x64] sm:$0xf] }
 0x16d   : > { %7645 = vmatmul.mubr.msk.bf16.gmra.mrb[40].mxu0 %vm1828_vm9, %v6734_v16  ;;  %v1542_v30 = vrot.slane %v1541_v22, 4  ;;  %v1146_v31 = vshrl.u32 %v7171_v21, 16  ;;  %v1149_v32 = vshll.u32 %v7171_v21, 16  ;;  %v789_v33 = vmax.f32 %v749_v51, 0.0  ;;  %v8333_v43 = vld [vmem:[#allocation2 + $0xa8] sm:$0xff]  }
 0x16e   : > { %v1537_v62 = vsel %vm8694_vm8, %v1532_v24, %v1536_v14  ;;  %v1129_v34 = vshrl.u32 %v7169_v26, 16  ;;  %v1132_v6 = vshll.u32 %v7169_v26, 16  ;;  %v7172_v35 = vpack.c.bf16 %v791_v27, %v791_v27  ;;  %v8332_v3 = vld [vmem:[#allocation2 + $0x9c] sm:$0xff]   ;;  %v1369_v51 = vld [vmem:[#allocation2 + $0x68] sm:$0x1] }
 0x16f   : > { %v1547_v36 = vsel %vm8694_vm8, %v1542_v30, %v1546_v15  ;;  %v1148_v37 = vrot.slane %v1146_v31, 7  ;;  %v7170_v39 = vpack.c.bf16 %v789_v33, %v789_v33  ;;  %v1551_v42 = vrot.slane %v1549_v28, 4  ;;  %7768 = vmatprep.mubr.msk.bf16.mxu1 %vm1828_vm9, %v8332_v3  ;;  %v1315_v14 = vld [vmem:[#allocation2 + $0xbc] sm:$0x1]  ;;  %v9027_v15 = vld [vmem:[#allocation2 + $0x60] sm:$0xf] }
 0x170   : > { %v6735_v44 = vcombine.low %v1537_v62, %v1547_v36  ;;  %v1131_v48 = vrot.slane %v1129_v34, 7  ;;  %v1154_v49 = vshrl.u32 %v7172_v35, 16  ;;  %v1157_v50 = vshll.u32 %v7172_v35, 16  ;;  %7769 = vmatmul.mubr.msk.bf16.gmra.mrb[16].mxu1 %vm1828_vm9, %v8333_v43  ;;  %v9041_v30 = vld [vmem:[#allocation2 + $0x6c] sm:$0xf] }
 0x171   : > { %v1151_v52 = vor.u32 %v1149_v32, %v1148_v37  ;;  %v1152_v61 = vrot.slane %v1148_v37, 4  ;;  %v1137_v54 = vshrl.u32 %v7170_v39, 16  ;;  %v1140_v56 = vshll.u32 %v7170_v39, 16  ;;  %v9046_v34 = vld [vmem:[#allocation2 + $0x70] sm:$0xf] }
 0x172   : > { %7648 = vmatprep.mubr.msk.bf16.mxu0 %vm1828_vm9, %v6735_v44  ;;  %v1134_v58 = vor.u32 %v1132_v6, %v1131_v48  ;;  %v1135_v57 = vrot.slane %v1131_v48, 4  ;;  %v1156_v60 = vrot.slane %v1154_v49, 7  ;;  %v1552_v0 = vshll.u32 %v8996_v8, 16  ;;  %v1370_v36 = vld [vmem:[#allocation2 + $0x74] sm:$0x1] }
 0x173   : > { %v1319_v2 = vsel %vm8750_vm11, %v1151_v52, %v1318_v38  ;;  %v1139_v4 = vrot.slane %v1137_v54, 7  ;;  %v1558_v7 = vshll.u32 %v9015_v55, 16  ;;  %v1562_v59 = vshrl.u32 %v9015_v55, 16  ;;  %v9049_v37 = vld [vmem:[#allocation2 + $0x78] sm:$0xf] }
 0x174   : > { %1320 = vst [vmem:[#allocation2 + $0xc0] sm:$0xf] %v1319_v2  ;;  %v1312_v13 = vsel %vm8750_vm11, %v1134_v58, %v1311_v53  ;;  %v1159_v11 = vor.u32 %v1157_v50, %v1156_v60  ;;  %v1161_v12 = vrot.slane %v1156_v60, 4  ;;  %v1554_v41 = vrot.slane %v1552_v0, 5  ;;  %v1371_v0 = vld [vmem:[#allocation2 + $0x80] sm:$0x1] }
 0x175   : > { %1313 = vst [vmem:[#allocation2 + $0xb4] sm:$0xf] %v1312_v13  ;;  %v1142_v17 = vor.u32 %v1140_v56, %v1139_v4  ;;  %v1144_v20 = vrot.slane %v1139_v4, 4  ;;  %v1560_v46 = vrot.slane %v1558_v7, 5  ;;  %v1564_v1 = vrot.slane %v1562_v59, 4 }
 0x176   : > { %v1160_v16 = vsel %vm8757_vm12, %v1152_v61, %v1159_v11  ;;  %v1323_v23 = vsel %vm8611_vm2, %v1161_v12, %v1322_v63  ;;  %v1555_v22 = vor.u32 %v1554_v41, %v1551_v42  ;;  %v1568_v21 = vshll.u32 %v1368_v5, 16  ;;  %v9058_v56 = vld [vmem:[#allocation2 + $0x7c] sm:$0xf] }
 0x177   : > { %1321 = vst.msk [vmem:[#allocation2 + $0xc4] sm:$0xf] %vm278_vm5, %v1160_v16  ;;  %1324 = vst [vmem:[#allocation2 + $0xc8] sm:$0x1] %v1323_v23  ;;  %v1143_v24 = vsel %vm8757_vm12, %v1135_v57, %v1142_v17  ;;  %v1316_v26 = vsel %vm8611_vm2, %v1144_v20, %v1315_v14  ;;  %v1565_v27 = vor.u32 %v1564_v1, %v1560_v46  ;;  %v1573_v28 = vshrl.u32 %v9027_v15, 16 }
 0x178   : > { %1314 = vst.msk [vmem:[#allocation2 + $0xb8] sm:$0xf] %vm278_vm5, %v1143_v24  ;;  %1317 = vst [vmem:[#allocation2 + $0xbc] sm:$0x1] %v1316_v26  ;;  %v1556_v31 = vrot.slane %v1555_v22, 4  ;;  %v1570_v32 = vrot.slane %v1568_v21, 5 }
 0x179   : > { %v1576_v33 = vshll.u32 %v9027_v15, 16  ;;  %v1582_v62 = vshll.u32 %v9029_v9, 16  ;;  %v1566_v40 = vrot.slane %v1565_v27, 4  ;;  %v1575_v6 = vrot.slane %v1573_v28, 4  ;;  %v9067_v1 = vld [vmem:[#allocation2 + $0x84] sm:$0xf] }
 0x17a   : > { %v1586_v35 = vshrl.u32 %v9029_v9, 16  ;;  %v1592_v3 = vshll.u32 %v1369_v51, 16  ;;  %v1561_v38 = vsel %vm8694_vm8, %v1556_v31, %v1560_v46  ;;  %v1597_v43 = vshrl.u32 %v9041_v30, 16  ;;  %v9072_v24 = vld [vmem:[#allocation2 + $0x88] sm:$0xf] }
 0x17b   : > { %v1578_v39 = vrot.slane %v1576_v33, 5  ;;  %v1584_v42 = vrot.slane %v1582_v62, 5  ;;  %v1571_v44 = vsel %vm8694_vm8, %v1566_v40, %v1570_v32  ;;  %v1600_v50 = vshll.u32 %v9041_v30, 16  ;;  %v1372_v40 = vld [vmem:[#allocation2 + $0x8c] sm:$0x1] }
 0x17c   : > { %v1588_v48 = vrot.slane %v1586_v35, 4  ;;  %v1594_v49 = vrot.slane %v1592_v3, 5  ;;  %v6736_v52 = vcombine.low %v1561_v38, %v1571_v44  ;;  %v1599_v53 = vrot.slane %v1597_v43, 4 }
 0x17d   : > { %v1579_v61 = vor.u32 %v1578_v39, %v1575_v6  ;;  %v1606_v54 = vshll.u32 %v9046_v34, 16  ;;  %v1602_v57 = vrot.slane %v1600_v50, 5  ;;  %v1610_v60 = vshrl.u32 %v9046_v34, 16  ;;  %v9082_v39 = vld [vmem:[#allocation2 + $0x90] sm:$0xf] }
 0x17e   : > { %v1589_v58 = vor.u32 %v1588_v48, %v1584_v42  ;;  %v1616_v63 = vshll.u32 %v1370_v36, 16  ;;  %7649 = vmatmul.mubr.msk.bf16.gmra.mrb[44].mxu0 %vm1828_vm9, %v6736_v52  ;;  %v1621_v5 = vshrl.u32 %v9049_v37, 16  ;;  %v1624_v7 = vshll.u32 %v9049_v37, 16  ;;  %v8335_v16 = vld [vmem:[#allocation2 + $0xc0] sm:$0xff]  }
 0x17f   : > { %v1580_v2 = vrot.slane %v1579_v61, 4  ;;  %v1608_v4 = vrot.slane %v1606_v54, 5  ;;  %v1603_v13 = vor.u32 %v1602_v57, %v1599_v53  ;;  %v1612_v11 = vrot.slane %v1610_v60, 4  ;;  %v8334_v14 = vld [vmem:[#allocation2 + $0xb4] sm:$0xff]  }
 0x180   : > { %v1590_v59 = vrot.slane %v1589_v58, 4  ;;  %v1618_v12 = vrot.slane %v1616_v63, 5  ;;  %v1623_v17 = vrot.slane %v1621_v5, 4  ;;  %v1626_v20 = vrot.slane %v1624_v7, 5  ;;  %7772 = vmatprep.mubr.msk.bf16.mxu1 %vm1828_vm9, %v8334_v14  ;;  %v1373_v60 = vld [vmem:[#allocation2 + $0x98] sm:$0x1] }
 0x181   : > { %v1585_v41 = vsel %vm8694_vm8, %v1580_v2, %v1584_v42  ;;  %v1630_v46 = vshll.u32 %v9058_v56, 16  ;;  %v1604_v22 = vrot.slane %v1603_v13, 4  ;;  %v1613_v21 = vor.u32 %v1612_v11, %v1608_v4  ;;  %7773 = vmatmul.mubr.msk.bf16.gmra.mrb[20].mxu1 %vm1828_vm9, %v8335_v16  ;;  %v9096_v7 = vld [vmem:[#allocation2 + $0x9c] sm:$0xf]  ;;  %v9100_v14 = vld [vmem:[#allocation2 + $0xa0] sm:$0xf] }
 0x182   : > { %v1595_v23 = vsel %vm8694_vm8, %v1590_v59, %v1594_v49  ;;  %v1634_v51 = vshrl.u32 %v9058_v56, 16  ;;  %v1627_v27 = vor.u32 %v1626_v20, %v1623_v17  ;;  %v1640_v31 = vshll.u32 %v1371_v0, 16  ;;  %v9087_v49 = vld [vmem:[#allocation2 + $0x94] sm:$0xf]  ;;  %v9102_v16 = vld [vmem:[#allocation2 + $0xa8] sm:$0xf] }
 0x183   : > { %v6737_v26 = vcombine.low %v1585_v41, %v1595_v23  ;;  %v1632_v28 = vrot.slane %v1630_v46, 5  ;;  %v1609_v32 = vsel %vm8694_vm8, %v1604_v22, %v1608_v4  ;;  %v1614_v33 = vrot.slane %v1613_v21, 4 }
 0x184   : > { %v1636_v62 = vrot.slane %v1634_v51, 4  ;;  %v1645_v6 = vshrl.u32 %v9067_v1, 16  ;;  %v1628_v35 = vrot.slane %v1627_v27, 4  ;;  %v1642_v3 = vrot.slane %v1640_v31, 5  ;;  %v1374_v51 = vld [vmem:[#allocation2 + $0xa4] sm:$0x1] }
 0x185   : > { %7652 = vmatprep.mubr.msk.bf16.mxu0 %vm1828_vm9, %v6737_v26  ;;  %v1648_v36 = vshll.u32 %v9067_v1, 16  ;;  %v1654_v38 = vshll.u32 %v9072_v24, 16  ;;  %v1619_v42 = vsel %vm8694_vm8, %v1614_v33, %v1618_v12  ;;  %v1658_v48 = vshrl.u32 %v9072_v24, 16  ;;  %v9110_v33 = vld [vmem:[#allocation2 + $0xac] sm:$0xf] }
 0x186   : > { %v1637_v43 = vor.u32 %v1636_v62, %v1632_v28  ;;  %v1647_v44 = vrot.slane %v1645_v6, 4  ;;  %v6738_v50 = vcombine.low %v1609_v32, %v1619_v42  ;;  %v1633_v52 = vsel %vm8694_vm8, %v1628_v35, %v1632_v28 }
 0x187   : > { %v1650_v61 = vrot.slane %v1648_v36, 5  ;;  %v1656_v53 = vrot.slane %v1654_v38, 5  ;;  %v1660_v58 = vrot.slane %v1658_v48, 4  ;;  %v1664_v57 = vshll.u32 %v1372_v40, 16 }
 0x188   : > { %v1638_v54 = vrot.slane %v1637_v43, 4  ;;  %v1669_v63 = vshrl.u32 %v9082_v39, 16  ;;  %7653 = vmatmul.mubr.msk.bf16.gmra.mrb[48].mxu0 %vm1828_vm9, %v6738_v50  ;;  %v1672_v2 = vshll.u32 %v9082_v39, 16  ;;  %v1678_v4 = vshll.u32 %v9087_v49, 16  ;;  %v3176_v43 = vld [vmem:[#allocation2 + $0xc] sm:$0xf] }
 0x189   : > { %v1651_v0 = vor.u32 %v1650_v61, %v1647_v44  ;;  %v1682_v5 = vshrl.u32 %v9087_v49, 16  ;;  %v1661_v13 = vor.u32 %v1660_v58, %v1656_v53  ;;  %v1666_v11 = vrot.slane %v1664_v57, 5 }
 0x18a   : > { %v1643_v59 = vsel %vm8694_vm8, %v1638_v54, %v1642_v3  ;;  %v1671_v12 = vrot.slane %v1669_v63, 4  ;;  %v1674_v20 = vrot.slane %v1672_v2, 5  ;;  %v1680_v46 = vrot.slane %v1678_v4, 5  ;;  %v1375_v54 = vld [vmem:[#allocation2 + $0xb0] sm:$0x1] }
 0x18b   : > { %v6739_v41 = vcombine.low %v1633_v52, %v1643_v59  ;;  %v1652_v17 = vrot.slane %v1651_v0, 4  ;;  %v1662_v23 = vrot.slane %v1661_v13, 4  ;;  %v1684_v22 = vrot.slane %v1682_v5, 4  ;;  %v9123_v4 = vld [vmem:[#allocation2 + $0x10] sm:$0xf] }
 0x18c   : > { %v1688_v21 = vshll.u32 %v1373_v60, 16  ;;  %v1693_v26 = vshrl.u32 %v9096_v7, 16  ;;  %v1675_v28 = vor.u32 %v1674_v20, %v1671_v12  ;;  %v1696_v31 = vshll.u32 %v9096_v7, 16  ;;  %v9126_v20 = vld [vmem:[#allocation2 + $0x14] sm:$0x1] }
 0x18d   : > { %7656 = vmatprep.mubr.msk.bf16.mxu0 %vm1828_vm9, %v6739_v41  ;;  %v1657_v27 = vsel %vm8694_vm8, %v1652_v17, %v1656_v53  ;;  %v1702_v32 = vshll.u32 %v9100_v14, 16  ;;  %v1667_v62 = vsel %vm8694_vm8, %v1662_v23, %v1666_v11  ;;  %v1685_v40 = vor.u32 %v1684_v22, %v1680_v46 }
 0x18e   : > { %v1690_v6 = vrot.slane %v1688_v21, 5  ;;  %v1695_v35 = vrot.slane %v1693_v26, 4  ;;  %v6740_v3 = vcombine.low %v1657_v27, %v1667_v62  ;;  %v1676_v36 = vrot.slane %v1675_v28, 4  ;;  %v9132_v26 = vld [vmem:[#allocation2 + $0xb4] sm:$0xf] }
 0x18f   : > { %v1698_v38 = vrot.slane %v1696_v31, 5  ;;  %v1704_v42 = vrot.slane %v1702_v32, 5  ;;  %v1686_v44 = vrot.slane %v1685_v40, 4  ;;  %v1706_v48 = vshrl.u32 %v9100_v14, 16  ;;  %v9134_v62 = vld [vmem:[#allocation2 + $0xb8] sm:$0xf] }
 0x190   : > { %v1712_v50 = vshll.u32 %v1374_v51, 16  ;;  %v1717_v52 = vshrl.u32 %v9102_v16, 16  ;;  %7657 = vmatmul.mubr.msk.bf16.gmra.mrb[52].mxu0 %vm1828_vm9, %v6740_v3  ;;  %v1681_v61 = vsel %vm8694_vm8, %v1676_v36, %v1680_v46  ;;  %v1720_v58 = vshll.u32 %v9102_v16, 16  ;;  %v3179_v36 = vld [vmem:[#allocation2 + $0x18] sm:$0xf] }
 0x191   : > { %v1699_v53 = vor.u32 %v1698_v38, %v1695_v35  ;;  %v1726_v57 = vshll.u32 %v9110_v33, 16  ;;  %v1691_v60 = vsel %vm8694_vm8, %v1686_v44, %v1690_v6  ;;  %v1708_v63 = vrot.slane %v1706_v48, 4 }
 0x192   : > { %v1714_v0 = vrot.slane %v1712_v50, 5  ;;  %v1719_v2 = vrot.slane %v1717_v52, 4  ;;  %v6741_v5 = vcombine.low %v1681_v61, %v1691_v60  ;;  %v1722_v13 = vrot.slane %v1720_v58, 5 }
 0x193   : > { %v1700_v59 = vrot.slane %v1699_v53, 4  ;;  %v1728_v11 = vrot.slane %v1726_v57, 5  ;;  %v1709_v12 = vor.u32 %v1708_v63, %v1704_v42  ;;  %v1730_v41 = vshrl.u32 %v9110_v33, 16  ;;  %v1376_v53 = vld [vmem:[#allocation2 + $0xbc] sm:$0x1] }
 0x194   : > { %v1736_v17 = vshll.u32 %v1375_v54, 16  ;;  %v3225_v46 = vshrl.u32 %v3176_v43, 16  ;;  %7660 = vmatprep.mubr.msk.bf16.mxu0 %vm1828_vm9, %v6741_v5  ;;  %v1723_v22 = vor.u32 %v1722_v13, %v1719_v2  ;;  %v3228_v21 = vshll.u32 %v3176_v43, 16  ;;  %v9144_v63 = vld [vmem:[#allocation2 + $0x1c] sm:$0xf] }
 0x195   : > { %v1705_v23 = vsel %vm8694_vm8, %v1700_v59, %v1704_v42  ;;  %v3234_v51 = vshll.u32 %v9123_v4, 16  ;;  %v1710_v27 = vrot.slane %v1709_v12, 4  ;;  %v1732_v28 = vrot.slane %v1730_v41, 4  ;;  %v9151_v41 = vld [vmem:[#allocation2 + $0x20] sm:$0x1] }
 0x196   : > { %v1738_v31 = vrot.slane %v1736_v17, 5  ;;  %v3227_v32 = vrot.slane %v3225_v46, 4  ;;  %v1724_v40 = vrot.slane %v1723_v22, 4  ;;  %v3230_v6 = vrot.slane %v3228_v21, 5 }
 0x197   : > { %v3236_v35 = vrot.slane %v3234_v51, 5  ;;  %v3238_v3 = vshrl.u32 %v9123_v4, 16  ;;  %v1715_v38 = vsel %vm8694_vm8, %v1710_v27, %v1714_v0  ;;  %v1733_v42 = vor.u32 %v1732_v28, %v1728_v11  ;;  %v3182_v51 = vld [vmem:[#allocation2 + $0x24] sm:$0xf] }
 0x198   : > { %v3244_v43 = vshll.u32 %v9126_v20, 16  ;;  %v1741_v44 = vshrl.u32 %v9132_v26, 16  ;;  %v6742_v48 = vcombine.low %v1705_v23, %v1715_v38  ;;  %v1729_v50 = vsel %vm8694_vm8, %v1724_v40, %v1728_v11 }
 0x199   : > { %v3231_v52 = vor.u32 %v3230_v6, %v3227_v32  ;;  %v3240_v61 = vrot.slane %v3238_v3, 4  ;;  %v1734_v54 = vrot.slane %v1733_v42, 4  ;;  %v1744_v60 = vshll.u32 %v9132_v26, 16  ;;  %v9155_v6 = vld [vmem:[#allocation2 + $0x28] sm:$0xf] }
 0x19a   : > { %v3246_v58 = vrot.slane %v3244_v43, 5  ;;  %v1743_v57 = vrot.slane %v1741_v44, 4  ;;  %7661 = vmatmul.mubr.msk.bf16.gmra.mrb[56].mxu0 %vm1828_vm9, %v6742_v48  ;;  %v1750_v5 = vshll.u32 %v9134_v62, 16  ;;  %v1754_v59 = vshrl.u32 %v9134_v62, 16 }
 0x19b   : > { %v3232_v0 = vrot.slane %v3231_v52, 4  ;;  %v3241_v2 = vor.u32 %v3240_v61, %v3236_v35  ;;  %v1739_v13 = vsel %vm8694_vm8, %v1734_v54, %v1738_v31  ;;  %v1746_v11 = vrot.slane %v1744_v60, 5 }
 0x19c   : > { %v1760_v12 = vshll.u32 %v1376_v53, 16  ;;  %v3249_v17 = vshrl.u32 %v3179_v36, 16  ;;  %v6743_v46 = vcombine.low %v1729_v50, %v1739_v13  ;;  %v1752_v21 = vrot.slane %v1750_v5, 5  ;;  %v9163_v53 = vld [vmem:[#allocation2 + $0x2c] sm:$0x1] }
 0x19d   : > { %v3237_v23 = vsel %vm8694_vm8, %v3232_v0, %v3236_v35  ;;  %v3242_v22 = vrot.slane %v3241_v2, 4  ;;  %v1747_v27 = vor.u32 %v1746_v11, %v1743_v57  ;;  %v1756_v28 = vrot.slane %v1754_v59, 4  ;;  %v3185_v0 = vld [vmem:[#allocation2 + $0x30] sm:$0xf] }
 0x19e   : > { %v1762_v32 = vrot.slane %v1760_v12, 5  ;;  %v3251_v40 = vrot.slane %v3249_v17, 4  ;;  %7664 = vmatprep.mubr.msk.bf16.mxu0 %vm1828_vm9, %v6743_v46  ;;  %v3252_v3 = vshll.u32 %v3179_v36, 16  ;;  %v3258_v38 = vshll.u32 %v9144_v63, 16 }
 0x19f   : > { %v3247_v31 = vsel %vm8694_vm8, %v3242_v22, %v3246_v58  ;;  %v3262_v42 = vshrl.u32 %v9144_v63, 16  ;;  %v1748_v43 = vrot.slane %v1747_v27, 4  ;;  %v1757_v44 = vor.u32 %v1756_v28, %v1752_v21  ;;  %v9175_v28 = vld [vmem:[#allocation2 + $0x38] sm:$0x1] }
 0x1a0   : > { %v6881_v35 = vcombine.low %v3237_v23, %v3247_v31  ;;  %v3268_v48 = vshll.u32 %v9151_v41, 16  ;;  %v3254_v50 = vrot.slane %v3252_v3, 5  ;;  %v3260_v52 = vrot.slane %v3258_v38, 5  ;;  %v9173_v23 = vld [vmem:[#allocation2 + $0x34] sm:$0xf] }
 0x1a1   : > { %v3264_v61 = vrot.slane %v3262_v42, 4  ;;  %v3273_v54 = vshrl.u32 %v3182_v51, 16  ;;  %v1753_v36 = vsel %vm8694_vm8, %v1748_v43, %v1752_v21  ;;  %v1758_v58 = vrot.slane %v1757_v44, 4  ;;  %v8380_v38 = vld [vmem:[#allocation2] sm:$0xf] }
 0x1a2   : > { %7780 = vmatprep.mubr.msk.bf16.mxu1 %vm1828_vm9, %v6881_v35  ;;  %v3270_v57 = vrot.slane %v3268_v48, 5  ;;  %v3276_v60 = vshll.u32 %v3182_v51, 16  ;;  %v3255_v2 = vor.u32 %v3254_v50, %v3251_v40  ;;  %v3282_v13 = vshll.u32 %v9155_v6, 16  ;;  %v9177_v42 = vld [vmem:[#allocation2 + $0x4] sm:$0xf] }
 0x1a3   : > { %v3265_v5 = vor.u32 %v3264_v61, %v3260_v52  ;;  %v3275_v59 = vrot.slane %v3273_v54, 4  ;;  %v1763_v11 = vsel %vm8694_vm8, %v1758_v58, %v1762_v32  ;;  %v3286_v17 = vshrl.u32 %v9155_v6, 16  ;;  %v8382_v44 = vld [vmem:[#allocation2 + $0xc] sm:$0xf]  ;;  %v9185_v48 = vld [vmem:[#allocation2 + $0x10] sm:$0xf] }
 0x1a4   : > { %v3278_v12 = vrot.slane %v3276_v60, 5  ;;  %v3292_v46 = vshll.u32 %v9163_v53, 16  ;;  %v6744_v22 = vcombine.low %v1753_v36, %v1763_v11  ;;  %v3256_v21 = vrot.slane %v3255_v2, 4  ;;  %v3188_v2 = vld [vmem:[#allocation2 + $0x3c] sm:$0xf] }
 0x1a5   : > { %v3266_v27 = vrot.slane %v3265_v5, 4  ;;  %v3284_v51 = vrot.slane %v3282_v13, 5  ;;  %v3288_v31 = vrot.slane %v3286_v17, 4  ;;  %v6763_v32 = vcombine.low %v8380_v38, %v9177_v42  ;;  %v9195_v11 = vld [vmem:[#allocation2 + $0x40] sm:$0xf] }
 0x1a6   : > { %v3279_v40 = vor.u32 %v3278_v12, %v3275_v59  ;;  %v3294_v3 = vrot.slane %v3292_v46, 5  ;;  %7665 = vmatmul.mubr.msk.bf16.gmra.mrb[60].mxu0 %vm1828_vm9, %v6744_v22  ;;  %v3261_v35 = vsel %vm8694_vm8, %v3256_v21, %v3260_v52  ;;  %v6764_v50 = vcombine.low %v8382_v44, %v9185_v48  ;;  %v8339_v52 = vld [vmem:[%s10504_s2 + $0x58] sm:$0xff]  }
 0x1a7   : > { %v3271_v43 = vsel %vm8694_vm8, %v3266_v27, %v3270_v57  ;;  %v3297_v61 = vshrl.u32 %v3185_v0, 16  ;;  %v3289_v58 = vor.u32 %v3288_v31, %v3284_v51  ;;  %7672 = vmatprep.mubr.msk.bf16.mxu0 %vm1828_vm9, %v6763_v32  ;;  %v3300_v60 = vshll.u32 %v3185_v0, 16  ;;  %v8384_v46 = vld [vmem:[#allocation2 + $0x18] sm:$0xf]  ;;  %v9200_v22 = vld [vmem:[#allocation2 + $0x1c] sm:$0xf] }
 0x1a8   : > { %v6882_v54 = vcombine.low %v3261_v35, %v3271_v43  ;;  %v3280_v36 = vrot.slane %v3279_v40, 4  ;;  %v3306_v57 = vshll.u32 %v9173_v23, 16  ;;  %v3310_v59 = vshrl.u32 %v9173_v23, 16  ;;  %v8386_v27 = vld [vmem:[%s10504_s2 + $0x50] sm:$0xff]   ;;  %v9206_v32 = vld [vmem:[#allocation2 + $0x44] sm:$0x1] }
 0x1a9   : > { %v3299_v5 = vrot.slane %v3297_v61, 4  ;;  %v3316_v13 = vshll.u32 %v9175_v28, 16  ;;  %v3290_v0 = vrot.slane %v3289_v58, 4  ;;  %v3302_v17 = vrot.slane %v3300_v60, 5  ;;  %10546 = vst [vmem:[#allocation8_spill] sm:$0xff] %v9206_v32 }
 0x1aa   : > { %7781 = vmatmul.mubr.msk.bf16.vlgmr.msra.gmra.mrb[24].mxu1 %vm1828_vm9, %v6882_v54  ;;  %v3285_v12 = vsel %vm8694_vm8, %v3280_v36, %v3284_v51  ;;  %v6765_v21 = vcombine.low %v8384_v46, %v9200_v22  ;;  %v3308_v40 = vrot.slane %v3306_v57, 5  ;;  %v3312_v31 = vrot.slane %v3310_v59, 4  ;;  %v3191_v54 = vld [vmem:[#allocation2 + $0x48] sm:$0xf]  ;;  %v9212_v57 = vld [vmem:[#allocation2 + $0x4c] sm:$0xf] }
 0x1ab   : > { %7813 = vmatpush3.bf16.msra.mxu1 %v8386_v27  ;;  %v3318_v38 = vrot.slane %v3316_v13, 5  ;;  %v3321_v35 = vshrl.u32 %v3188_v2, 16  ;;  %v3295_v51 = vsel %vm8694_vm8, %v3290_v0, %v3294_v3  ;;  %v3303_v43 = vor.u32 %v3302_v17, %v3299_v5  ;;  %10547 = vst [vmem:[#allocation9_spill] sm:$0xff] %v9212_v57  ;;  %v9217_v59 = vld [vmem:[%s10504_s2 + $0x60] sm:$0xff]  }
 0x1ac   : > { %v3324_v44 = vshll.u32 %v3188_v2, 16  ;;  %v3330_v61 = vshll.u32 %v9195_v11, 16  ;;  %7814 = vmatprep.subr.bf16.mxu1 %v8339_v52  ;;  %v6883_v36 = vcombine.low %v3285_v12, %v3295_v51  ;;  %v3313_v58 = vor.u32 %v3312_v31, %v3308_v40  ;;  %v8351_v12 = vld [vmem:[%s10504_s2 + $0x28] sm:$0xff]   ;;  %v8387_v27 = vld [vmem:[#allocation2 + $0x24] sm:$0xf] }
 0x1ad   : > { %v3323_v60 = vrot.slane %v3321_v35, 4  ;;  %v3334_v46 = vshrl.u32 %v9195_v11, 16  ;;  %v3304_v13 = vrot.slane %v3303_v43, 4  ;;  %v3340_v2 = vshll.u32 %v9206_v32, 16  ;;  %v9225_v31 = vld [vmem:[#allocation2 + $0x28] sm:$0xf] }
 0x1ae   : > { %v3326_v3 = vrot.slane %v3324_v44, 5  ;;  %v3332_v5 = vrot.slane %v3330_v61, 5  ;;  %7784 = vmatprep.mubr.msk.bf16.mxu1 %vm1828_vm9, %v6883_v36  ;;  %7673 = vmatmul.mubr.msk.bf16.vlgmr.msra.gmra.mrb[32].mxu0 %vm1828_vm9, %v6764_v50  ;;  %v3314_v0 = vrot.slane %v3313_v58, 4  ;;  %v6766_v35 = vcombine.low %v8387_v27, %v9225_v31  ;;  %v3194_v27 = vld [vmem:[#allocation2 + $0x54] sm:$0xf] }
 0x1af   : > { %v3336_v17 = vrot.slane %v3334_v46, 4  ;;  %v3345_v51 = vshrl.u32 %v3191_v54, 16  ;;  %v3309_v43 = vsel %vm8694_vm8, %v3304_v13, %v3308_v40  ;;  %7676 = vmatprep.mubr.msk.bf16.mxu0 %vm1828_vm9, %v6765_v21  ;;  %v3342_v61 = vrot.slane %v3340_v2, 5  ;;  %7815 = vmatpush3.bf16.msra.mxu1 %v8339_v52  ;;  %v8389_v2 = vld [vmem:[#allocation2 + $0x30] sm:$0xf] }
 0x1b0   : > { %v3327_v44 = vor.u32 %v3326_v3, %v3323_v60  ;;  %v3348_v36 = vshll.u32 %v3191_v54, 16  ;;  %v3319_v50 = vsel %vm8694_vm8, %v3314_v0, %v3318_v38  ;;  %v3354_v10 = vshll.u32 %v9212_v57, 16  ;;  %7848 = vmatprep.subr.bf16.mxu1 %v9217_v59  ;;  %7705 = vmatpush3.bf16.msra.mxu0 %v9002_v18  ;;  %v9239_v3 = vld [vmem:[#allocation2 + $0x58] sm:$0xf]  ;;  %v9242_v0 = vld [vmem:[#allocation2 + $0x34] sm:$0xf] }
 0x1b1   : > { %v3337_v58 = vor.u32 %v3336_v17, %v3332_v5  ;;  %v3347_v46 = vrot.slane %v3345_v51, 4  ;;  %v6884_v40 = vcombine.low %v3309_v43, %v3319_v50  ;;  %v3358_v13 = vshrl.u32 %v9212_v57, 16  ;;  %7706 = vmatprep.subr.bf16.mxu0 %v8351_v12  ;;  %10549 = vst [vmem:[#allocation11_spill] sm:$0xff] %v9242_v0  ;;  %v3197_v57 = vld [vmem:[#allocation2 + $0x60] sm:$0xf] }
 0x1b2   : > { %v3328_v21 = vrot.slane %v3327_v44, 4  ;;  %v3350_v60 = vrot.slane %v3348_v36, 5  ;;  %v3356_v54 = vrot.slane %v3354_v10, 5  ;;  %v3364_v38 = vshll.u32 %v9231_v29, 16  ;;  %v9248_v44 = vld [vmem:[#allocation2 + $0x5c] sm:$0x1] }
 0x1b3   : > { %v3338_v52 = vrot.slane %v3337_v58, 4  ;;  %v6767_v17 = vcombine.low %v8389_v2, %v9242_v0  ;;  %7785 = vmatmul.mubr.msk.bf16.gmra.mrb[28].mxu1 %vm1828_vm9, %v6884_v40  ;;  %v3360_v43 = vrot.slane %v3358_v13, 4  ;;  %10550 = vst [vmem:[#allocation12_spill] sm:$0xff] %v9248_v44  ;;  %v3369_v36 = vshrl.u32 %v3194_v27, 16 }
 0x1b4   : > { %v3333_v18 = vsel %vm8694_vm8, %v3328_v21, %v3332_v5  ;;  %v3351_v51 = vor.u32 %v3350_v60, %v3347_v46  ;;  %v3366_v50 = vrot.slane %v3364_v38, 5  ;;  %v3372_v58 = vshll.u32 %v3194_v27, 16  ;;  %7707 = vmatpush3.bf16.msra.mxu0 %v8351_v12  ;;  %v9256_v5 = vld [vmem:[%s10504_s2 + $0x30] sm:$0xff]   ;;  %v9262_v12 = vld [vmem:[#allocation2 + $0x64] sm:$0xf] }
 0x1b5   : > { %v3343_v10 = vsel %vm8694_vm8, %v3338_v52, %v3342_v61  ;;  %v3378_v29 = vshll.u32 %v9239_v3, 16  ;;  %v3361_v40 = vor.u32 %v3360_v43, %v3356_v54  ;;  %v3371_v32 = vrot.slane %v3369_v36, 4  ;;  %7740 = vmatprep.subr.bf16.mxu0 %v9256_v5  ;;  %v8392_v52 = vld [vmem:[#allocation2 + $0x3c] sm:$0xf]  ;;  %v9269_v43 = vld [vmem:[#allocation2 + $0x68] sm:$0x1] }
 0x1b6   : > { %v6885_v2 = vcombine.low %v3333_v18, %v3343_v10  ;;  %v3352_v0 = vrot.slane %v3351_v51, 4  ;;  %7677 = vmatmul.mubr.msk.bf16.gmra.mrb[36].mxu0 %vm1828_vm9, %v6766_v35  ;;  %v3374_v61 = vrot.slane %v3372_v58, 5  ;;  %v3382_v27 = vshrl.u32 %v9239_v3, 16 }
 0x1b7   : > { %v3380_v46 = vrot.slane %v3378_v29, 5  ;;  %v3388_v21 = vshll.u32 %v9248_v44, 16  ;;  %v3362_v13 = vrot.slane %v3361_v40, 4  ;;  %7680 = vmatprep.mubr.msk.bf16.mxu0 %vm1828_vm9, %v6767_v17  ;;  %v6768_v38 = vcombine.low %v8392_v52, %v8961_v19  ;;  %v9275_v52 = vld [vmem:[#allocation2 + $0x70] sm:$0xf] }
 0x1b8   : > { %7788 = vmatprep.mubr.msk.bf16.mxu1 %vm1828_vm9, %v6885_v2  ;;  %v3357_v60 = vsel %vm8694_vm8, %v3352_v0, %v3356_v54  ;;  %v3393_v35 = vshrl.u32 %v3197_v57, 16  ;;  %v3375_v18 = vor.u32 %v3374_v61, %v3371_v32  ;;  %v3384_v29 = vrot.slane %v3382_v27, 4  ;;  %v3200_v0 = vld [vmem:[#allocation2 + $0x6c] sm:$0xf] }
 0x1b9   : > { %v3390_v51 = vrot.slane %v3388_v21, 5  ;;  %v3396_v36 = vshll.u32 %v3197_v57, 16  ;;  %v3367_v10 = vsel %vm8694_vm8, %v3362_v13, %v3366_v50  ;;  %v3402_v2 = vshll.u32 %v9262_v12, 16 }
 0x1ba   : > { %v3395_v58 = vrot.slane %v3393_v35, 4  ;;  %v3406_v54 = vshrl.u32 %v9262_v12, 16  ;;  %v6886_v17 = vcombine.low %v3357_v60, %v3367_v10  ;;  %v3376_v40 = vrot.slane %v3375_v18, 4 }
 0x1bb   : > { %v3385_v44 = vor.u32 %v3384_v29, %v3380_v46  ;;  %v3398_v19 = vrot.slane %v3396_v36, 5  ;;  %v3404_v32 = vrot.slane %v3402_v2, 5  ;;  %v3412_v27 = vshll.u32 %v9269_v43, 16  ;;  %v9283_v29 = vld [vmem:[#allocation2 + $0x74] sm:$0x1] }
 0x1bc   : > { %v3408_v61 = vrot.slane %v3406_v54, 4  ;;  %v6769_v57 = vcombine.low %v8972_v45, %v8974_v47  ;;  %7789 = vmatmul.mubr.msk.bf16.gmra.mrb[0].mxu1 %vm1828_vm9, %v6886_v17  ;;  %v3381_v50 = vsel %vm8694_vm8, %v3376_v40, %v3380_v46  ;;  %v3417_v60 = vshrl.u32 %v3200_v0, 16  ;;  %v3203_v46 = vld [vmem:[#allocation2 + $0x78] sm:$0xf] }
 0x1bd   : > { %v3386_v21 = vrot.slane %v3385_v44, 4  ;;  %v3399_v13 = vor.u32 %v3398_v19, %v3395_v58  ;;  %v3414_v18 = vrot.slane %v3412_v27, 5  ;;  %v3420_v36 = vshll.u32 %v3200_v0, 16  ;;  %v9291_v19 = vld [vmem:[#allocation2 + $0x7c] sm:$0xf] }
 0x1be   : > { %v3409_v35 = vor.u32 %v3408_v61, %v3404_v32  ;;  %v3426_v10 = vshll.u32 %v9275_v52, 16  ;;  %7681 = vmatmul.mubr.msk.bf16.gmra.mrb[40].mxu0 %vm1828_vm9, %v6768_v38  ;;  %v3419_v47 = vrot.slane %v3417_v60, 4  ;;  %v3430_v54 = vshrl.u32 %v9275_v52, 16 }
 0x1bf   : > { %v3391_v2 = vsel %vm8694_vm8, %v3386_v21, %v3390_v51  ;;  %v3400_v45 = vrot.slane %v3399_v13, 4  ;;  %7684 = vmatprep.mubr.msk.bf16.mxu0 %vm1828_vm9, %v6769_v57  ;;  %v3422_v17 = vrot.slane %v3420_v36, 5  ;;  %v3436_v51 = vshll.u32 %v9283_v29, 16  ;;  %v9301_v57 = vld [vmem:[#allocation2 + $0x80] sm:$0x1] }
 0x1c0   : > { %v6887_v44 = vcombine.low %v3381_v50, %v3391_v2  ;;  %v3410_v58 = vrot.slane %v3409_v35, 4  ;;  %v3428_v40 = vrot.slane %v3426_v10, 5  ;;  %v3432_v61 = vrot.slane %v3430_v54, 4  ;;  %v3206_v10 = vld [vmem:[#allocation2 + $0x84] sm:$0xf] }
 0x1c1   : > { %v3405_v0 = vsel %vm8694_vm8, %v3400_v45, %v3404_v32  ;;  %v6770_v38 = vcombine.low %v8996_v8, %v9015_v55  ;;  %v3423_v50 = vor.u32 %v3422_v17, %v3419_v47  ;;  %v3441_v21 = vshrl.u32 %v3203_v46, 16  ;;  %v9305_v55 = vld [vmem:[#allocation2 + $0x88] sm:$0xf] }
 0x1c2   : > { %7792 = vmatprep.mubr.msk.bf16.mxu1 %vm1828_vm9, %v6887_v44  ;;  %v3415_v27 = vsel %vm8694_vm8, %v3410_v58, %v3414_v18  ;;  %v3444_v13 = vshll.u32 %v3203_v46, 16  ;;  %v3433_v35 = vor.u32 %v3432_v61, %v3428_v40  ;;  %v3438_v36 = vrot.slane %v3436_v51, 5  ;;  %v9313_v61 = vld [vmem:[#allocation2 + $0x8c] sm:$0x1] }
 0x1c3   : > { %v6888_v60 = vcombine.low %v3405_v0, %v3415_v27  ;;  %v3450_v32 = vshll.u32 %v9291_v19, 16  ;;  %v3424_v2 = vrot.slane %v3423_v50, 4  ;;  %v3443_v45 = vrot.slane %v3441_v21, 4 }
 0x1c4   : > { %v3446_v54 = vrot.slane %v3444_v13, 5  ;;  %v3454_v8 = vshrl.u32 %v9291_v19, 16  ;;  %v3434_v18 = vrot.slane %v3433_v35, 4  ;;  %v3460_v44 = vshll.u32 %v9301_v57, 16 }
 0x1c5   : > { %7793 = vmatmul.mubr.msk.bf16.gmra.mrb[4].mxu1 %vm1828_vm9, %v6888_v60  ;;  %v3452_v47 = vrot.slane %v3450_v32, 5  ;;  %v6771_v46 = vcombine.low %v9027_v15, %v9029_v9  ;;  %v3429_v58 = vsel %vm8694_vm8, %v3424_v2, %v3428_v40  ;;  %v3465_v51 = vshrl.u32 %v3206_v10, 16  ;;  %v3209_v60 = vld [vmem:[#allocation2 + $0x90] sm:$0xf] }
 0x1c6   : > { %v3447_v17 = vor.u32 %v3446_v54, %v3443_v45  ;;  %v3456_v0 = vrot.slane %v3454_v8, 4  ;;  %v3439_v27 = vsel %vm8694_vm8, %v3434_v18, %v3438_v36  ;;  %7685 = vmatmul.mubr.msk.bf16.gmra.mrb[44].mxu0 %vm1828_vm9, %v6770_v38  ;;  %v3462_v50 = vrot.slane %v3460_v44, 5  ;;  %v9322_v36 = vld [vmem:[#allocation2 + $0x94] sm:$0xf] }
 0x1c7   : > { %v3468_v21 = vshll.u32 %v3206_v10, 16  ;;  %v3474_v13 = vshll.u32 %v9305_v55, 16  ;;  %v6889_v35 = vcombine.low %v3429_v58, %v3439_v27  ;;  %7688 = vmatprep.mubr.msk.bf16.mxu0 %vm1828_vm9, %v6771_v46  ;;  %v3467_v40 = vrot.slane %v3465_v51, 4 }
 0x1c8   : > { %v3448_v15 = vrot.slane %v3447_v17, 4  ;;  %v3457_v9 = vor.u32 %v3456_v0, %v3452_v47  ;;  %v3478_v45 = vshrl.u32 %v9305_v55, 16  ;;  %v3484_v54 = vshll.u32 %v9313_v61, 16  ;;  %v9329_v17 = vld [vmem:[#allocation2 + $0x98] sm:$0x1] }
 0x1c9   : > { %v3470_v32 = vrot.slane %v3468_v21, 5  ;;  %v3476_v2 = vrot.slane %v3474_v13, 5  ;;  %7796 = vmatprep.mubr.msk.bf16.mxu1 %vm1828_vm9, %v6889_v35  ;;  %v6772_v8 = vcombine.low %v9041_v30, %v9046_v34  ;;  %v3489_v18 = vshrl.u32 %v3209_v60, 16  ;;  %v9335_v34 = vld [vmem:[#allocation2 + $0xa0] sm:$0xf] }
 0x1ca   : > { %v3453_v38 = vsel %vm8694_vm8, %v3448_v15, %v3452_v47  ;;  %v3458_v10 = vrot.slane %v3457_v9, 4  ;;  %v3480_v46 = vrot.slane %v3478_v45, 4  ;;  %v3486_v58 = vrot.slane %v3484_v54, 5  ;;  %v3212_v47 = vld [vmem:[#allocation2 + $0x9c] sm:$0xf] }
 0x1cb   : > { %v3471_v44 = vor.u32 %v3470_v32, %v3467_v40  ;;  %v3492_v0 = vshll.u32 %v3209_v60, 16  ;;  %v3491_v27 = vrot.slane %v3489_v18, 4  ;;  %v3498_v21 = vshll.u32 %v9322_v36, 16 }
 0x1cc   : > { %v3463_v51 = vsel %vm8694_vm8, %v3458_v10, %v3462_v50  ;;  %v3502_v13 = vshrl.u32 %v9322_v36, 16  ;;  %v3481_v9 = vor.u32 %v3480_v46, %v3476_v2  ;;  %v3508_v45 = vshll.u32 %v9329_v17, 16  ;;  %v9345_v46 = vld [vmem:[#allocation2 + $0xa4] sm:$0x1] }
 0x1cd   : > { %v6890_v35 = vcombine.low %v3453_v38, %v3463_v51  ;;  %v3472_v15 = vrot.slane %v3471_v44, 4  ;;  %v3494_v30 = vrot.slane %v3492_v0, 5  ;;  %v3500_v40 = vrot.slane %v3498_v21, 5 }
 0x1ce   : > { %v3504_v32 = vrot.slane %v3502_v13, 4  ;;  %v6773_v60 = vcombine.low %v9049_v37, %v9058_v56  ;;  %v3482_v54 = vrot.slane %v3481_v9, 4  ;;  %7689 = vmatmul.mubr.msk.bf16.gmra.mrb[48].mxu0 %vm1828_vm9, %v6772_v8  ;;  %v3513_v10 = vshrl.u32 %v3212_v47, 16  ;;  %v3215_v13 = vld [vmem:[#allocation2 + $0xa8] sm:$0xf] }
 0x1cf   : > { %7797 = vmatmul.mubr.msk.bf16.gmra.mrb[8].mxu1 %vm1828_vm9, %v6890_v35  ;;  %v3477_v50 = vsel %vm8694_vm8, %v3472_v15, %v3476_v2  ;;  %v3495_v38 = vor.u32 %v3494_v30, %v3491_v27  ;;  %v3510_v44 = vrot.slane %v3508_v45, 5  ;;  %v3516_v0 = vshll.u32 %v3212_v47, 16  ;;  %v9351_v9 = vld [vmem:[#allocation2 + $0xac] sm:$0xf] }
 0x1d0   : > { %v3505_v18 = vor.u32 %v3504_v32, %v3500_v40  ;;  %7692 = vmatprep.mubr.msk.bf16.mxu0 %vm1828_vm9, %v6773_v60  ;;  %v3522_v51 = vshll.u32 %v9335_v34, 16  ;;  %v3487_v37 = vsel %vm8694_vm8, %v3482_v54, %v3486_v58  ;;  %v3515_v21 = vrot.slane %v3513_v10, 4 }
 0x1d1   : > { %v3496_v56 = vrot.slane %v3495_v38, 4  ;;  %v3526_v2 = vshrl.u32 %v9335_v34, 16  ;;  %v6891_v8 = vcombine.low %v3477_v50, %v3487_v37  ;;  %v3518_v35 = vrot.slane %v3516_v0, 5  ;;  %v9361_v50 = vld [vmem:[#allocation2 + $0xb0] sm:$0x1] }
 0x1d2   : > { %v3506_v27 = vrot.slane %v3505_v18, 4  ;;  %v3524_v15 = vrot.slane %v3522_v51, 5  ;;  %v3532_v32 = vshll.u32 %v9345_v46, 16  ;;  %v6774_v58 = vcombine.low %v9067_v1, %v9072_v24  ;;  %v3218_v51 = vld [vmem:[#allocation2 + $0xb4] sm:$0xf] }
 0x1d3   : > { %v3501_v30 = vsel %vm8694_vm8, %v3496_v56, %v3500_v40  ;;  %v3528_v47 = vrot.slane %v3526_v2, 4  ;;  %7800 = vmatprep.mubr.msk.bf16.mxu1 %vm1828_vm9, %v6891_v8  ;;  %v3519_v60 = vor.u32 %v3518_v35, %v3515_v21  ;;  %v3537_v54 = vshrl.u32 %v3215_v13, 16  ;;  %v9365_v24 = vld [vmem:[#allocation2 + $0xb8] sm:$0xf] }
 0x1d4   : > { %v3511_v45 = vsel %vm8694_vm8, %v3506_v27, %v3510_v44  ;;  %v3540_v38 = vshll.u32 %v3215_v13, 16  ;;  %v3534_v0 = vrot.slane %v3532_v32, 5  ;;  %v3546_v40 = vshll.u32 %v9351_v9, 16 }
 0x1d5   : > { %v6892_v10 = vcombine.low %v3501_v30, %v3511_v45  ;;  %v3529_v18 = vor.u32 %v3528_v47, %v3524_v15  ;;  %v3520_v37 = vrot.slane %v3519_v60, 4  ;;  %v3539_v56 = vrot.slane %v3537_v54, 4  ;;  %v9377_v45 = vld [vmem:[#allocation2 + $0xbc] sm:$0x1]  ;;  %v3221_v54 = vld [vmem:[#allocation2 + $0xc0] sm:$0xf] }
 0x1d6   : > { %v3542_v2 = vrot.slane %v3540_v38, 5  ;;  %v3550_v1 = vshrl.u32 %v9351_v9, 16  ;;  %7693 = vmatmul.mubr.msk.bf16.gmra.mrb[52].mxu0 %vm1828_vm9, %v6774_v58  ;;  %v3548_v21 = vrot.slane %v3546_v40, 5  ;;  %v3556_v13 = vshll.u32 %v9361_v50, 16 }
 0x1d7   : > { %7801 = vmatmul.mubr.msk.bf16.gmra.mrb[12].mxu1 %vm1828_vm9, %v6892_v10  ;;  %v3530_v44 = vrot.slane %v3529_v18, 4  ;;  %v6775_v8 = vcombine.low %v9082_v39, %v9087_v49  ;;  %v3561_v30 = vshrl.u32 %v3218_v51, 16  ;;  %v3525_v47 = vsel %vm8694_vm8, %v3520_v37, %v3524_v15  ;;  %v9381_v37 = vld [vmem:[#allocation2 + $0xc4] sm:$0xf] }
 0x1d8   : > { %v3543_v27 = vor.u32 %v3542_v2, %v3539_v56  ;;  %v3552_v35 = vrot.slane %v3550_v1, 4  ;;  %v3564_v58 = vshll.u32 %v3218_v51, 16  ;;  %v3570_v60 = vshll.u32 %v9365_v24, 16 }
 0x1d9   : > { %v3535_v32 = vsel %vm8694_vm8, %v3530_v44, %v3534_v0  ;;  %7696 = vmatprep.mubr.msk.bf16.mxu0 %vm1828_vm9, %v6775_v8  ;;  %v3563_v49 = vrot.slane %v3561_v30, 4  ;;  %v3558_v18 = vrot.slane %v3556_v13, 5  ;;  %v3574_v15 = vshrl.u32 %v9365_v24, 16 }
 0x1da   : > { %v6893_v38 = vcombine.low %v3525_v47, %v3535_v32  ;;  %v3544_v10 = vrot.slane %v3543_v27, 4  ;;  %v3553_v39 = vor.u32 %v3552_v35, %v3548_v21  ;;  %v3566_v40 = vrot.slane %v3564_v58, 5  ;;  %v9389_v27 = vld [vmem:[#allocation2 + $0xc8] sm:$0x1] }
 0x1db   : > { %v3572_v56 = vrot.slane %v3570_v60, 5  ;;  %v3580_v2 = vshll.u32 %v9377_v45, 16  ;;  %v3585_v1 = vshrl.u32 %v3221_v54, 16  ;;  %v3576_v8 = vrot.slane %v3574_v15, 4  ;;  %v3913_v15 = vld [vmem:[#allocation2 + $0xc] sm:$0xe] }
 0x1dc   : > { %7804 = vmatprep.mubr.msk.bf16.mxu1 %vm1828_vm9, %v6893_v38  ;;  %v3549_v0 = vsel %vm8694_vm8, %v3544_v10, %v3548_v21  ;;  %v3554_v51 = vrot.slane %v3553_v39, 4  ;;  %v3567_v44 = vor.u32 %v3566_v40, %v3563_v49  ;;  %v6776_v13 = vcombine.low %v9096_v7, %v9100_v14 }
 0x1dd   : > { %v3588_v35 = vshll.u32 %v3221_v54, 16  ;;  %v3587_v47 = vrot.slane %v3585_v1, 4  ;;  %v3594_v32 = vshll.u32 %v9381_v37, 16  ;;  %v3598_v21 = vshrl.u32 %v9381_v37, 16 }
 0x1de   : > { %v3559_v30 = vsel %vm8694_vm8, %v3554_v51, %v3558_v18  ;;  %v3568_v60 = vrot.slane %v3567_v44, 4  ;;  %v3577_v38 = vor.u32 %v3576_v8, %v3572_v56  ;;  %7697 = vmatmul.mubr.msk.bf16.gmra.mrb[56].mxu0 %vm1828_vm9, %v6776_v13  ;;  %v3604_v7 = vshll.u32 %v9389_v27, 16 }
 0x1df   : > { %v6894_v58 = vcombine.low %v3549_v0, %v3559_v30  ;;  %v3590_v10 = vrot.slane %v3588_v35, 5  ;;  %v3596_v39 = vrot.slane %v3594_v32, 5  ;;  %v3600_v49 = vrot.slane %v3598_v21, 4  ;;  %v3914_v30 = vld [vmem:[#allocation2 + $0x18] sm:$0xe] }
 0x1e0   : > { %v6777_v14 = vcombine.low %v9102_v16, %v9110_v33  ;;  %v3578_v54 = vrot.slane %v3577_v38, 4  ;;  %v3582_v18 = vrot.slane %v3580_v2, 5  ;;  %v3573_v51 = vsel %vm8694_vm8, %v3568_v60, %v3572_v56 }
 0x1e1   : > { %7805 = vmatmul.mubr.msk.bf16.gmra.mrb[16].mxu1 %vm1828_vm9, %v6894_v58  ;;  %v3591_v40 = vor.u32 %v3590_v10, %v3587_v47  ;;  %v3601_v0 = vor.u32 %v3600_v49, %v3596_v39  ;;  %v3979_v33 = vrot.slane %v9123_v4, 5  ;;  %v3606_v13 = vrot.slane %v3604_v7, 5  ;;  %v3915_v58 = vld [vmem:[#allocation2 + $0x24] sm:$0xe] }
 0x1e2   : > { %7700 = vmatprep.mubr.msk.bf16.mxu0 %vm1828_vm9, %v6777_v14  ;;  %v3583_v1 = vsel %vm8694_vm8, %v3578_v54, %v3582_v18  ;;  %v6915_v35 = vrot.slane %v3913_v15, 9  ;;  %v3982_v32 = vrot.slane %v9126_v20, 5  ;;  %v6778_v56 = vcombine.low %v9132_v26, %v9134_v62  ;;  %v2339_v20 = vld [vmem:[#allocation2] sm:$0xe]  ;;  %v2340_v18 = vld [vmem:[#allocation2 + $0xc] sm:$0xe] }
 0x1e3   : > { %v3592_v44 = vrot.slane %v3591_v40, 4  ;;  %v6895_v2 = vcombine.low %v3573_v51, %v3583_v1  ;;  %v3602_v8 = vrot.slane %v3601_v0, 4  ;;  %v3981_v47 = vrot.slane %v3979_v33, 4  ;;  %v8393_v0 = vld [vmem:[#allocation2 + $0x8] sm:$0x1] }
 0x1e4   : > { %v3986_v21 = vrot.slane %v9144_v63, 5  ;;  %v3980_v38 = vsel %vm9405_vm15, %v6915_v35, %v3979_v33  ;;  %v3993_v10 = vrot.slane %v9155_v6, 5  ;;  %v3989_v63 = vrot.slane %v9151_v41, 5 }
 0x1e5   : > { %7808 = vmatprep.mubr.msk.bf16.mxu1 %vm1828_vm9, %v6895_v2  ;;  %v3597_v60 = vsel %vm8694_vm8, %v3592_v44, %v3596_v39  ;;  %v3607_v4 = vsel %vm8694_vm8, %v3602_v8, %v3606_v13  ;;  %v3983_v26 = vsel %vm9405_vm15, %v3981_v47, %v3982_v32  ;;  %v6916_v39 = vrot.slane %v3914_v30, 9  ;;  %v3916_v2 = vld [vmem:[#allocation2 + $0x30] sm:$0xe]  ;;  %v8394_v32 = vld [vmem:[#allocation2 + $0x14] sm:$0x1] }
 0x1e6   : > { %v6896_v49 = vcombine.low %v3597_v60, %v3607_v4  ;;  %7701 = vmatmul.mubr.msk.bf16.gmra.mrb[60].mxu0 %vm1828_vm9, %v6778_v56  ;;  %v3988_v62 = vrot.slane %v3986_v21, 4  ;;  %v6931_v7 = vcombine.low %v3980_v38, %v3983_v26  ;;  %v6917_v14 = vrot.slane %v3915_v58, 9  ;;  %v2341_v58 = vld [vmem:[#allocation2 + $0x18] sm:$0xe]  ;;  %v3917_v26 = vld [vmem:[#allocation2 + $0x3c] sm:$0xe] }
 0x1e7   : > { %v3995_v54 = vrot.slane %v3993_v10, 4  ;;  %v6797_v40 = vrot.slane %v2339_v20, 9  ;;  %v2392_v15 = vrot.slane %v9177_v42, 5  ;;  %v2395_v51 = vrot.slane %v8393_v0, 5 }
 0x1e8   : > { %v3990_v6 = vsel %vm9405_vm15, %v3988_v62, %v3989_v63  ;;  %v3987_v41 = vsel %vm9405_vm15, %v6916_v39, %v3986_v21  ;;  %v3994_v1 = vsel %vm9405_vm15, %v6917_v14, %v3993_v10  ;;  %v3996_v44 = vrot.slane %v9163_v53, 5  ;;  %v2342_v14 = vld [vmem:[#allocation2 + $0x24] sm:$0xe] }
 0x1e9   : > { %7809 = vmatmul.mubr.msk.bf16.gmra.mrb[20].mxu1 %vm1828_vm9, %v6896_v49  ;;  %v2399_v33 = vrot.slane %v9185_v48, 5  ;;  %v6932_v8 = vcombine.low %v3987_v41, %v3990_v6  ;;  %v2393_v13 = vsel %vm9405_vm15, %v6797_v40, %v2392_v15  ;;  %v2394_v42 = vrot.slane %v2392_v15, 4 }
 0x1ea   : > { %7816 = vmatprep.mubr.msk.bf16.mxu1 %vm1828_vm9, %v6931_v7  ;;  %v6798_v35 = vrot.slane %v2340_v18, 9  ;;  %v3997_v30 = vsel %vm9405_vm15, %v3995_v54, %v3996_v44  ;;  %v2402_v56 = vrot.slane %v8394_v32, 5  ;;  %v4000_v21 = vrot.slane %v9173_v23, 5  ;;  %v8395_v7 = vld [vmem:[#allocation2 + $0x20] sm:$0x1]  ;;  %v8352_v54 = vld [vmem:[%s10504_s2 + $0x68] sm:$0xff]  }
 0x1eb   : > { %v2401_v47 = vrot.slane %v2399_v33, 4  ;;  %v2396_v53 = vsel %vm9405_vm15, %v2394_v42, %v2395_v51  ;;  %v6918_v60 = vrot.slane %v3916_v2, 9  ;;  %v2406_v4 = vrot.slane %v9200_v22, 5  ;;  %v3918_v2 = vld [vmem:[#allocation2 + $0x48] sm:$0xe] }
 0x1ec   : > { %v2400_v48 = vsel %vm9405_vm15, %v6798_v35, %v2399_v33  ;;  %v6813_v38 = vcombine.low %v2393_v13, %v2396_v53  ;;  %v4002_v20 = vrot.slane %v4000_v21, 4  ;;  %v4003_v49 = vrot.slane %v9175_v28, 5  ;;  %v8396_v42 = vld [vmem:[#allocation2 + $0x2c] sm:$0x1]  ;;  %v2343_v32 = vld [vmem:[#allocation2 + $0x30] sm:$0xe] }
 0x1ed   : > { %v2403_v10 = vsel %vm9405_vm15, %v2401_v47, %v2402_v56  ;;  %v6799_v23 = vrot.slane %v2341_v58, 9  ;;  %v2408_v63 = vrot.slane %v2406_v4, 4  ;;  %v2409_v39 = vrot.slane %v8395_v7, 5  ;;  %v10555_v58 = vld [vmem:[#allocation11_spill] sm:$0xff]  ;;  %v2344_v7 = vld [vmem:[#allocation2 + $0x3c] sm:$0xe] }
 0x1ee   : > { %v6814_v62 = vcombine.low %v2400_v48, %v2403_v10  ;;  %v6933_v18 = vcombine.low %v3994_v1, %v3997_v30  ;;  %7708 = vmatprep.mubr.msk.bf16.mxu0 %vm1828_vm9, %v6813_v38  ;;  %v4001_v22 = vsel %vm9405_vm15, %v6918_v60, %v4000_v21  ;;  %v4004_v28 = vsel %vm9405_vm15, %v4002_v20, %v4003_v49  ;;  %v10554_v30 = vld [vmem:[#allocation9_spill] sm:$0xff]  ;;  %v8397_v48 = vld [vmem:[%s10504_s2 + $0x38] sm:$0xff]  }
 0x1ef   : > { %v4007_v6 = vrot.slane %v9195_v11, 5  ;;  %v2407_v40 = vsel %vm9405_vm15, %v6799_v23, %v2406_v4  ;;  %v2410_v15 = vsel %vm9405_vm15, %v2408_v63, %v2409_v39  ;;  %v6919_v0 = vrot.slane %v3917_v26, 9  ;;  %v10553_v11 = vld [vmem:[#allocation8_spill] sm:$0xff]  ;;  %v10556_v38 = vld [vmem:[#allocation10_spill] sm:$0xff]  ;;  %v3919_v20 = vld [vmem:[#allocation2 + $0x54] sm:$0xe] }
 0x1f0   : > { %7709 = vmatmul.mubr.msk.bf16.vlgmr.msra.gmra.mrb[32].mxu0 %vm1828_vm9, %v6814_v62  ;;  %v2413_v51 = vrot.slane %v9225_v31, 5  ;;  %v6815_v41 = vcombine.low %v2407_v40, %v2410_v15  ;;  %v4010_v44 = vrot.slane %v10553_v11, 5  ;;  %v6800_v33 = vrot.slane %v2342_v14, 9  ;;  %v8398_v23 = vld [vmem:[#allocation2 + $0x38] sm:$0x1] }
 0x1f1   : > { %7817 = vmatmul.mubr.msk.bf16.vlgmr.msra.gmra.mrb[24].mxu1 %vm1828_vm9, %v6932_v8  ;;  %v4009_v1 = vrot.slane %v4007_v6, 4  ;;  %v6934_v8 = vcombine.low %v4001_v22, %v4004_v28  ;;  %v2416_v35 = vrot.slane %v8396_v42, 5  ;;  %v4014_v47 = vrot.slane %v10554_v30, 5  ;;  %7741 = vmatpush3.bf16.msra.mxu0 %v9256_v5  ;;  %v3920_v11 = vld [vmem:[#allocation2 + $0x60] sm:$0xe] }
 0x1f2   : > { %7849 = vmatpush3.bf16.msra.mxu1 %v9217_v59  ;;  %7820 = vmatprep.mubr.msk.bf16.mxu1 %vm1828_vm9, %v6933_v18  ;;  %v2415_v13 = vrot.slane %v2413_v51, 4  ;;  %v9473_v59 = vld [vmem:[%s10504_s2 + $0x70] sm:$0xff]   ;;  %v4008_v31 = vsel %vm9405_vm15, %v6919_v0, %v4007_v6  ;;  %v2414_v21 = vsel %vm9405_vm15, %v6800_v33, %v2413_v51  ;;  %v2420_v53 = vrot.slane %v10555_v58, 5 }
 0x1f3   : > { %7850 = vmatprep.subr.bf16.mxu1 %v8352_v54  ;;  %7712 = vmatprep.mubr.msk.bf16.mxu0 %vm1828_vm9, %v6815_v41  ;;  %v4011_v56 = vsel %vm9405_vm15, %v4009_v1, %v4010_v44  ;;  %v6920_v60 = vrot.slane %v3918_v2, 9  ;;  %v4016_v4 = vrot.slane %v4014_v47, 4  ;;  %v4017_v10 = vrot.slane %v10556_v38, 5  ;;  %v10557_v41 = vld [vmem:[#allocation12_spill] sm:$0xff]  ;;  %v8400_v2 = vld [vmem:[#allocation2 + $0x44] sm:$0x1] }
 0x1f4   : > { %7742 = vmatprep.subr.bf16.mxu0 %v8397_v48  ;;  %v2417_v5 = vsel %vm9405_vm15, %v2415_v13, %v2416_v35  ;;  %v6935_v49 = vcombine.low %v4008_v31, %v4011_v56  ;;  %v6801_v26 = vrot.slane %v2343_v32, 9  ;;  %v2422_v62 = vrot.slane %v2420_v53, 4  ;;  %v2345_v35 = vld [vmem:[#allocation2 + $0x48] sm:$0xe]  ;;  %v8401_v32 = vld [vmem:[#allocation2 + $0x4c] sm:$0xf] }
 0x1f5   : > { %v2423_v63 = vrot.slane %v8398_v23, 5  ;;  %v6816_v39 = vcombine.low %v2414_v21, %v2417_v5  ;;  %v4015_v14 = vsel %vm9405_vm15, %v6920_v60, %v4014_v47  ;;  %v4018_v18 = vsel %vm9405_vm15, %v4016_v4, %v4017_v10  ;;  %7743 = vmatpush3.bf16.msra.mxu0 %v8397_v48  ;;  %v8402_v60 = vld [vmem:[#allocation2 + $0x50] sm:$0x1]  ;;  %v3921_v38 = vld [vmem:[#allocation2 + $0x6c] sm:$0xe] }
 0x1f6   : > { %7851 = vmatpush3.bf16.msra.mxu1 %v8352_v54  ;;  %v4021_v22 = vrot.slane %v9239_v3, 5  ;;  %v2421_v28 = vsel %vm9405_vm15, %v6801_v26, %v2420_v53  ;;  %v6921_v40 = vrot.slane %v3919_v20, 9  ;;  %v8399_v54 = vld [vmem:[#allocation2 + $0x40] sm:$0xf]  ;;  %v4024_v3 = vrot.slane %v10557_v41, 5 }
 0x1f7   : > { %7884 = vmatprep.subr.bf16.mxu1 %v9473_v59  ;;  %v2424_v6 = vsel %vm9405_vm15, %v2422_v62, %v2423_v63  ;;  %v2427_v15 = vrot.slane %v8399_v54, 5  ;;  %v6802_v1 = vrot.slane %v2344_v7, 9  ;;  %v6936_v44 = vcombine.low %v4015_v14, %v4018_v18  ;;  %v2346_v62 = vld [vmem:[#allocation2 + $0x54] sm:$0xe]  ;;  %v8403_v7 = vld [vmem:[#allocation2 + $0x58] sm:$0xf] }
 0x1f8   : > { %7713 = vmatmul.mubr.msk.bf16.gmra.mrb[36].mxu0 %vm1828_vm9, %v6816_v39  ;;  %v6817_v0 = vcombine.low %v2421_v28, %v2424_v6  ;;  %v4023_v51 = vrot.slane %v4021_v22, 4  ;;  %v2430_v13 = vrot.slane %v8400_v2, 5  ;;  %v4028_v42 = vrot.slane %v9262_v12, 5  ;;  %v3922_v14 = vld [vmem:[#allocation2 + $0x78] sm:$0xe] }
 0x1f9   : > { %7821 = vmatmul.mubr.msk.bf16.gmra.mrb[28].mxu1 %vm1828_vm9, %v6934_v8  ;;  %v2429_v33 = vrot.slane %v2427_v15, 4  ;;  %v4022_v8 = vsel %vm9405_vm15, %v6921_v40, %v4021_v22  ;;  %v2428_v47 = vsel %vm9405_vm15, %v6802_v1, %v2427_v15  ;;  %v2434_v31 = vrot.slane %v8401_v32, 5  ;;  %v8404_v54 = vld [vmem:[#allocation2 + $0x5c] sm:$0x1]  ;;  %v8405_v1 = vld [vmem:[#allocation2 + $0x64] sm:$0xf] }
 0x1fa   : > { %7824 = vmatprep.mubr.msk.bf16.mxu1 %vm1828_vm9, %v6935_v49  ;;  %7716 = vmatprep.mubr.msk.bf16.mxu0 %vm1828_vm9, %v6817_v0  ;;  %v4025_v30 = vsel %vm9405_vm15, %v4023_v51, %v4024_v3  ;;  %v6922_v21 = vrot.slane %v3920_v11, 9  ;;  %v4030_v58 = vrot.slane %v4028_v42, 4  ;;  %v4031_v12 = vrot.slane %v9269_v43, 5  ;;  %v2347_v3 = vld [vmem:[#allocation2 + $0x60] sm:$0xe] }
 0x1fb   : > { %v2431_v56 = vsel %vm9405_vm15, %v2429_v33, %v2430_v13  ;;  %v6937_v53 = vcombine.low %v4022_v8, %v4025_v30  ;;  %v6803_v48 = vrot.slane %v2345_v35, 9  ;;  %v2436_v5 = vrot.slane %v2434_v31, 4  ;;  %v8406_v35 = vld [vmem:[#allocation2 + $0x68] sm:$0x1]  ;;  %v3923_v30 = vld [vmem:[#allocation2 + $0x84] sm:$0xe] }
 0x1fc   : > { %v2437_v4 = vrot.slane %v8402_v60, 5  ;;  %v6818_v10 = vcombine.low %v2428_v47, %v2431_v56  ;;  %v4029_v20 = vsel %vm9405_vm15, %v6922_v21, %v4028_v42  ;;  %v4032_v49 = vsel %vm9405_vm15, %v4030_v58, %v4031_v12  ;;  %v8407_v12 = vld [vmem:[#allocation2 + $0x70] sm:$0xf] }
 0x1fd   : > { %v4035_v26 = vrot.slane %v9275_v52, 5  ;;  %v6938_v23 = vcombine.low %v4029_v20, %v4032_v49  ;;  %v2435_v43 = vsel %vm9405_vm15, %v6803_v48, %v2434_v31  ;;  %v2441_v39 = vrot.slane %v8403_v7, 5  ;;  %v2348_v20 = vld [vmem:[#allocation2 + $0x6c] sm:$0xe] }
 0x1fe   : > { %v2438_v63 = vsel %vm9405_vm15, %v2436_v5, %v2437_v4  ;;  %v6923_v22 = vrot.slane %v3921_v38, 9  ;;  %v4038_v6 = vrot.slane %v9283_v29, 5  ;;  %v6804_v52 = vrot.slane %v2346_v62, 9  ;;  %v3924_v38 = vld [vmem:[#allocation2 + $0x90] sm:$0xe] }
 0x1ff   : > { %v6819_v18 = vcombine.low %v2435_v43, %v2438_v63  ;;  %v4037_v28 = vrot.slane %v4035_v26, 4  ;;  %v2443_v40 = vrot.slane %v2441_v39, 4  ;;  %v2444_v15 = vrot.slane %v8404_v54, 5  ;;  %v8408_v63 = vld [vmem:[#allocation2 + $0x74] sm:$0x1] }
 0x200   : > { %7717 = vmatmul.mubr.msk.bf16.gmra.mrb[40].mxu0 %vm1828_vm9, %v6818_v10  ;;  %v4042_v0 = vrot.slane %v9291_v19, 5  ;;  %v4036_v51 = vsel %vm9405_vm15, %v6923_v22, %v4035_v26  ;;  %v6924_v41 = vrot.slane %v3922_v14, 9  ;;  %v2448_v11 = vrot.slane %v8405_v1, 5  ;;  %v2349_v26 = vld [vmem:[#allocation2 + $0x78] sm:$0xe] }
 0x201   : > { %7825 = vmatmul.mubr.msk.bf16.gmra.mrb[0].mxu1 %vm1828_vm9, %v6936_v44  ;;  %7720 = vmatprep.mubr.msk.bf16.mxu0 %vm1828_vm9, %v6819_v18  ;;  %v4039_v29 = vsel %vm9405_vm15, %v4037_v28, %v4038_v6  ;;  %v2445_v33 = vsel %vm9405_vm15, %v2443_v40, %v2444_v15  ;;  %v4045_v19 = vrot.slane %v9301_v57, 5  ;;  %v2442_v13 = vsel %vm9405_vm15, %v6804_v52, %v2441_v39  ;;  %v8410_v52 = vld [vmem:[#allocation2 + $0x80] sm:$0x1]  ;;  %v3925_v54 = vld [vmem:[#allocation2 + $0x9c] sm:$0xe] }
 0x202   : > { %7828 = vmatprep.mubr.msk.bf16.mxu1 %vm1828_vm9, %v6937_v53  ;;  %v6939_v44 = vcombine.low %v4036_v51, %v4039_v29  ;;  %v4044_v2 = vrot.slane %v4042_v0, 4  ;;  %v2450_v42 = vrot.slane %v2448_v11, 4  ;;  %v2451_v8 = vrot.slane %v8406_v35, 5  ;;  %v8411_v1 = vld [vmem:[#allocation2 + $0x88] sm:$0xf] }
 0x203   : > { %v9541_v47 = vsel %vm9405_vm15, %v6924_v41, %v4042_v0  ;;  %v6805_v31 = vrot.slane %v2347_v3, 9  ;;  %v4049_v56 = vrot.slane %v9305_v55, 5  ;;  %v6820_v21 = vcombine.low %v2442_v13, %v2445_v33  ;;  %v3926_v13 = vld [vmem:[#allocation2 + $0xa8] sm:$0xe] }
 0x204   : > { %v9545_v32 = vsel %vm9405_vm15, %v4044_v2, %v4045_v19  ;;  %v2452_v58 = vsel %vm9405_vm15, %v2450_v42, %v2451_v8  ;;  %v2455_v53 = vrot.slane %v8407_v12, 5  ;;  %v6925_v5 = vrot.slane %v3923_v30, 9 }
 0x205   : > { %v6940_v57 = vcombine.low %v9541_v47, %v9545_v32  ;;  %v2449_v48 = vsel %vm9405_vm15, %v6805_v31, %v2448_v11  ;;  %v4051_v60 = vrot.slane %v4049_v56, 4  ;;  %v4052_v4 = vrot.slane %v9313_v61, 5  ;;  %v8409_v61 = vld [vmem:[#allocation2 + $0x7c] sm:$0xf]  ;;  %v2350_v47 = vld [vmem:[#allocation2 + $0x84] sm:$0xe] }
 0x206   : > { %v6821_v10 = vcombine.low %v2449_v48, %v2452_v58  ;;  %v2457_v55 = vrot.slane %v2455_v53, 4  ;;  %v4056_v49 = vrot.slane %v9322_v36, 5  ;;  %v4050_v62 = vsel %vm9405_vm15, %v6925_v5, %v4049_v56  ;;  %v2351_v31 = vld [vmem:[#allocation2 + $0x90] sm:$0xe]  ;;  %v8412_v56 = vld [vmem:[#allocation2 + $0x94] sm:$0xf] }
 0x207   : > { %v4053_v43 = vsel %vm9405_vm15, %v4051_v60, %v4052_v4  ;;  %v2458_v7 = vrot.slane %v8408_v63, 5  ;;  %v2462_v39 = vrot.slane %v8409_v61, 5  ;;  %v6926_v14 = vrot.slane %v3924_v38, 9  ;;  %v8414_v60 = vld [vmem:[#allocation2 + $0x98] sm:$0x1] }
 0x208   : > { %7721 = vmatmul.mubr.msk.bf16.gmra.mrb[44].mxu0 %vm1828_vm9, %v6820_v21  ;;  %v6941_v36 = vcombine.low %v4050_v62, %v4053_v43  ;;  %v4058_v18 = vrot.slane %v4056_v49, 4  ;;  %v6806_v22 = vrot.slane %v2348_v20, 9  ;;  %v6807_v28 = vrot.slane %v2349_v26, 9  ;;  %v8415_v26 = vld [vmem:[#allocation2 + $0xa0] sm:$0xf] }
 0x209   : > { %7829 = vmatmul.mubr.msk.bf16.gmra.mrb[4].mxu1 %vm1828_vm9, %v6938_v23  ;;  %7724 = vmatprep.mubr.msk.bf16.mxu0 %vm1828_vm9, %v6821_v10  ;;  %v4059_v23 = vrot.slane %v9329_v17, 5  ;;  %v2464_v6 = vrot.slane %v2462_v39, 4  ;;  %v2465_v40 = vrot.slane %v8410_v52, 5  ;;  %v2459_v15 = vsel %vm9405_vm15, %v2457_v55, %v2458_v7  ;;  %v3928_v63 = vld [vmem:[#allocation2 + $0xc0] sm:$0xe] }
 0x20a   : > { %7832 = vmatprep.mubr.msk.bf16.mxu1 %vm1828_vm9, %v6939_v44  ;;  %v4057_v0 = vsel %vm9405_vm15, %v6926_v14, %v4056_v49  ;;  %v4063_v29 = vrot.slane %v9335_v34, 5  ;;  %v2456_v17 = vsel %vm9405_vm15, %v6806_v22, %v2455_v53  ;;  %v2469_v11 = vrot.slane %v8411_v1, 5  ;;  %v8413_v53 = vld [vmem:[#allocation2 + $0x8c] sm:$0x1]  ;;  %v8418_v1 = vld [vmem:[#allocation2 + $0xb0] sm:$0x1] }
 0x20b   : > { %v4060_v51 = vsel %vm9405_vm15, %v4058_v18, %v4059_v23  ;;  %v2466_v3 = vsel %vm9405_vm15, %v2464_v6, %v2465_v40  ;;  %v2463_v44 = vsel %vm9405_vm15, %v6807_v28, %v2462_v39  ;;  %v6927_v33 = vrot.slane %v3925_v54, 9  ;;  %v8416_v18 = vld [vmem:[#allocation2 + $0xac] sm:$0xf]  ;;  %v2352_v54 = vld [vmem:[#allocation2 + $0x9c] sm:$0xe] }
 0x20c   : > { %v6942_v41 = vcombine.low %v4057_v0, %v4060_v51  ;;  %v4065_v2 = vrot.slane %v4063_v29, 4  ;;  %v4066_v19 = vrot.slane %v9345_v46, 5  ;;  %v6822_v42 = vcombine.low %v2456_v17, %v2459_v15  ;;  %v341_v40 = vld [vmem:[#allocation2 + $0xcc] sm:$0x1]  ;;  %v8417_v0 = vld [vmem:[#allocation2 + $0xa4] sm:$0x1] }
 0x20d   : > { %v6823_v35 = vcombine.low %v2463_v44, %v2466_v3  ;;  %v4070_v34 = vrot.slane %v9351_v9, 5  ;;  %v4064_v8 = vsel %vm9405_vm15, %v6927_v33, %v4063_v29  ;;  %v2471_v32 = vrot.slane %v2469_v11, 4  ;;  %v2353_v17 = vld [vmem:[#allocation2 + $0xa8] sm:$0xe] }
 0x20e   : > { %v4067_v30 = vsel %vm9405_vm15, %v4065_v2, %v4066_v19  ;;  %v2476_v21 = vrot.slane %v8412_v56, 5  ;;  %v6928_v58 = vrot.slane %v3926_v13, 9  ;;  %v4073_v9 = vrot.slane %v9361_v50, 5  ;;  %v8419_v13 = vld [vmem:[#allocation2 + $0xb8] sm:$0xf] }
 0x20f   : > { %v6943_v46 = vcombine.low %v4064_v8, %v4067_v30  ;;  %v4072_v12 = vrot.slane %v4070_v34, 4  ;;  %v2472_v48 = vrot.slane %v8413_v53, 5  ;;  %v2479_v4 = vrot.slane %v8414_v60, 5 }
 0x210   : > { %7725 = vmatmul.mubr.msk.bf16.gmra.mrb[48].mxu0 %vm1828_vm9, %v6822_v42  ;;  %v2478_v5 = vrot.slane %v2476_v21, 4  ;;  %v6808_v38 = vrot.slane %v2350_v47, 9  ;;  %v6809_v20 = vrot.slane %v2351_v31, 9  ;;  %v2483_v62 = vrot.slane %v8415_v26, 5  ;;  %v9652_v26 = vld [vmem:[#allocation2 + $0x1c] sm:$0xf] }
 0x211   : > { %7833 = vmatmul.mubr.msk.bf16.gmra.mrb[8].mxu1 %vm1828_vm9, %v6940_v57  ;;  %7728 = vmatprep.mubr.msk.bf16.mxu0 %vm1828_vm9, %v6823_v35  ;;  %v4071_v57 = vsel %vm9405_vm15, %v6928_v58, %v4070_v34  ;;  %v4074_v10 = vsel %vm9405_vm15, %v4072_v12, %v4073_v9  ;;  %v2473_v50 = vsel %vm9405_vm15, %v2471_v32, %v2472_v48  ;;  %v4077_v43 = vrot.slane %v9365_v24, 5  ;;  %v2354_v58 = vld [vmem:[#allocation2 + $0xb4] sm:$0xe]  ;;  %v8420_v12 = vld [vmem:[#allocation2 + $0xbc] sm:$0x1] }
 0x212   : > { %7836 = vmatprep.mubr.msk.bf16.mxu1 %vm1828_vm9, %v6941_v36  ;;  %v6944_v55 = vcombine.low %v4071_v57, %v4074_v10  ;;  %v2480_v49 = vsel %vm9405_vm15, %v2478_v5, %v2479_v4  ;;  %v2470_v7 = vsel %vm9405_vm15, %v6808_v38, %v2469_v11  ;;  %v2477_v61 = vsel %vm9405_vm15, %v6809_v20, %v2476_v21  ;;  %v8353_v4 = vld [vmem:[#allocation2 + $0x18] sm:$0xff]   ;;  %v8356_v38 = vld [vmem:[#allocation2 + $0xc] sm:$0xff]   ;;  %v8355_v57 = vld [vmem:[#allocation2 + $0x24] sm:$0xff]  }
 0x213   : > { %v4084_v39 = vrot.slane %v9381_v37, 5  ;;  %v6824_v36 = vcombine.low %v2470_v7, %v2473_v50  ;;  %v6825_v14 = vcombine.low %v2477_v61, %v2480_v49  ;;  %v2490_v23 = vrot.slane %v8416_v18, 5  ;;  %v3927_v37 = vld [vmem:[#allocation2 + $0xb4] sm:$0xe]  ;;  %v8358_v10 = vld [vmem:[#allocation2 + $0x18] sm:$0xff]   ;;  %v9650_v49 = vld [vmem:[%s10504_s2 + $0x80] sm:$0xff]  }
 0x214   : > { %v2485_v22 = vrot.slane %v2483_v62, 4  ;;  %v6930_v28 = vrot.slane %v3928_v63, 9  ;;  %v4087_v52 = vrot.slane %v9389_v27, 5  ;;  %v4079_v24 = vrot.slane %v4077_v43, 4  ;;  %v8367_v20 = vld [vmem:[%s10504_s2 + $0x78] sm:$0xff]   ;;  %v8357_v50 = vld [vmem:[#allocation2 + $0x30] sm:$0xff]  }
 0x215   : > { %v4086_v6 = vrot.slane %v4084_v39, 4  ;;  %v2492_v15 = vrot.slane %v2490_v23, 4  ;;  %v2486_v51 = vrot.slane %v8417_v0, 5  ;;  %v2493_v11 = vrot.slane %v8418_v1, 5  ;;  %v4764_v63 = vld [vmem:[#allocation2 + $0x18] sm:$0xf] }
 0x216   : > { %v4085_v29 = vsel %vm9405_vm15, %v6930_v28, %v4084_v39  ;;  %v342_v33 = vsel %vm8611_vm2, 0, %v341_v40  ;;  %v6810_v2 = vrot.slane %v2352_v54, 9  ;;  %v2497_v42 = vrot.slane %v8419_v13, 5  ;;  %v8361_v7 = vld [vmem:[#allocation2 + $0x48] sm:$0xff]   ;;  %v4767_v39 = vld [vmem:[#allocation2 + $0x24] sm:$0xf] }
 0x217   : > { %v4088_v27 = vsel %vm9405_vm15, %v4086_v6, %v4087_v52  ;;  %v2487_v19 = vsel %vm9405_vm15, %v2485_v22, %v2486_v51  ;;  %343 = vst [vmem:[#allocation2 + $0xcc] sm:$0x1] %v342_v33  ;;  %v6929_v35 = vrot.slane %v3927_v37, 9  ;;  %v6811_v8 = vrot.slane %v2353_v17, 9  ;;  %v9660_v18 = vld [vmem:[#allocation2 + $0x28] sm:$0xf] }
 0x218   : > { %7729 = vmatmul.mubr.msk.bf16.gmra.mrb[52].mxu0 %vm1828_vm9, %v6824_v36  ;;  %v6946_v3 = vcombine.low %v4085_v29, %v4088_v27  ;;  %v2484_v30 = vsel %vm9405_vm15, %v6810_v2, %v2483_v62  ;;  %v2500_v9 = vrot.slane %v8420_v12, 5  ;;  %v6812_v53 = vrot.slane %v2354_v58, 9  ;;  %v8359_v62 = vld [vmem:[#allocation2 + $0x3c] sm:$0xff]   ;;  %v4770_v37 = vld [vmem:[#allocation2 + $0x30] sm:$0xf]  ;;  %v8363_v0 = vld [vmem:[#allocation2 + $0x54] sm:$0xff]  }
 0x219   : > { %7837 = vmatmul.mubr.msk.bf16.gmra.mrb[12].mxu1 %vm1828_vm9, %v6942_v41  ;;  %7732 = vmatprep.mubr.msk.bf16.mxu0 %vm1828_vm9, %v6825_v14  ;;  %v4080_v41 = vrot.slane %v9377_v45, 5  ;;  %v2494_v45 = vsel %vm9405_vm15, %v2492_v15, %v2493_v11  ;;  %v4078_v47 = vsel %vm9405_vm15, %v6929_v35, %v4077_v43  ;;  %v6826_v32 = vcombine.low %v2484_v30, %v2487_v19  ;;  %v8362_v43 = vld [vmem:[#allocation2 + $0x30] sm:$0xff]   ;;  %v9664_v52 = vld [vmem:[#allocation2 + $0x20] sm:$0x1] }
 0x21a   : > { %7840 = vmatprep.mubr.msk.bf16.mxu1 %vm1828_vm9, %v6943_v46  ;;  %v2491_v31 = vsel %vm9405_vm15, %v6811_v8, %v2490_v23  ;;  %v2499_v46 = vrot.slane %v2497_v42, 4  ;;  %v2498_v5 = vsel %vm9405_vm15, %v6812_v53, %v2497_v42  ;;  %v4826_v61 = vshrl.u32 %v9652_v26, 16  ;;  %v9668_v51 = vld [vmem:[#allocation2 + $0x34] sm:$0xf]  ;;  %v8364_v29 = vld [vmem:[#allocation2 + $0x60] sm:$0xff]  }
 0x21b   : > { %v4081_v34 = vsel %vm9405_vm15, %v4079_v24, %v4080_v41  ;;  %v6827_v21 = vcombine.low %v2491_v31, %v2494_v45  ;;  %v4813_v36 = vshrl.u32 %v4764_v63, 16  ;;  %v4816_v14 = vshll.u32 %v4764_v63, 16  ;;  %v9678_v42 = vld [vmem:[#allocation2 + $0x2c] sm:$0x1]  ;;  %v4773_v8 = vld [vmem:[#allocation2 + $0x3c] sm:$0xf] }
 0x21c   : > { %v6945_v56 = vcombine.low %v4078_v47, %v4081_v34  ;;  %v2501_v48 = vsel %vm9405_vm15, %v2499_v46, %v2500_v9  ;;  %v4828_v22 = vrot.slane %v4826_v61, 4  ;;  %v4837_v28 = vshrl.u32 %v4767_v39, 16  ;;  %v9681_v47 = vld [vmem:[#allocation2 + $0x38] sm:$0x1]  ;;  %v9686_v12 = vld [vmem:[#allocation2 + $0x40] sm:$0xf] }
 0x21d   : > { %v6828_v60 = vcombine.low %v2498_v5, %v2501_v48  ;;  %v4840_v6 = vshll.u32 %v4767_v39, 16  ;;  %v4846_v40 = vshll.u32 %v9660_v18, 16  ;;  %v4850_v24 = vshrl.u32 %v9660_v18, 16  ;;  %v8365_v9 = vld [vmem:[#allocation2 + $0x6c] sm:$0xff]   ;;  %v8366_v5 = vld [vmem:[#allocation2 + $0x78] sm:$0xff]  }
 0x21e   : > { %v4815_v54 = vrot.slane %v4813_v36, 4  ;;  %v4818_v15 = vrot.slane %v4816_v14, 5  ;;  %v4832_v17 = vshll.u32 %v9664_v52, 16  ;;  %v4839_v41 = vrot.slane %v4837_v28, 4  ;;  %v9701_v14 = vld [vmem:[#allocation2 + $0x58] sm:$0xf] }
 0x21f   : > { %v9673_v1 = vrot.slane %v4846_v40, 5  ;;  %v4852_v11 = vrot.slane %v4850_v24, 4  ;;  %v4861_v44 = vshrl.u32 %v4770_v37, 16  ;;  %v4864_v33 = vshll.u32 %v4770_v37, 16 }
 0x220   : > { %7733 = vmatmul.mubr.msk.bf16.gmra.mrb[56].mxu0 %vm1828_vm9, %v6826_v32  ;;  %v4819_v2 = vor.u32 %v4818_v15, %v4815_v54  ;;  %v4870_v19 = vshll.u32 %v9668_v51, 16  ;;  %v4874_v13 = vshrl.u32 %v9668_v51, 16  ;;  %v4834_v45 = vrot.slane %v4832_v17, 5 }
 0x221   : > { %7841 = vmatmul.mubr.msk.bf16.gmra.mrb[16].mxu1 %vm1828_vm9, %v6944_v55  ;;  %7736 = vmatprep.mubr.msk.bf16.mxu0 %vm1828_vm9, %v6827_v21  ;;  %v8360_v55 = vld [vmem:[#allocation2 + $0x24] sm:$0xff]   ;;  %v4853_v30 = vor.u32 %v4852_v11, %v9673_v1  ;;  %v4863_v32 = vrot.slane %v4861_v44, 4  ;;  %v4866_v31 = vrot.slane %v4864_v33, 5  ;;  %v4856_v21 = vshll.u32 %v9678_v42, 16 }
 0x222   : > { %7844 = vmatprep.mubr.msk.bf16.mxu1 %vm1828_vm9, %v6945_v56  ;;  %v4820_v56 = vrot.slane %v4819_v2, 4  ;;  %v9684_v46 = vrot.slane %v4870_v19, 5  ;;  %v4876_v58 = vrot.slane %v4874_v13, 4  ;;  %v4885_v53 = vshrl.u32 %v4773_v8, 16  ;;  %v9719_v19 = vld [vmem:[#allocation2 + $0x64] sm:$0xf] }
 0x223   : > { %v4888_v48 = vshll.u32 %v4773_v8, 16  ;;  %v4942_v17 = vshll.u32 %v9701_v14, 16  ;;  %v8369_v13 = vld [vmem:[#allocation2 + $0x90] sm:$0xff]   ;;  %v5577_v25 = vrot.slane %v9678_v42, 5 }
 0x224   : > { %v4877_v63 = vor.u32 %v4876_v58, %v9684_v46 }
 0x225   : > { %v4890_v61 = vrot.slane %v4888_v48, 5  ;;  %v4785_v48 = vld [vmem:[#allocation2 + $0x6c] sm:$0xf] }
 0x228   : > { %7737 = vmatmul.mubr.msk.bf16.gmra.mrb[60].mxu0 %vm1828_vm9, %v6828_v60 }
 0x229   : > { %7845 = vmatmul.mubr.msk.bf16.gmra.mrb[20].mxu1 %vm1828_vm9, %v6946_v3  ;;  %7744 = vmatprep.mubr.msk.bf16.mxu0 %vm1828_vm9, %v8356_v38  ;;  %v4842_v3 = vrot.slane %v4840_v6, 5  ;;  %v4776_v38 = vld [vmem:[#allocation2 + $0x48] sm:$0xf]  ;;  %v9708_v6 = vld [vmem:[#allocation2 + $0x44] sm:$0x1] }
 0x22a   : > { %7852 = vmatprep.mubr.msk.bf16.mxu1 %vm1828_vm9, %v8353_v4  ;;  %v4909_v39 = vshrl.u32 %v4776_v38, 16  ;;  %v4912_v36 = vshll.u32 %v4776_v38, 16  ;;  %v4904_v44 = vshll.u32 %v9708_v6, 16  ;;  %v9741_v38 = vld [vmem:[#allocation2 + $0x50] sm:$0x1] }
 0x22b   : > { %v4843_v34 = vor.u32 %v4842_v3, %v4839_v41  ;;  %v4946_v41 = vshrl.u32 %v9701_v14, 16  ;;  %v4782_v3 = vld [vmem:[#allocation2 + $0x60] sm:$0xf] }
 0x22c   : > { %v4911_v33 = vrot.slane %v4909_v39, 4  ;;  %v4914_v2 = vrot.slane %v4912_v36, 5  ;;  %v8370_v39 = vld [vmem:[#allocation2 + $0x9c] sm:$0xff]  }
 0x22d   : > { %v4844_v4 = vrot.slane %v4843_v34, 4  ;;  %v4948_v58 = vrot.slane %v4946_v41, 4 }
 0x22f   : > { %v4849_v28 = vsel %vm8694_vm8, %v4844_v4, %v9673_v1  ;;  %v8368_v1 = vld [vmem:[#allocation2 + $0x84] sm:$0xff]  }
 0x230   : > { %7745 = vmatmul.mubr.msk.bf16.vlgmr.msra.gmra.mrb[32].mxu0 %vm1828_vm9, %v8358_v10  ;;  %v4867_v10 = vor.u32 %v4866_v31, %v4863_v32  ;;  %v4957_v31 = vshrl.u32 %v4782_v3, 16 }
 0x231   : > { %7853 = vmatmul.mubr.msk.bf16.vlgmr.msra.gmra.mrb[24].mxu1 %vm1828_vm9, %v8355_v57  ;;  %7748 = vmatprep.mubr.msk.bf16.mxu0 %vm1828_vm9, %v8360_v55  ;;  %v4854_v57 = vrot.slane %v4853_v30, 4  ;;  %v9693_v55 = vld [vmem:[#allocation2 + $0x4c] sm:$0xf] }
 0x232   : > { %7885 = vmatpush3.bf16.msra.mxu1 %v9473_v59  ;;  %7856 = vmatprep.mubr.msk.bf16.mxu1 %vm1828_vm9, %v8357_v50  ;;  %v4822_v59 = vshll.u32 %v9652_v26, 16  ;;  %v4894_v50 = vshll.u32 %v9686_v12, 16  ;;  %v4922_v40 = vshrl.u32 %v9693_v55, 16  ;;  %v4868_v54 = vrot.slane %v4867_v10, 4 }
 0x233   : > { %7886 = vmatprep.subr.bf16.mxu1 %v8367_v20 }
 0x234   : > { %v9662_v23 = vrot.slane %v4822_v59, 5  ;;  %v4887_v59 = vrot.slane %v4885_v53, 4  ;;  %v9714_v37 = vrot.slane %v4894_v50, 5  ;;  %v4924_v34 = vrot.slane %v4922_v40, 4 }
 0x235   : > { %v4873_v32 = vsel %vm8694_vm8, %v4868_v54, %v9684_v46  ;;  %v4970_v53 = vshrl.u32 %v9719_v19, 16  ;;  %v9739_v46 = vrot.slane %v4904_v44, 5 }
 0x236   : > { %7887 = vmatpush3.bf16.msra.mxu1 %v8367_v20  ;;  %v4829_v27 = vor.u32 %v4828_v22, %v9662_v23  ;;  %v4880_v20 = vshll.u32 %v9681_v47, 16  ;;  %v4891_v11 = vor.u32 %v4890_v61, %v4887_v59  ;;  %v4981_v59 = vshrl.u32 %v4785_v48, 16 }
 0x237   : > { %7920 = vmatprep.subr.bf16.mxu1 %v9650_v49  ;;  %v4984_v61 = vshll.u32 %v4785_v48, 16  ;;  %v4972_v40 = vrot.slane %v4970_v53, 4 }
 0x238   : > { %7749 = vmatmul.mubr.msk.bf16.gmra.mrb[36].mxu0 %vm1828_vm9, %v8362_v43  ;;  %v4830_v35 = vrot.slane %v4829_v27, 4  ;;  %v4858_v43 = vrot.slane %v4856_v21, 5  ;;  %v4882_v15 = vrot.slane %v4880_v20, 5  ;;  %v9730_v21 = vrot.slane %v4942_v17, 5  ;;  %v8371_v17 = vld [vmem:[#allocation2 + $0xa8] sm:$0xff]  }
 0x239   : > { %7857 = vmatmul.mubr.msk.bf16.gmra.mrb[28].mxu1 %vm1828_vm9, %v8359_v62  ;;  %v4825_v62 = vsel %vm8694_vm8, %v4820_v56, %v9662_v23  ;;  %v4918_v23 = vshll.u32 %v9693_v55, 16  ;;  %v4960_v56 = vshll.u32 %v4782_v3, 16 }
 0x23a   : > { %7860 = vmatprep.mubr.msk.bf16.mxu1 %vm1828_vm9, %v8361_v7  ;;  %v4835_v60 = vsel %vm8694_vm8, %v4830_v35, %v4834_v45  ;;  %v4898_v7 = vshrl.u32 %v9686_v12, 16  ;;  %v4859_v24 = vsel %vm8694_vm8, %v4854_v57, %v4858_v43  ;;  %v4915_v57 = vor.u32 %v4914_v2, %v4911_v33  ;;  %v9746_v43 = vld [vmem:[#allocation2 + $0x5c] sm:$0x1]  ;;  %v9762_v33 = vld [vmem:[#allocation2 + $0x68] sm:$0x1] }
 0x23b   : > { %v9703_v22 = vcombine.low %v4825_v62, %v4835_v60  ;;  %v9721_v35 = vrot.slane %v4918_v23, 5  ;;  %v9724_v30 = vcombine.low %v4849_v28, %v4859_v24  ;;  %v9736_v60 = vrot.slane %v4891_v11, 4  ;;  %v9744_v62 = vld [vmem:[#allocation2 + $0x70] sm:$0xf]  ;;  %v4788_v24 = vld [vmem:[#allocation2 + $0x78] sm:$0xf] }
 0x23c   : > { %v4900_v27 = vrot.slane %v4898_v7, 4  ;;  %v4962_v7 = vrot.slane %v4960_v56, 5  ;;  %v4949_v28 = vor.u32 %v4948_v58, %v9730_v21  ;;  %v4916_v3 = vrot.slane %v4915_v57, 4 }
 0x23d   : > { %v4925_v10 = vor.u32 %v4924_v34, %v9721_v35  ;;  %v4897_v41 = vsel %vm8694_vm8, %v9736_v60, %v9714_v37  ;;  %v4952_v11 = vshll.u32 %v9746_v43, 16  ;;  %v4986_v34 = vrot.slane %v4984_v61, 5 }
 0x23e   : > { %v4901_v4 = vor.u32 %v4900_v27, %v9714_v37  ;;  %v397_v27 = vld [vmem:[#allocation2 + $0xd4] sm:$0x1]  ;;  %v5005_v37 = vshrl.u32 %v4788_v24, 16  ;;  %v5008_v48 = vshll.u32 %v4788_v24, 16  ;;  %v4976_v57 = vshll.u32 %v9762_v33, 16 }
 0x23f   : > { %v4926_v44 = vrot.slane %v4925_v10, 4  ;;  %v398_v56 = vsel %vm8636_vm4, 0, %v397_v27  ;;  %v9776_v10 = vld [vmem:[#allocation2 + $0x7c] sm:$0xf] }
 0x240   : > { %v4902_v54 = vrot.slane %v4901_v4, 4  ;;  %399 = vst [vmem:[#allocation2 + $0xd4] sm:$0x1] %v398_v56  ;;  %v4954_v4 = vrot.slane %v4952_v11, 5  ;;  %v5581_v56 = vrot.slane %v9668_v51, 5 }
 0x241   : > { %7861 = vmatmul.mubr.msk.bf16.gmra.mrb[0].mxu1 %vm1828_vm9, %v8363_v0  ;;  %v4779_v0 = vld [vmem:[#allocation2 + $0x54] sm:$0xf] }
 0x242   : > { %7864 = vmatprep.mubr.msk.bf16.mxu1 %vm1828_vm9, %v8364_v29  ;;  %v4878_v29 = vrot.slane %v4877_v63, 4  ;;  %v4933_v8 = vshrl.u32 %v4779_v0, 16  ;;  %v4936_v45 = vshll.u32 %v4779_v0, 16  ;;  %v4959_v63 = vrot.slane %v4957_v31, 4  ;;  %v9832_v31 = vld [vmem:[#allocation2 + $0x94] sm:$0xf] }
 0x243   : > { %v4990_v0 = vshll.u32 %v9744_v62, 16 }
 0x244   : > { %v4935_v20 = vrot.slane %v4933_v8, 4  ;;  %v4938_v50 = vrot.slane %v4936_v45, 5  ;;  %v4963_v2 = vor.u32 %v4962_v7, %v4959_v63  ;;  %v4950_v8 = vrot.slane %v4949_v28, 4 }
 0x245   : > { %v9792_v28 = vrot.slane %v5005_v37, 4  ;;  %v9966_v37 = vld [vmem:[#allocation2 + $0xb8] sm:$0xf] }
 0x249   : > { %7865 = vmatmul.mubr.msk.bf16.gmra.mrb[4].mxu1 %vm1828_vm9, %v8365_v9  ;;  %v4966_v9 = vshll.u32 %v9719_v19, 16 }
 0x24a   : > { %7868 = vmatprep.mubr.msk.bf16.mxu1 %vm1828_vm9, %v8366_v5  ;;  %v4883_v5 = vsel %vm8694_vm8, %v4878_v29, %v4882_v15  ;;  %v4928_v15 = vshll.u32 %v9741_v38, 16  ;;  %v4994_v29 = vshrl.u32 %v9744_v62, 16 }
 0x24b   : > { %v9748_v36 = vcombine.low %v4873_v32, %v4883_v5  ;;  %v9751_v23 = vrot.slane %v4966_v9, 5  ;;  %v9766_v32 = vld [vmem:[#allocation2 + $0x74] sm:$0x1]  ;;  %v9770_v9 = vrot.slane %v4990_v0, 5  ;;  %v4907_v5 = vsel %vm8694_vm8, %v4902_v54, %v9739_v46 }
 0x24c   : > { %v4930_v58 = vrot.slane %v4928_v15, 5  ;;  %v4996_v53 = vrot.slane %v4994_v29, 4  ;;  %v5000_v7 = vshll.u32 %v9766_v32, 16  ;;  %v4955_v46 = vsel %vm8694_vm8, %v4950_v8, %v4954_v4  ;;  %v9799_v29 = vld [vmem:[#allocation2 + $0x84] sm:$0xf] }
 0x24d   : > { %v4973_v45 = vor.u32 %v4972_v40, %v9751_v23  ;;  %v8372_v40 = vld [vmem:[#allocation2 + $0xb4] sm:$0xff]   ;;  %v9795_v54 = vrot.slane %v5008_v48, 5  ;;  %v5014_v15 = vshll.u32 %v9776_v10, 16  ;;  %v5018_v0 = vshrl.u32 %v9776_v10, 16 }
 0x24e   : > { %v4997_v24 = vor.u32 %v4996_v53, %v9770_v9  ;;  %v9801_v27 = vcombine.low %v4897_v41, %v4907_v5  ;;  %v9819_v41 = vrot.slane %v5000_v7, 5  ;;  %v5504_v7 = vld [vmem:[#allocation2 + $0x3c] sm:$0xe] }
 0x24f   : > { %v9788_v61 = vrot.slane %v4973_v45, 4  ;;  %v9829_v45 = vld [vmem:[#allocation2 + $0x88] sm:$0xf]  ;;  %v9839_v48 = vrot.slane %v5014_v15, 5  ;;  %v9841_v5 = vrot.slane %v5018_v0, 4  ;;  %v7036_v8 = vrot.slane %v5504_v7, 9 }
 0x250   : > { %v5507_v15 = vld [vmem:[#allocation2 + $0x60] sm:$0xe] }
 0x251   : > { %7869 = vmatmul.mubr.msk.bf16.gmra.mrb[8].mxu1 %vm1828_vm9, %v8368_v1  ;;  %v4939_v1 = vor.u32 %v4938_v50, %v4935_v20  ;;  %v4931_v20 = vsel %vm8694_vm8, %v4926_v44, %v4930_v58  ;;  %v9780_v50 = vrot.slane %v4963_v2, 4  ;;  %v9835_v58 = vrot.slane %v4997_v24, 4  ;;  %v9923_v44 = vld [vmem:[#allocation2 + $0xac] sm:$0xf] }
 0x252   : > { %7872 = vmatprep.mubr.msk.bf16.mxu1 %vm1828_vm9, %v8369_v13  ;;  %v4983_v13 = vrot.slane %v4981_v59, 4  ;;  %v4921_v59 = vsel %vm8694_vm8, %v4916_v3, %v9721_v35  ;;  %v8373_v35 = vld [vmem:[#allocation2 + $0xc0] sm:$0xff]   ;;  %v5588_v24 = vrot.slane %v9686_v12, 5  ;;  %v5506_v12 = vld [vmem:[#allocation2 + $0x54] sm:$0xe] }
 0x253   : > { %v4940_v60 = vrot.slane %v4939_v1, 4  ;;  %v9808_v1 = vrot.slane %v4976_v57, 5  ;;  %v7038_v7 = vrot.slane %v5506_v12, 9  ;;  %v5509_v12 = vld [vmem:[#allocation2 + $0x78] sm:$0xe] }
 0x254   : > { %v4987_v63 = vor.u32 %v4986_v34, %v4983_v13  ;;  %v9821_v13 = vld [vmem:[#allocation2 + $0x90] sm:$0xf] }
 0x255   : > { %v4945_v3 = vsel %vm8694_vm8, %v4940_v60, %v9730_v21  ;;  %v5503_v34 = vld [vmem:[#allocation2 + $0x30] sm:$0xe]  ;;  %v5505_v60 = vld [vmem:[#allocation2 + $0x48] sm:$0xe]  ;;  %v5590_v21 = vrot.slane %v5588_v24, 4 }
 0x256   : > { %v9811_v11 = vcombine.low %v4945_v3, %v4955_v46  ;;  %v9817_v2 = vrot.slane %v4987_v63, 4  ;;  %v7035_v57 = vrot.slane %v5503_v34, 9  ;;  %v5584_v63 = vrot.slane %v9681_v47, 5  ;;  %v9932_v3 = vld [vmem:[#allocation2 + $0xa0] sm:$0xf] }
 0x257   : > { %v5595_v47 = vrot.slane %v9693_v55, 5  ;;  %v7037_v53 = vrot.slane %v5505_v60, 9  ;;  %v9867_v55 = vsel %vm9405_vm15, %v7036_v8, %v5588_v24  ;;  %v5598_v60 = vrot.slane %v9741_v38, 5  ;;  %v5508_v24 = vld [vmem:[#allocation2 + $0x6c] sm:$0xe] }
 0x258   : > { %v9852_v0 = vsel %vm9405_vm15, %v7035_v57, %v5581_v56  ;;  %v5609_v8 = vrot.slane %v9719_v19, 5  ;;  %v5612_v19 = vrot.slane %v9762_v33, 5  ;;  %v5511_v33 = vld [vmem:[#allocation2 + $0x90] sm:$0xe]  ;;  %v9957_v46 = vld [vmem:[#allocation2 + $0xc4] sm:$0xf] }
 0x259   : > { %7873 = vmatmul.mubr.msk.bf16.gmra.mrb[12].mxu1 %vm1828_vm9, %v8370_v39  ;;  %v9790_v39 = vld [vmem:[#allocation2 + $0x80] sm:$0x1]  ;;  %v5597_v57 = vrot.slane %v5595_v47, 4 }
 0x25a   : > { %7876 = vmatprep.mubr.msk.bf16.mxu1 %vm1828_vm9, %v8371_v17  ;;  %v9803_v17 = vcombine.low %v4921_v59, %v4931_v20  ;;  %v5583_v20 = vrot.slane %v5581_v56, 4  ;;  %v8374_v59 = vld [vmem:[#allocation2 + $0xcc] sm:$0xff]   ;;  %v5591_v56 = vrot.slane %v9708_v6, 5  ;;  %v5626_v34 = vrot.slane %v9790_v39, 5 }
 0x25b   : > { %v9887_v38 = vsel %vm9405_vm15, %v5597_v57, %v5598_v60  ;;  %v5616_v60 = vrot.slane %v9744_v62, 5  ;;  %v8376_v62 = vld [vmem:[%s10504_s2 + $0x88] sm:$0xff]  }
 0x25c   : > { %v9879_v6 = vsel %vm9405_vm15, %v5590_v21, %v5591_v56 }
 0x261   : > { %7877 = vmatmul.mubr.msk.bf16.gmra.mrb[16].mxu1 %vm1828_vm9, %v8372_v40  ;;  %v9949_v40 = vld [vmem:[#allocation2 + $0xb0] sm:$0x1] }
 0x262   : > { %7880 = vmatprep.mubr.msk.bf16.mxu1 %vm1828_vm9, %v8373_v35  ;;  %v9856_v35 = vsel %vm9405_vm15, %v5583_v20, %v5584_v63  ;;  %v9871_v20 = vsel %vm9405_vm15, %v7037_v53, %v5595_v47  ;;  %v5602_v63 = vrot.slane %v9701_v14, 5  ;;  %v7039_v47 = vrot.slane %v5507_v15, 9  ;;  %v9905_v53 = vld [vmem:[#allocation2 + $0x8c] sm:$0x1] }
 0x263   : > { %v7040_v15 = vrot.slane %v5508_v24, 9  ;;  %v10589_v42 = vcombine.low %v9871_v20, %v9887_v38 }
 0x264   : > { %v5604_v14 = vrot.slane %v5602_v63, 4  ;;  %v9893_v21 = vsel %vm9405_vm15, %v7038_v7, %v5602_v63  ;;  %v9902_v57 = vsel %vm9405_vm15, %v7039_v47, %v5609_v8  ;;  %v9907_v63 = vld [vmem:[#allocation2 + $0x98] sm:$0x1]  ;;  %v7041_v47 = vrot.slane %v5509_v12, 9 }
 0x265   : > { %10560 = vst [vmem:[#allocation8_spill] sm:$0xff] %v9902_v57  ;;  %v5640_v4 = vrot.slane %v9907_v63, 5 }
 0x269   : > { %7881 = vmatmul.mubr.msk.bf16.gmra.mrb[20].mxu1 %vm1828_vm9, %v8374_v59  ;;  %v5605_v59 = vrot.slane %v9746_v43, 5  ;;  %v5611_v43 = vrot.slane %v5609_v8, 4  ;;  %v5623_v8 = vrot.slane %v9776_v10, 5 }
 0x26a   : > { %7888 = vmatprep.mubr.msk.bf16.mxu1 %vm1828_vm9, %v9703_v22  ;;  %v5510_v22 = vld [vmem:[#allocation2 + $0x84] sm:$0xe] }
 0x26b   : > { %v9898_v56 = vsel %vm9405_vm15, %v5604_v14, %v5605_v59  ;;  %v9913_v7 = vsel %vm9405_vm15, %v5611_v43, %v5612_v19  ;;  %v5619_v59 = vrot.slane %v9766_v32, 5  ;;  %v5618_v14 = vrot.slane %v5616_v60, 4 }
 0x26c   : > { %10561 = vst [vmem:[#allocation9_spill] sm:$0xff] %v9913_v7  ;;  %v9927_v43 = vsel %vm9405_vm15, %v7040_v15, %v5616_v60  ;;  %v5625_v32 = vrot.slane %v5623_v8, 4  ;;  %v7042_v10 = vrot.slane %v5510_v22, 9  ;;  %v5630_v19 = vrot.slane %v9829_v45, 5  ;;  %v5512_v22 = vld [vmem:[#allocation2 + $0x9c] sm:$0xe] }
 0x26d   : > { %10562 = vst [vmem:[#allocation11_spill] sm:$0xff] %v9927_v43  ;;  %v9936_v12 = vsel %vm9405_vm15, %v5618_v14, %v5619_v59  ;;  %v9940_v24 = vsel %vm9405_vm15, %v7041_v47, %v5623_v8  ;;  %v5633_v15 = vrot.slane %v9905_v53, 5  ;;  %v5637_v60 = vrot.slane %v9832_v31, 5  ;;  %v5513_v59 = vld [vmem:[#allocation2 + $0xa8] sm:$0xe] }
 0x26e   : > { %10563 = vst [vmem:[#allocation10_spill] sm:$0xff] %v9936_v12  ;;  %10564 = vst [vmem:[#allocation12_spill] sm:$0xff] %v9940_v24  ;;  %v9955_v8 = vsel %vm9405_vm15, %v5625_v32, %v5626_v34  ;;  %v5632_v14 = vrot.slane %v5630_v19, 4  ;;  %v7043_v47 = vrot.slane %v5511_v33, 9  ;;  %v7044_v32 = vrot.slane %v5512_v22, 9 }
 0x26f   : > { %10565 = vst [vmem:[#allocation6_spill] sm:$0xff] %v9955_v8  ;;  %v5639_v51 = vrot.slane %v5637_v60, 4  ;;  %v5514_v8 = vld [vmem:[#allocation2 + $0xb4] sm:$0xe]  ;;  %v5654_v43 = vrot.slane %v9949_v40, 5  ;;  %v10590_v16 = vcombine.low %v9893_v21, %v9898_v56 }
 0x270   : > { %v9970_v34 = vsel %vm9405_vm15, %v5632_v14, %v5633_v15  ;;  %v9974_v33 = vsel %vm9405_vm15, %v7043_v47, %v5637_v60  ;;  %v5651_v60 = vrot.slane %v9923_v44, 5  ;;  %v7045_v47 = vrot.slane %v5513_v59, 9  ;;  %v5515_v7 = vld [vmem:[#allocation2 + $0xc0] sm:$0xe] }
 0x271   : > { %7889 = vmatmul.mubr.msk.bf16.vlgmr.msra.gmra.mrb[24].mxu1 %vm1828_vm9, %v9724_v30  ;;  %v9947_v30 = vld [vmem:[#allocation2 + $0xa4] sm:$0x1]  ;;  %10567 = vst [vmem:[#allocation13_spill] sm:$0xff] %v9970_v34  ;;  %10568 = vst [vmem:[#allocation14_spill] sm:$0xff] %v9974_v33  ;;  %v9985_v12 = vsel %vm9405_vm15, %v5639_v51, %v5640_v4  ;;  %v7046_v4 = vrot.slane %v5514_v8, 9  ;;  %v5658_v51 = vrot.slane %v9966_v37, 5 }
 0x272   : > { %7921 = vmatpush3.bf16.msra.mxu1 %v9650_v49  ;;  %7892 = vmatprep.mubr.msk.bf16.mxu1 %vm1828_vm9, %v9748_v36  ;;  %v9963_v36 = vsel %vm9405_vm15, %v7042_v10, %v5630_v19  ;;  %v5644_v49 = vrot.slane %v9932_v3, 5  ;;  %v9977_v10 = vld [vmem:[#allocation2 + $0xbc] sm:$0x1]  ;;  %v9979_v19 = vld [vmem:[#allocation2 + $0xc8] sm:$0x1]  ;;  %10569 = vst [vmem:[#allocation15_spill] sm:$0xff] %v9985_v12  ;;  %v10003_v22 = vsel %vm9405_vm15, %v7045_v47, %v5651_v60 }
 0x273   : > { %7922 = vmatprep.subr.bf16.mxu1 %v8376_v62  ;;  %10566 = vst [vmem:[#allocation7_spill] sm:$0xff] %v9963_v36  ;;  %v5647_v15 = vrot.slane %v9947_v30, 5  ;;  %v5653_v34 = vrot.slane %v5651_v60, 4  ;;  %v5516_v36 = vld [vmem:[#allocation2 + $0xcc] sm:$0xe]  ;;  %v5661_v59 = vrot.slane %v9977_v10, 5  ;;  %v10026_v8 = vsel %vm9405_vm15, %v7046_v4, %v5658_v51 }
 0x274   : > { %v5646_v14 = vrot.slane %v5644_v49, 4  ;;  %v9994_v24 = vsel %vm9405_vm15, %v7044_v32, %v5644_v49  ;;  %v5665_v12 = vrot.slane %v9957_v46, 5  ;;  %v10009_v49 = vld [vmem:[#allocation2 + $0xd0] sm:$0xf]  ;;  %v10019_v60 = vld [vmem:[#allocation2 + $0xd4] sm:$0x1] }
 0x275   : > { %v10015_v32 = vsel %vm9405_vm15, %v5653_v34, %v5654_v43  ;;  %v5668_v33 = vrot.slane %v9979_v19, 5  ;;  %v7048_v57 = vrot.slane %v5516_v36, 9  ;;  %10571 = vst [vmem:[#allocation17_spill] sm:$0xff] %v10026_v8  ;;  %v10573_v34 = vshrl.u32 %v9799_v29, 16 }
 0x276   : > { %7923 = vmatpush3.bf16.msra.mxu1 %v8376_v62  ;;  %v9999_v62 = vsel %vm9405_vm15, %v5646_v14, %v5647_v15  ;;  %v5660_v15 = vrot.slane %v5658_v51, 4  ;;  %v7047_v14 = vrot.slane %v5515_v7, 9  ;;  %v5672_v7 = vrot.slane %v10009_v49, 5 }
 0x277   : > { %10570 = vst [vmem:[#allocation16_spill] sm:$0xff] %v9999_v62  ;;  %v5031_v62 = vrot.slane %v10573_v34, 4  ;;  %v5021_v51 = vor.u32 %v9841_v5, %v9839_v48  ;;  %v10576_v47 = vshll.u32 %v9799_v29, 16  ;;  %v10579_v5 = vshrl.u32 %v9821_v13, 16 }
 0x278   : > { %v10030_v43 = vsel %vm9405_vm15, %v5660_v15, %v5661_v59  ;;  %v10040_v36 = vsel %vm9405_vm15, %v7047_v14, %v5665_v12  ;;  %v10052_v15 = vsel %vm9405_vm15, %v7048_v57, %v5672_v7  ;;  %v5674_v34 = vrot.slane %v5672_v7, 4  ;;  %v4797_v7 = vld [vmem:[#allocation2 + $0x9c] sm:$0xf] }
 0x279   : > { %7893 = vmatmul.mubr.msk.bf16.gmra.mrb[28].mxu1 %vm1828_vm9, %v9801_v27  ;;  %v5667_v27 = vrot.slane %v5665_v12, 4  ;;  %10572 = vst [vmem:[#allocation18_spill] sm:$0xff] %v10030_v43  ;;  %10574 = vst [vmem:[#allocation19_spill] sm:$0xff] %v10040_v36  ;;  %v5034_v43 = vrot.slane %v10576_v47, 5  ;;  %v10577_v12 = vshll.u32 %v9829_v45, 16  ;;  %v5055_v8 = vrot.slane %v10579_v5, 4 }
 0x27a   : > { %7896 = vmatprep.mubr.msk.bf16.mxu1 %vm1828_vm9, %v9803_v17  ;;  %v5675_v17 = vrot.slane %v10019_v60, 5  ;;  %v10580_v59 = vshll.u32 %v9821_v13, 16  ;;  %v10581_v57 = vshll.u32 %v9832_v31, 16  ;;  %v10582_v29 = vshrl.u32 %v9832_v31, 16  ;;  %v10600_v38 = vld [vmem:[#allocation7_spill] sm:$0xff]  ;;  %v10603_v56 = vld [vmem:[#allocation14_spill] sm:$0xff] }
 0x27b   : > { %v10044_v4 = vsel %vm9405_vm15, %v5667_v27, %v5668_v33  ;;  %v10058_v14 = vrot.slane %v10577_v12, 5  ;;  %v10578_v33 = vshrl.u32 %v9829_v45, 16  ;;  %v10583_v45 = vsel %vm8694_vm8, %v9788_v61, %v9808_v1 }
 0x27c   : > { %10575 = vst [vmem:[#allocation20_spill] sm:$0xff] %v10044_v4  ;;  %v5058_v4 = vrot.slane %v10580_v59, 5  ;;  %v10068_v36 = vrot.slane %v10581_v57, 5  ;;  %v5068_v47 = vrot.slane %v10582_v29, 4  ;;  %v10074_v12 = vsel %vm9405_vm15, %v5674_v34, %v5675_v17 }
 0x27d   : > { %v5044_v27 = vrot.slane %v10578_v33, 4  ;;  %v10584_v13 = vsel %vm8694_vm8, %v9780_v50, %v9751_v23  ;;  %v5003_v31 = vsel %vm8694_vm8, %v9835_v58, %v9819_v41  ;;  %v10585_v17 = vor.u32 %v9795_v54, %v9792_v28 }
 0x27e   : > { %v7005_v59 = vcombine.low %v10584_v13, %v10583_v45  ;;  %v7064_v33 = vcombine.low %v10052_v15, %v10074_v12  ;;  %v4993_v23 = vsel %vm8694_vm8, %v9817_v2, %v9770_v9  ;;  %v5022_v50 = vrot.slane %v5021_v51, 4 }
 0x27f   : > { %v5012_v34 = vrot.slane %v10585_v17, 4  ;;  %v5035_v61 = vor.u32 %v5034_v43, %v5031_v62  ;;  %v5045_v1 = vor.u32 %v5044_v27, %v10058_v14  ;;  %v5077_v41 = vshrl.u32 %v4797_v7, 16  ;;  %v4800_v43 = vld [vmem:[#allocation2 + $0xa8] sm:$0xf] }
 0x280   : > { %v5080_v28 = vshll.u32 %v4797_v7, 16  ;;  %v7006_v54 = vcombine.low %v4993_v23, %v5003_v31  ;;  %v10586_v58 = vshll.u32 %v9790_v39, 16  ;;  %v5059_v57 = vor.u32 %v5058_v4, %v5055_v8 }
 0x281   : > { %7897 = vmatmul.mubr.msk.bf16.gmra.mrb[0].mxu1 %vm1828_vm9, %v9811_v11  ;;  %v5069_v11 = vor.u32 %v5068_v47, %v10068_v36  ;;  %v5017_v29 = vsel %vm8694_vm8, %v5012_v34, %v9839_v48  ;;  %v5048_v9 = vshll.u32 %v9905_v53, 16  ;;  %v5086_v2 = vshll.u32 %v9932_v3, 16 }
 0x282   : > { %7900 = vmatprep.mubr.msk.bf16.mxu1 %vm1828_vm9, %v7005_v59  ;;  %v5026_v5 = vrot.slane %v10586_v58, 5  ;;  %v5090_v62 = vshrl.u32 %v9932_v3, 16  ;;  %v5072_v39 = vshll.u32 %v9907_v63, 16  ;;  %v5110_v8 = vshll.u32 %v9923_v44, 16 }
 0x283   : > { %v5114_v4 = vshrl.u32 %v9923_v44, 16  ;;  %v5036_v27 = vrot.slane %v5035_v61, 4  ;;  %v5046_v47 = vrot.slane %v5045_v1, 4  ;;  %v5079_v7 = vrot.slane %v5077_v41, 4  ;;  %v4803_v44 = vld [vmem:[#allocation2 + $0xb4] sm:$0xf] }
 0x284   : > { %v5027_v51 = vsel %vm8694_vm8, %v5022_v50, %v5026_v5  ;;  %v5082_v48 = vrot.slane %v5080_v28, 5  ;;  %v5060_v45 = vrot.slane %v5059_v57, 4  ;;  %v5070_v53 = vrot.slane %v5069_v11, 4 }
 0x285   : > { %v5101_v13 = vshrl.u32 %v4800_v43, 16  ;;  %v5104_v59 = vshll.u32 %v4800_v43, 16  ;;  %v7007_v31 = vcombine.low %v5017_v29, %v5027_v51  ;;  %v5050_v3 = vrot.slane %v5048_v9, 5 }
 0x286   : > { %v10117_v17 = vrot.slane %v5086_v2, 5  ;;  %v5092_v34 = vrot.slane %v5090_v62, 4  ;;  %v5074_v63 = vrot.slane %v5072_v39, 5  ;;  %v10120_v23 = vrot.slane %v5110_v8, 5  ;;  %v4806_v2 = vld [vmem:[#allocation2 + $0xc0] sm:$0xf] }
 0x287   : > { %v5116_v50 = vrot.slane %v5114_v4, 4  ;;  %v5041_v61 = vsel %vm8694_vm8, %v5036_v27, %v10058_v14  ;;  %v5051_v1 = vsel %vm8694_vm8, %v5046_v47, %v5050_v3  ;;  %v5083_v41 = vor.u32 %v5082_v48, %v5079_v7 }
 0x288   : > { %v5096_v28 = vshll.u32 %v9947_v30, 16  ;;  %v5075_v58 = vsel %vm8694_vm8, %v5070_v53, %v5074_v63  ;;  %v5103_v5 = vrot.slane %v5101_v13, 4  ;;  %v5106_v57 = vrot.slane %v5104_v59, 5 }
 0x289   : > { %7901 = vmatmul.mubr.msk.bf16.gmra.mrb[4].mxu1 %vm1828_vm9, %v7006_v54  ;;  %v5065_v54 = vsel %vm8694_vm8, %v5060_v45, %v10068_v36  ;;  %v5093_v11 = vor.u32 %v5092_v34, %v10117_v17  ;;  %v5125_v29 = vshrl.u32 %v4803_v44, 16  ;;  %v5134_v14 = vshll.u32 %v9966_v37, 16  ;;  %v4809_v45 = vld [vmem:[#allocation2 + $0xcc] sm:$0xf] }
 0x28a   : > { %7904 = vmatprep.mubr.msk.bf16.mxu1 %vm1828_vm9, %v7007_v31  ;;  %v5138_v9 = vshrl.u32 %v9966_v37, 16  ;;  %v5117_v62 = vor.u32 %v5116_v50, %v10120_v23  ;;  %v5128_v30 = vshll.u32 %v4803_v44, 16  ;;  %v5158_v43 = vshll.u32 %v9957_v46, 16  ;;  %v8377_v37 = vld [vmem:[%s10505_s3] sm:$0xff]  }
 0x28b   : > { %v5162_v36 = vshrl.u32 %v9957_v46, 16  ;;  %v7008_v51 = vcombine.low %v5041_v61, %v5051_v1  ;;  %v7009_v39 = vcombine.low %v5065_v54, %v5075_v58  ;;  %v5084_v8 = vrot.slane %v5083_v41, 4  ;;  %7956 = vmatprep.subr.bf16.mxu0 %v8377_v37 }
 0x28c   : > { %v5098_v4 = vrot.slane %v5096_v28, 5  ;;  %v5107_v27 = vor.u32 %v5106_v57, %v5103_v5  ;;  %v5120_v47 = vshll.u32 %v9949_v40, 16  ;;  %v5149_v7 = vshrl.u32 %v4806_v2, 16  ;;  %7957 = vmatpush3.bf16.msra.mxu0 %v8377_v37 }
 0x28d   : > { %v5152_v48 = vshll.u32 %v4806_v2, 16  ;;  %v5094_v53 = vrot.slane %v5093_v11, 4  ;;  %v5127_v13 = vrot.slane %v5125_v29, 4  ;;  %v5136_v59 = vrot.slane %v5134_v14, 5 }
 0x28e   : > { %v5140_v31 = vrot.slane %v5138_v9, 4  ;;  %v5118_v46 = vrot.slane %v5117_v62, 4  ;;  %v5130_v3 = vrot.slane %v5128_v30, 5  ;;  %v5160_v34 = vrot.slane %v5158_v43, 5 }
 0x28f   : > { %v5164_v63 = vrot.slane %v5162_v36, 4  ;;  %v5173_v40 = vshrl.u32 %v4809_v45, 16  ;;  %v5176_v50 = vshll.u32 %v4809_v45, 16  ;;  %v5182_v44 = vshll.u32 %v10009_v49, 16 }
 0x290   : > { %v5186_v61 = vshrl.u32 %v10009_v49, 16  ;;  %v5108_v1 = vrot.slane %v5107_v27, 4  ;;  %v5122_v41 = vrot.slane %v5120_v47, 5  ;;  %v5151_v28 = vrot.slane %v5149_v7, 4 }
 0x291   : > { %7905 = vmatmul.mubr.msk.bf16.gmra.mrb[8].mxu1 %vm1828_vm9, %v7008_v51  ;;  %v5154_v54 = vrot.slane %v5152_v48, 5  ;;  %v5089_v58 = vsel %vm8694_vm8, %v5084_v8, %v10117_v17  ;;  %v5099_v5 = vsel %vm8694_vm8, %v5094_v53, %v5098_v4  ;;  %v5141_v57 = vor.u32 %v5140_v31, %v5136_v59 }
 0x292   : > { %7908 = vmatprep.mubr.msk.bf16.mxu1 %vm1828_vm9, %v7009_v39  ;;  %v5123_v11 = vsel %vm8694_vm8, %v5118_v46, %v5122_v41  ;;  %v5131_v29 = vor.u32 %v5130_v3, %v5127_v13  ;;  %v5144_v14 = vshll.u32 %v9977_v10, 16  ;;  %v5165_v49 = vor.u32 %v5164_v63, %v5160_v34 }
 0x293   : > { %v5175_v9 = vrot.slane %v5173_v40, 4  ;;  %v5178_v2 = vrot.slane %v5176_v50, 5  ;;  %v5184_v62 = vrot.slane %v5182_v44, 5  ;;  %v5188_v30 = vrot.slane %v5186_v61, 4 }
 0x294   : > { %v7010_v43 = vcombine.low %v5089_v58, %v5099_v5  ;;  %v5113_v17 = vsel %vm8694_vm8, %v5108_v1, %v10120_v23  ;;  %v5155_v36 = vor.u32 %v5154_v54, %v5151_v28  ;;  %v5168_v51 = vshll.u32 %v9979_v19, 16 }
 0x295   : > { %v7011_v39 = vcombine.low %v5113_v17, %v5123_v11  ;;  %v5142_v8 = vrot.slane %v5141_v57, 4  ;;  %v5146_v4 = vrot.slane %v5144_v14, 5  ;;  %v5166_v27 = vrot.slane %v5165_v49, 4  ;;  %v5502_v57 = vld [vmem:[#allocation2 + $0x24] sm:$0xe] }
 0x296   : > { %v5132_v10 = vrot.slane %v5131_v29, 4  ;;  %v5179_v47 = vor.u32 %v5178_v2, %v5175_v9  ;;  %v5189_v7 = vor.u32 %v5188_v30, %v5184_v62  ;;  %v5192_v48 = vshll.u32 %v10019_v60, 16  ;;  %v10591_v9 = vld [vmem:[#allocation8_spill] sm:$0xff]  ;;  %v10592_v2 = vld [vmem:[#allocation9_spill] sm:$0xff]  ;;  %v10598_v30 = vld [vmem:[#allocation6_spill] sm:$0xff] }
 0x297   : > { %v5156_v45 = vrot.slane %v5155_v36, 4  ;;  %v5170_v37 = vrot.slane %v5168_v51, 5  ;;  %v5147_v23 = vsel %vm8694_vm8, %v5142_v8, %v5146_v4  ;;  %v5567_v53 = vrot.slane %v9652_v26, 5  ;;  %v10604_v17 = vld [vmem:[#allocation15_spill] sm:$0xff] }
 0x298   : > { %v5137_v13 = vsel %vm8694_vm8, %v5132_v10, %v5136_v59  ;;  %v5180_v31 = vrot.slane %v5179_v47, 4  ;;  %v5190_v46 = vrot.slane %v5189_v7, 4  ;;  %v5194_v3 = vrot.slane %v5192_v48, 5  ;;  %v5501_v59 = vld [vmem:[#allocation2 + $0x18] sm:$0xe] }
 0x299   : > { %7909 = vmatmul.mubr.msk.bf16.gmra.mrb[12].mxu1 %vm1828_vm9, %v7010_v43  ;;  %v5171_v19 = vsel %vm8694_vm8, %v5166_v27, %v5170_v37  ;;  %v7012_v63 = vcombine.low %v5137_v13, %v5147_v23  ;;  %v5161_v60 = vsel %vm8694_vm8, %v5156_v45, %v5160_v34  ;;  %v5569_v50 = vrot.slane %v5567_v53, 4  ;;  %v10601_v43 = vld [vmem:[#allocation13_spill] sm:$0xff]  ;;  %v10606_v27 = vld [vmem:[#allocation16_spill] sm:$0xff] }
 0x29a   : > { %7912 = vmatprep.mubr.msk.bf16.mxu1 %vm1828_vm9, %v7011_v39  ;;  %v7013_v40 = vcombine.low %v5161_v60, %v5171_v19  ;;  %v5185_v44 = vsel %vm8694_vm8, %v5180_v31, %v5184_v62  ;;  %v5195_v26 = vsel %vm8694_vm8, %v5190_v46, %v5194_v3  ;;  %v5570_v61 = vrot.slane %v9664_v52, 5  ;;  %v10595_v62 = vld [vmem:[#allocation10_spill] sm:$0xff]  ;;  %v10609_v23 = vld [vmem:[#allocation17_spill] sm:$0xff]  ;;  %v10613_v13 = vld [vmem:[#allocation20_spill] sm:$0xff] }
 0x29b   : > { %v5574_v1 = vrot.slane %v9660_v18, 5  ;;  %v7014_v41 = vcombine.low %v5185_v44, %v5195_v26  ;;  %v7033_v28 = vrot.slane %v5501_v59, 9  ;;  %v7034_v52 = vrot.slane %v5502_v57, 9  ;;  %v10610_v19 = vld [vmem:[#allocation18_spill] sm:$0xff] }
 0x29c   : > { %v5571_v34 = vsel %vm9405_vm15, %v5569_v50, %v5570_v61  ;;  %v10587_v14 = vcombine.low %v9852_v0, %v9856_v35  ;;  %v10588_v49 = vcombine.low %v9867_v55, %v9879_v6  ;;  %v10593_v0 = vcombine.low %v10591_v9, %v10592_v2  ;;  %v10594_v35 = vld [vmem:[#allocation11_spill] sm:$0xff]  ;;  %v10597_v6 = vld [vmem:[#allocation12_spill] sm:$0xff] }
 0x29d   : > { %v5568_v54 = vsel %vm9405_vm15, %v7033_v28, %v5567_v53  ;;  %v5576_v5 = vrot.slane %v5574_v1, 4  ;;  %v5575_v11 = vsel %vm9405_vm15, %v7034_v52, %v5574_v1  ;;  %v10596_v55 = vcombine.low %v10594_v35, %v10595_v62 }
 0x29e   : > { %v7049_v58 = vcombine.low %v5568_v54, %v5571_v34  ;;  %v10599_v20 = vcombine.low %v10597_v6, %v10598_v30  ;;  %v10602_v21 = vcombine.low %v10600_v38, %v10601_v43  ;;  %v10605_v36 = vcombine.low %v10603_v56, %v10604_v17 }
 0x29f   : > { %v5578_v18 = vsel %vm9405_vm15, %v5576_v5, %v5577_v25  ;;  %v10607_v10 = vcombine.low %v9994_v24, %v10606_v27  ;;  %v10608_v47 = vcombine.low %v10003_v22, %v10015_v32  ;;  %v10611_v53 = vcombine.low %v10609_v23, %v10610_v19  ;;  %v10612_v24 = vld [vmem:[#allocation19_spill] sm:$0xff]  ;;  %v8378_v25 = vld [vmem:[%s10505_s3 + $0x8] sm:$0xff]  }
 0x2a0   : > { %v7050_v29 = vcombine.low %v5575_v11, %v5578_v18  ;;  %v10614_v31 = vcombine.low %v10612_v24, %v10613_v13  ;;  %7958 = vmatprep.subr.bf16.mxu0 %v8378_v25  ;;  %v10302_v11 = vld [vmem:[%s10507_s5] ss:$0 sm:$0xff] }
 0x2a1   : > { %7913 = vmatmul.mubr.msk.bf16.gmra.mrb[16].mxu1 %vm1828_vm9, %v7012_v63  ;;  %7959 = vmatpush3.bf16.msra.mxu0 %v8378_v25 }
 0x2a2   : > { %7916 = vmatprep.mubr.msk.bf16.mxu1 %vm1828_vm9, %v7013_v40 }
 0x2a9   : > { %7917 = vmatmul.mubr.msk.bf16.gmra.mrb[20].mxu1 %vm1828_vm9, %v7014_v41 }
 0x2aa   : > { %7924 = vmatprep.mubr.msk.bf16.mxu1 %vm1828_vm9, %v7049_v58 }
 0x2b1   : > { %7925 = vmatmul.mubr.msk.bf16.vlgmr.msra.gmra.mrb[24].mxu1 %vm1828_vm9, %v7050_v29 }
 0x2b2   : > { %7928 = vmatprep.mubr.msk.bf16.mxu1 %vm1828_vm9, %v10587_v14 }
 0x2b9   : > { %7929 = vmatmul.mubr.msk.bf16.gmra.mrb[28].mxu1 %vm1828_vm9, %v10588_v49 }
 0x2ba   : > { %7932 = vmatprep.mubr.msk.bf16.mxu1 %vm1828_vm9, %v10589_v42 }
 0x2c1   : > { %7933 = vmatmul.mubr.msk.bf16.gmra.mrb[0].mxu1 %vm1828_vm9, %v10590_v16 }
 0x2c2   : > { %7936 = vmatprep.mubr.msk.bf16.mxu1 %vm1828_vm9, %v10593_v0 }
 0x2c9   : > { %7937 = vmatmul.mubr.msk.bf16.gmra.mrb[4].mxu1 %vm1828_vm9, %v10596_v55 }
 0x2ca   : > { %7940 = vmatprep.mubr.msk.bf16.mxu1 %vm1828_vm9, %v10599_v20 }
 0x2d1   : > { %7941 = vmatmul.mubr.msk.bf16.gmra.mrb[8].mxu1 %vm1828_vm9, %v10602_v21 }
 0x2d2   : > { %7944 = vmatprep.mubr.msk.bf16.mxu1 %vm1828_vm9, %v10605_v36 }
 0x2d3   : > { %v10228_v51 = vpop.f32.mrb[40].mxu0 }
 0x2d4   : > { %v10230_v39 = vpop.f32.mrb[41].mxu0 }
 0x2d5   : > { %v10232_v8 = vpop.f32.mrb[42].mxu0 }
 0x2d6   : > { %v10234_v4 = vpop.f32.mrb[43].mxu0 }
 0x2d9   : > { %7945 = vmatmul.mubr.msk.bf16.gmra.mrb[12].mxu1 %vm1828_vm9, %v10607_v10 }
 0x2da   : > { %7948 = vmatprep.mubr.msk.bf16.mxu1 %vm1828_vm9, %v10608_v47 }
 0x2db   : > { %v10244_v7 = vpop.f32.mrb[44].mxu0 }
 0x2dc   : > { %v10246_v48 = vpop.f32.mrb[45].mxu0 }
 0x2dd   : > { %v10248_v45 = vpop.f32.mrb[46].mxu0 }
 0x2de   : > { %v10250_v37 = vpop.f32.mrb[47].mxu0 }
 0x2e1   : > { %7949 = vmatmul.mubr.msk.bf16.gmra.mrb[16].mxu1 %vm1828_vm9, %v10611_v53 }
 0x2e2   : > { %7952 = vmatprep.mubr.msk.bf16.mxu1 %vm1828_vm9, %v10614_v31 }
 0x2e3   : > { %v10260_v22 = vpop.f32.mrb[48].mxu0 }
 0x2e4   : > { %v10262_v32 = vpop.f32.mrb[49].mxu0 }
 0x2e5   : > { %v10264_v46 = vpop.f32.mrb[50].mxu0 }
 0x2e6   : > { %v10266_v3 = vpop.f32.mrb[51].mxu0 }
 0x2e9   : > { %7953 = vmatmul.mubr.msk.bf16.gmra.mrb[20].mxu1 %vm1828_vm9, %v7064_v33 }
 0x2eb   : > { %v10272_v63 = vpop.f32.mrb[52].mxu0 }
 0x2ec   : > { %v10274_v60 = vpop.f32.mrb[53].mxu0 }
 0x2ed   : > { %v10276_v40 = vpop.f32.mrb[54].mxu0 }
 0x2ee   : > { %v10278_v50 = vpop.f32.mrb[55].mxu0 }
 0x2f3   : > { %v10280_v44 = vpop.f32.mrb[56].mxu0 }
 0x2f4   : > { %v10282_v26 = vpop.f32.mrb[57].mxu0 }
 0x2f5   : > { %v10284_v59 = vpop.f32.mrb[58].mxu0 }
 0x2f6   : > { %v10286_v61 = vpop.f32.mrb[59].mxu0 }
 0x2fb   : > { %v10288_v1 = vpop.f32.mrb[60].mxu0 }
 0x2fc   : > { %v10290_v15 = vpop.f32.mrb[61].mxu0 }
 0x2fd   : > { %v10292_v12 = vpop.f32.mrb[62].mxu0 }
 0x2fe   : > { %v10294_v33 = vpop.f32.mrb[63].mxu0 }
 0x303   : > { %v7746_v41 = vpop.f32.mrb[32].mxu0 }
 0x304   : > { %v3017_v28 = vpop.f32.mrb[33].mxu0 }
 0x305   : > { %v7747_v34 = vpop.f32.mrb[34].mxu0 }
 0x306   : > { %v3020_v54 = vpop.f32.mrb[35].mxu0 }
 0x30b   : > { %v7750_v58 = vpop.f32.mrb[36].mxu0 }
 0x30c   : > { %v3033_v5 = vpop.f32.mrb[37].mxu0 }
 0x30d   : > { %v7751_v57 = vpop.f32.mrb[38].mxu0 }
 0x30e   : > { %v3036_v52 = vpop.f32.mrb[39].mxu0 }
 0x384   : > { %v7926_v18 = vpop.f32.mrb[24].mxu1 }
 0x385   : > { %v7996_v29 = vadd.f32 %v7926_v18, %v7746_v41  ;;  %v5823_v14 = vpop.f32.mrb[25].mxu1 }
 0x386   : > { %v7997_v49 = vadd.f32 %v5823_v14, %v3017_v28  ;;  %v7927_v42 = vpop.f32.mrb[26].mxu1 }
 0x387   : > { %v5991_v16 = vadd.f32 %v7996_v29, %v10302_v11  ;;  %v7998_v9 = vadd.f32 %v7927_v42, %v7747_v34  ;;  %v5826_v2 = vpop.f32.mrb[27].mxu1 }
 0x388   : > { %v5989_v0 = vadd.f32 %v7997_v49, %v10302_v11  ;;  %v7999_v35 = vadd.f32 %v5826_v2, %v3020_v54 }
 0x389   : > { %v5992_v62 = vadd.f32 %v7998_v9, %v10302_v11  ;;  %v6023_v6 = vmax.f32 %v5991_v16, 0.0 }
 0x38a   : > { %v5990_v55 = vadd.f32 %v7999_v35, %v10302_v11  ;;  %v6021_v20 = vmax.f32 %v5989_v0, 0.0 }
 0x38b   : > { %v6024_v30 = vmax.f32 %v5992_v62, 0.0 }
 0x38c   : > { %v6022_v38 = vmax.f32 %v5990_v55, 0.0  ;;  %v7930_v43 = vpop.f32.mrb[28].mxu1 }
 0x38d   : > { %v6054_v21 = vpack.c.bf16 %v6024_v30, %v6023_v6  ;;  %v8000_v56 = vadd.f32 %v7930_v43, %v7750_v58  ;;  %v5839_v17 = vpop.f32.mrb[29].mxu1 }
 0x38e   : > { %v6053_v36 = vpack.c.bf16 %v6022_v38, %v6021_v20  ;;  %v8001_v27 = vadd.f32 %v5839_v17, %v3033_v5  ;;  %v7931_v10 = vpop.f32.mrb[30].mxu1 }
 0x38f   : > { %v5995_v47 = vadd.f32 %v8000_v56, %v10302_v11  ;;  %v8002_v23 = vadd.f32 %v7931_v10, %v7751_v57  ;;  %v5842_v19 = vpop.f32.mrb[31].mxu1 }
 0x390   : > { %v5993_v53 = vadd.f32 %v8001_v27, %v10302_v11  ;;  %v8003_v24 = vadd.f32 %v5842_v19, %v3036_v52  ;;  %7960 = vmatprep.mubr.msk.bf16.mxu0 %vm1828_vm9, %v6053_v36 }
 0x391   : > { %v5996_v13 = vadd.f32 %v8002_v23, %v10302_v11  ;;  %7961 = vmatmul.mubr.msk.bf16.vlgmr.msra.gmra.mrb[64].mxu0 %vm1828_vm9, %v6054_v21  ;;  %v6027_v41 = vmax.f32 %v5995_v47, 0.0 }
 0x392   : > { %v5994_v31 = vadd.f32 %v8003_v24, %v10302_v11  ;;  %v6025_v34 = vmax.f32 %v5993_v53, 0.0 }
 0x393   : > { %v6028_v28 = vmax.f32 %v5996_v13, 0.0 }
 0x394   : > { %v6026_v54 = vmax.f32 %v5994_v31, 0.0  ;;  %v7934_v58 = vpop.f32.mrb[0].mxu1 }
 0x395   : > { %v6056_v5 = vpack.c.bf16 %v6028_v28, %v6027_v41  ;;  %v8004_v57 = vadd.f32 %v7934_v58, %v10228_v51  ;;  %v5855_v25 = vpop.f32.mrb[1].mxu1 }
 0x396   : > { %v6055_v18 = vpack.c.bf16 %v6026_v54, %v6025_v34  ;;  %v8005_v52 = vadd.f32 %v5855_v25, %v10230_v39  ;;  %v7935_v29 = vpop.f32.mrb[2].mxu1 }
 0x397   : > { %v5999_v14 = vadd.f32 %v8004_v57, %v10302_v11  ;;  %v8006_v49 = vadd.f32 %v7935_v29, %v10232_v8  ;;  %v5858_v42 = vpop.f32.mrb[3].mxu1 }
 0x398   : > { %v5997_v16 = vadd.f32 %v8005_v52, %v10302_v11  ;;  %v8007_v9 = vadd.f32 %v5858_v42, %v10234_v4  ;;  %7964 = vmatprep.mubr.msk.bf16.mxu0 %vm1828_vm9, %v6055_v18 }
 0x399   : > { %v6000_v2 = vadd.f32 %v8006_v49, %v10302_v11  ;;  %7965 = vmatmul.mubr.msk.bf16.gmra.mrb[68].mxu0 %vm1828_vm9, %v6056_v5  ;;  %v6031_v0 = vmax.f32 %v5999_v14, 0.0 }
 0x39a   : > { %v5998_v51 = vadd.f32 %v8007_v9, %v10302_v11  ;;  %v6029_v35 = vmax.f32 %v5997_v16, 0.0 }
 0x39b   : > { %v6032_v39 = vmax.f32 %v6000_v2, 0.0 }
 0x39c   : > { %v6030_v62 = vmax.f32 %v5998_v51, 0.0  ;;  %v7938_v55 = vpop.f32.mrb[4].mxu1 }
 0x39d   : > { %v6058_v6 = vpack.c.bf16 %v6032_v39, %v6031_v0  ;;  %v8008_v8 = vadd.f32 %v7938_v55, %v10244_v7  ;;  %v5871_v30 = vpop.f32.mrb[5].mxu1 }
 0x39e   : > { %v6057_v20 = vpack.c.bf16 %v6030_v62, %v6029_v35  ;;  %v8009_v4 = vadd.f32 %v5871_v30, %v10246_v48  ;;  %v7939_v38 = vpop.f32.mrb[6].mxu1 }
 0x39f   : > { %v6003_v43 = vadd.f32 %v8008_v8, %v10302_v11  ;;  %v8010_v21 = vadd.f32 %v7939_v38, %v10248_v45  ;;  %v5874_v56 = vpop.f32.mrb[7].mxu1 }
 0x3a0   : > { %v6001_v17 = vadd.f32 %v8009_v4, %v10302_v11  ;;  %v8011_v36 = vadd.f32 %v5874_v56, %v10250_v37  ;;  %7968 = vmatprep.mubr.msk.bf16.mxu0 %vm1828_vm9, %v6057_v20 }
 0x3a1   : > { %v6004_v27 = vadd.f32 %v8010_v21, %v10302_v11  ;;  %7969 = vmatmul.mubr.msk.bf16.gmra.mrb[72].mxu0 %vm1828_vm9, %v6058_v6  ;;  %v6035_v10 = vmax.f32 %v6003_v43, 0.0 }
 0x3a2   : > { %v6002_v7 = vadd.f32 %v8011_v36, %v10302_v11  ;;  %v6033_v47 = vmax.f32 %v6001_v17, 0.0 }
 0x3a3   : > { %v6036_v48 = vmax.f32 %v6004_v27, 0.0 }
 0x3a4   : > { %v6034_v23 = vmax.f32 %v6002_v7, 0.0  ;;  %v7942_v19 = vpop.f32.mrb[8].mxu1 }
 0x3a5   : > { %v6060_v53 = vpack.c.bf16 %v6036_v48, %v6035_v10  ;;  %v8012_v45 = vadd.f32 %v7942_v19, %v10260_v22  ;;  %v5887_v24 = vpop.f32.mrb[9].mxu1 }
 0x3a6   : > { %v6059_v13 = vpack.c.bf16 %v6034_v23, %v6033_v47  ;;  %v8013_v37 = vadd.f32 %v5887_v24, %v10262_v32  ;;  %v7943_v31 = vpop.f32.mrb[10].mxu1 }
 0x3a7   : > { %v6007_v41 = vadd.f32 %v8012_v45, %v10302_v11  ;;  %v8014_v28 = vadd.f32 %v7943_v31, %v10264_v46  ;;  %v5890_v34 = vpop.f32.mrb[11].mxu1 }
 0x3a8   : > { %v6005_v54 = vadd.f32 %v8013_v37, %v10302_v11  ;;  %v8015_v58 = vadd.f32 %v5890_v34, %v10266_v3  ;;  %7972 = vmatprep.mubr.msk.bf16.mxu0 %vm1828_vm9, %v6059_v13 }
 0x3a9   : > { %v6008_v5 = vadd.f32 %v8014_v28, %v10302_v11  ;;  %7973 = vmatmul.mubr.msk.bf16.gmra.mrb[76].mxu0 %vm1828_vm9, %v6060_v53  ;;  %v6039_v57 = vmax.f32 %v6007_v41, 0.0 }
 0x3aa   : > { %v6006_v22 = vadd.f32 %v8015_v58, %v10302_v11  ;;  %v6037_v25 = vmax.f32 %v6005_v54, 0.0 }
 0x3ab   : > { %v6040_v32 = vmax.f32 %v6008_v5, 0.0  ;;  %v7207_v5 = vld [vmem:[%s8591_s23] sm:$0xff]  }
 0x3ac   : > { %v6038_v18 = vmax.f32 %v6006_v22, 0.0  ;;  %v7946_v52 = vpop.f32.mrb[12].mxu1  ;;  %v10381_v22 = vld [vmem:[%s10508_s6] ss:$0 sm:$0xff] }
 0x3ad   : > { %v6062_v29 = vpack.c.bf16 %v6040_v32, %v6039_v57  ;;  %v8016_v46 = vadd.f32 %v7946_v52, %v10272_v63  ;;  %v5903_v14 = vpop.f32.mrb[13].mxu1  ;;  %v7208_v32 = vunpack.c.l.bf16 %v7207_v5 }
 0x3ae   : > { %v6061_v49 = vpack.c.bf16 %v6038_v18, %v6037_v25  ;;  %v8017_v3 = vadd.f32 %v5903_v14, %v10274_v60  ;;  %v7947_v42 = vpop.f32.mrb[14].mxu1  ;;  %v7209_v14 = vunpack.c.h.bf16 %v7207_v5  ;;  %v7356_v5 = vld [vmem:[%s8591_s23 + $0x38] sm:$0xff]  }
 0x3af   : > { %v6011_v16 = vadd.f32 %v8016_v46, %v10302_v11  ;;  %v8018_v9 = vadd.f32 %v7947_v42, %v10276_v40  ;;  %v5906_v2 = vpop.f32.mrb[15].mxu1 }
 0x3b0   : > { %v6009_v51 = vadd.f32 %v8017_v3, %v10302_v11  ;;  %v8019_v0 = vadd.f32 %v5906_v2, %v10278_v50  ;;  %7976 = vmatprep.mubr.msk.bf16.mxu0 %vm1828_vm9, %v6061_v49  ;;  %v7352_v2 = vld [vmem:[%s8591_s23 + $0x18] sm:$0xff]  }
 0x3b1   : > { %v6012_v39 = vadd.f32 %v8018_v9, %v10302_v11  ;;  %7977 = vmatmul.mubr.msk.bf16.gmra.mrb[80].mxu0 %vm1828_vm9, %v6062_v29  ;;  %v6043_v35 = vmax.f32 %v6011_v16, 0.0 }
 0x3b2   : > { %v6010_v63 = vadd.f32 %v8019_v0, %v10302_v11  ;;  %v6041_v62 = vmax.f32 %v6009_v51, 0.0  ;;  %v7351_v0 = vld [vmem:[%s8591_s23 + $0x10] sm:$0xff]  }
 0x3b3   : > { %v6044_v60 = vmax.f32 %v6012_v39, 0.0 }
 0x3b4   : > { %v6042_v55 = vmax.f32 %v6010_v63, 0.0  ;;  %v7950_v6 = vpop.f32.mrb[16].mxu1 }
 0x3b5   : > { %v6064_v8 = vpack.c.bf16 %v6044_v60, %v6043_v35  ;;  %v8020_v40 = vadd.f32 %v7950_v6, %v10280_v44  ;;  %v5919_v30 = vpop.f32.mrb[17].mxu1  ;;  %v7220_v60 = vunpack.c.l.bf16 %v7352_v2 }
 0x3b6   : > { %v6063_v20 = vpack.c.bf16 %v6042_v55, %v6041_v62  ;;  %v8021_v50 = vadd.f32 %v5919_v30, %v10282_v26  ;;  %v7951_v4 = vpop.f32.mrb[18].mxu1 }
 0x3b7   : > { %v6015_v38 = vadd.f32 %v8020_v40, %v10302_v11  ;;  %v8022_v43 = vadd.f32 %v7951_v4, %v10284_v59  ;;  %v5922_v21 = vpop.f32.mrb[19].mxu1 }
 0x3b8   : > { %v6013_v56 = vadd.f32 %v8021_v50, %v10302_v11  ;;  %v8023_v17 = vadd.f32 %v5922_v21, %v10286_v61  ;;  %7980 = vmatprep.mubr.msk.bf16.mxu0 %vm1828_vm9, %v6063_v20  ;;  %v7221_v50 = vunpack.c.h.bf16 %v7352_v2  ;;  %v7217_v21 = vunpack.c.h.bf16 %v7351_v0 }
 0x3b9   : > { %v6016_v36 = vadd.f32 %v8022_v43, %v10302_v11  ;;  %7981 = vmatmul.mubr.msk.bf16.gmra.mrb[84].mxu0 %vm1828_vm9, %v6064_v8  ;;  %v6047_v27 = vmax.f32 %v6015_v38, 0.0  ;;  %v7216_v8 = vunpack.c.l.bf16 %v7351_v0 }
 0x3ba   : > { %v6014_v44 = vadd.f32 %v8023_v17, %v10302_v11  ;;  %v6045_v7 = vmax.f32 %v6013_v56, 0.0 }
 0x3bb   : > { %v6048_v26 = vmax.f32 %v6016_v36, 0.0 }
 0x3bc   : > { %v6046_v10 = vmax.f32 %v6014_v44, 0.0  ;;  %v7954_v48 = vpop.f32.mrb[20].mxu1 }
 0x3bd   : > { %v6066_v47 = vpack.c.bf16 %v6048_v26, %v6047_v27  ;;  %v8024_v59 = vadd.f32 %v7954_v48, %v10288_v1  ;;  %v5935_v23 = vpop.f32.mrb[21].mxu1  ;;  %v7354_v26 = vld [vmem:[%s8591_s23 + $0x28] sm:$0xff]  }
 0x3be   : > { %v6065_v19 = vpack.c.bf16 %v6046_v10, %v6045_v7  ;;  %v8025_v61 = vadd.f32 %v5935_v23, %v10290_v15  ;;  %v7955_v53 = vpop.f32.mrb[22].mxu1  ;;  %v7353_v10 = vld [vmem:[%s8591_s23 + $0x20] sm:$0xff]   ;;  %v7228_v23 = vunpack.c.l.bf16 %v7354_v26 }
 0x3bf   : > { %v6019_v45 = vadd.f32 %v8024_v59, %v10302_v11  ;;  %v8026_v24 = vadd.f32 %v7955_v53, %v10292_v12  ;;  %v5938_v13 = vpop.f32.mrb[23].mxu1 }
 0x3c0   : > { %v6017_v37 = vadd.f32 %v8025_v61, %v10302_v11  ;;  %v8027_v31 = vadd.f32 %v5938_v13, %v10294_v33  ;;  %7984 = vmatprep.mubr.msk.bf16.mxu0 %vm1828_vm9, %v6065_v19  ;;  %v7350_v33 = vld [vmem:[%s8591_s23 + $0x8] sm:$0xff]  }
 0x3c1   : > { %v6020_v1 = vadd.f32 %v8026_v24, %v10302_v11  ;;  %7985 = vmatmul.mubr.msk.bf16.gmra.mrb[88].mxu0 %vm1828_vm9, %v6066_v47  ;;  %v6051_v41 = vmax.f32 %v6019_v45, 0.0  ;;  %v7213_v52 = vunpack.c.h.bf16 %v7350_v33  ;;  %v7224_v45 = vunpack.c.l.bf16 %v7353_v10 }
 0x3c2   : > { %v6018_v15 = vadd.f32 %v8027_v31, %v10302_v11  ;;  %v6049_v34 = vmax.f32 %v6017_v37, 0.0  ;;  %v7212_v11 = vunpack.c.l.bf16 %v7350_v33  ;;  %v7229_v31 = vunpack.c.h.bf16 %v7354_v26 }
 0x3c3   : > { %v6052_v28 = vmax.f32 %v6020_v1, 0.0 }
 0x3c4   : > { %v6050_v12 = vmax.f32 %v6018_v15, 0.0 }
 0x3c5   : > { %v6068_v54 = vpack.c.bf16 %v6052_v28, %v6051_v41  ;;  %v7225_v28 = vunpack.c.h.bf16 %v7353_v10 }
 0x3c6   : > { %v6067_v58 = vpack.c.bf16 %v6050_v12, %v6049_v34 }
 0x3c8   : > { %7988 = vmatprep.mubr.msk.bf16.mxu0 %vm1828_vm9, %v6067_v58 }
 0x3c9   : > { %7989 = vmatmul.mubr.msk.bf16.gmra.mrb[92].mxu0 %vm1828_vm9, %v6068_v54 }
 0x464   : > { %v7962_v57 = vpop.f32.mrb[64].mxu0 }
 0x465   : > { %v6183_v25 = vadd.f32 %v7962_v57, %v10381_v22  ;;  %v6174_v18 = vpop.f32.mrb[65].mxu0  ;;  %v7355_v57 = vld [vmem:[%s8591_s23 + $0x30] sm:$0xff]  }
 0x466   : > { %v6175_v29 = vadd.f32 %v10381_v22, %v6174_v18  ;;  %v7963_v46 = vpop.f32.mrb[66].mxu0 }
 0x467   : > { %v6367_v49 = vadd.f32 %v7212_v11, %v6183_v25  ;;  %v6186_v3 = vadd.f32 %v7963_v46, %v10381_v22  ;;  %v6177_v42 = vpop.f32.mrb[67].mxu0 }
 0x468   : > { %v6365_v16 = vadd.f32 %v7208_v32, %v6175_v29  ;;  %v6178_v9 = vadd.f32 %v10381_v22, %v6177_v42 }
 0x469   : > { %v6368_v51 = vadd.f32 %v7213_v52, %v6186_v3  ;;  %v6399_v63 = vmax.f32 %v6367_v49, 0.0  ;;  %v7236_v52 = vunpack.c.l.bf16 %v7356_v5  ;;  %v7232_v49 = vunpack.c.l.bf16 %v7355_v57 }
 0x46a   : > { %v6366_v39 = vadd.f32 %v7209_v14, %v6178_v9  ;;  %v6397_v62 = vmax.f32 %v6365_v16, 0.0  ;;  %v7237_v9 = vunpack.c.h.bf16 %v7356_v5 }
 0x46b   : > { %v6400_v35 = vmax.f32 %v6368_v51, 0.0 }
 0x46c   : > { %v6398_v55 = vmax.f32 %v6366_v39, 0.0  ;;  %v7966_v6 = vpop.f32.mrb[68].mxu0  ;;  %v7233_v39 = vunpack.c.h.bf16 %v7355_v57 }
 0x46d   : > { %v7278_v40 = vpack.c.bf16 %v6400_v35, %v6399_v63  ;;  %v6199_v30 = vadd.f32 %v7966_v6, %v10381_v22  ;;  %v6190_v20 = vpop.f32.mrb[69].mxu0  ;;  %v7358_v6 = vld [vmem:[%s8591_s23 + $0x48] sm:$0xff]  }
 0x46e   : > { %v7273_v4 = vpack.c.bf16 %v6398_v55, %v6397_v62  ;;  %v6191_v38 = vadd.f32 %v10381_v22, %v6190_v20  ;;  %v7967_v43 = vpop.f32.mrb[70].mxu0 }
 0x46f   : > { %7365 = vst [vmem:[%s10394_s8 + $0x8] sm:$0xff] %v7278_v40   ;;  %v6371_v56 = vadd.f32 %v7220_v60, %v6199_v30  ;;  %v6202_v17 = vadd.f32 %v7967_v43, %v10381_v22  ;;  %v6193_v36 = vpop.f32.mrb[71].mxu0  ;;  %v7357_v40 = vld [vmem:[%s8591_s23 + $0x40] sm:$0xff]  }
 0x470   : > { %7274 = vst [vmem:[%s10394_s8] sm:$0xff] %v7273_v4   ;;  %v6369_v44 = vadd.f32 %v7216_v8, %v6191_v38  ;;  %v6194_v27 = vadd.f32 %v10381_v22, %v6193_v36  ;;  %v7244_v4 = vunpack.c.l.bf16 %v7358_v6 }
 0x471   : > { %v6372_v7 = vadd.f32 %v7221_v50, %v6202_v17  ;;  %v6403_v47 = vmax.f32 %v6371_v56, 0.0  ;;  %v7240_v56 = vunpack.c.l.bf16 %v7357_v40 }
 0x472   : > { %v6370_v48 = vadd.f32 %v7217_v21, %v6194_v27  ;;  %v6401_v19 = vmax.f32 %v6369_v44, 0.0  ;;  %v7245_v27 = vunpack.c.h.bf16 %v7358_v6 }
 0x473   : > { %v6404_v59 = vmax.f32 %v6372_v7, 0.0 }
 0x474   : > { %v6402_v61 = vmax.f32 %v6370_v48, 0.0  ;;  %v7970_v53 = vpop.f32.mrb[72].mxu0  ;;  %v7241_v48 = vunpack.c.h.bf16 %v7357_v40 }
 0x475   : > { %v7288_v24 = vpack.c.bf16 %v6404_v59, %v6403_v47  ;;  %v6215_v13 = vadd.f32 %v7970_v53, %v10381_v22  ;;  %v6206_v37 = vpop.f32.mrb[73].mxu0  ;;  %v7360_v53 = vld [vmem:[%s8591_s23 + $0x58] sm:$0xff]  }
 0x476   : > { %v7283_v1 = vpack.c.bf16 %v6402_v61, %v6401_v19  ;;  %v6207_v15 = vadd.f32 %v10381_v22, %v6206_v37  ;;  %v7971_v41 = vpop.f32.mrb[74].mxu0 }
 0x477   : > { %7367 = vst [vmem:[%s10394_s8 + $0x18] sm:$0xff] %v7288_v24   ;;  %v6375_v34 = vadd.f32 %v7228_v23, %v6215_v13  ;;  %v6218_v12 = vadd.f32 %v7971_v41, %v10381_v22  ;;  %v6209_v54 = vpop.f32.mrb[75].mxu0  ;;  %v7359_v24 = vld [vmem:[%s8591_s23 + $0x50] sm:$0xff]  }
 0x478   : > { %7366 = vst [vmem:[%s10394_s8 + $0x10] sm:$0xff] %v7283_v1   ;;  %v6373_v58 = vadd.f32 %v7224_v45, %v6207_v15  ;;  %v6210_v33 = vadd.f32 %v10381_v22, %v6209_v54  ;;  %v7252_v1 = vunpack.c.l.bf16 %v7360_v53 }
 0x479   : > { %v6376_v11 = vadd.f32 %v7229_v31, %v6218_v12  ;;  %v6407_v25 = vmax.f32 %v6375_v34, 0.0  ;;  %v7248_v34 = vunpack.c.l.bf16 %v7359_v24 }
 0x47a   : > { %v6374_v32 = vadd.f32 %v7225_v28, %v6210_v33  ;;  %v6405_v29 = vmax.f32 %v6373_v58, 0.0  ;;  %v7253_v33 = vunpack.c.h.bf16 %v7360_v53 }
 0x47b   : > { %v6408_v18 = vmax.f32 %v6376_v11, 0.0 }
 0x47c   : > { %v6406_v46 = vmax.f32 %v6374_v32, 0.0  ;;  %v7974_v14 = vpop.f32.mrb[76].mxu0  ;;  %v7249_v32 = vunpack.c.h.bf16 %v7359_v24 }
 0x47d   : > { %v7298_v3 = vpack.c.bf16 %v6408_v18, %v6407_v25  ;;  %v6231_v42 = vadd.f32 %v7974_v14, %v10381_v22  ;;  %v6222_v16 = vpop.f32.mrb[77].mxu0  ;;  %v7362_v14 = vld [vmem:[%s8591_s23 + $0x68] sm:$0xff]  }
 0x47e   : > { %v7293_v2 = vpack.c.bf16 %v6406_v46, %v6405_v29  ;;  %v6223_v51 = vadd.f32 %v10381_v22, %v6222_v16  ;;  %v7975_v0 = vpop.f32.mrb[78].mxu0 }
 0x47f   : > { %7369 = vst [vmem:[%s10394_s8 + $0x28] sm:$0xff] %v7298_v3   ;;  %v6379_v63 = vadd.f32 %v7236_v52, %v6231_v42  ;;  %v6234_v35 = vadd.f32 %v7975_v0, %v10381_v22  ;;  %v6225_v60 = vpop.f32.mrb[79].mxu0  ;;  %v7361_v3 = vld [vmem:[%s8591_s23 + $0x60] sm:$0xff]  }
 0x480   : > { %7368 = vst [vmem:[%s10394_s8 + $0x20] sm:$0xff] %v7293_v2   ;;  %v6377_v62 = vadd.f32 %v7232_v49, %v6223_v51  ;;  %v6226_v55 = vadd.f32 %v10381_v22, %v6225_v60  ;;  %v7260_v2 = vunpack.c.l.bf16 %v7362_v14 }
 0x481   : > { %v6380_v8 = vadd.f32 %v7237_v9, %v6234_v35  ;;  %v6411_v20 = vmax.f32 %v6379_v63, 0.0  ;;  %v7256_v63 = vunpack.c.l.bf16 %v7361_v3 }
 0x482   : > { %v6378_v30 = vadd.f32 %v7233_v39, %v6226_v55  ;;  %v6409_v38 = vmax.f32 %v6377_v62, 0.0  ;;  %v7261_v55 = vunpack.c.h.bf16 %v7362_v14 }
 0x483   : > { %v6412_v50 = vmax.f32 %v6380_v8, 0.0 }
 0x484   : > { %v6410_v43 = vmax.f32 %v6378_v30, 0.0  ;;  %v7978_v21 = vpop.f32.mrb[80].mxu0  ;;  %v7257_v30 = vunpack.c.h.bf16 %v7361_v3 }
 0x485   : > { %v7308_v17 = vpack.c.bf16 %v6412_v50, %v6411_v20  ;;  %v6247_v36 = vadd.f32 %v7978_v21, %v10381_v22  ;;  %v6238_v44 = vpop.f32.mrb[81].mxu0  ;;  %v7364_v21 = vld [vmem:[%s8591_s23 + $0x78] sm:$0xff]  }
 0x486   : > { %v7303_v26 = vpack.c.bf16 %v6410_v43, %v6409_v38  ;;  %v6239_v7 = vadd.f32 %v10381_v22, %v6238_v44  ;;  %v7979_v10 = vpop.f32.mrb[82].mxu0 }
 0x487   : > { %7371 = vst [vmem:[%s10394_s8 + $0x38] sm:$0xff] %v7308_v17   ;;  %v6383_v47 = vadd.f32 %v7244_v4, %v6247_v36  ;;  %v6250_v59 = vadd.f32 %v7979_v10, %v10381_v22  ;;  %v6241_v23 = vpop.f32.mrb[83].mxu0  ;;  %v7363_v17 = vld [vmem:[%s8591_s23 + $0x70] sm:$0xff]   ;;  %s7205_s23 = sshll.u32 %s8550_s28, 11  ;;  %s10461_s28 = scalar_lea.sflag [#allocation4], %s269_s22 }
 0x488   : > { %7370 = vst [vmem:[%s10394_s8 + $0x30] sm:$0xff] %v7303_v26   ;;  %v6381_v19 = vadd.f32 %v7240_v56, %v6239_v7  ;;  %v6242_v61 = vadd.f32 %v10381_v22, %v6241_v23  ;;  %v7268_v26 = vunpack.c.l.bf16 %v7364_v21  ;;  %s10453_s15 = scalar_lea.hbm %s10509_s7, %s7205_s23 }
 0x489   : > { %v6384_v45 = vadd.f32 %v7245_v27, %v6250_v59  ;;  %v6415_v37 = vmax.f32 %v6383_v47, 0.0  ;;  %v7264_v47 = vunpack.c.l.bf16 %v7363_v17 }
 0x48a   : > { %v6382_v13 = vadd.f32 %v7241_v48, %v6242_v61  ;;  %v6413_v15 = vmax.f32 %v6381_v19, 0.0  ;;  %v7269_v61 = vunpack.c.h.bf16 %v7364_v21 }
 0x48b   : > { %v6416_v31 = vmax.f32 %v6384_v45, 0.0 }
 0x48c   : > { %v6414_v41 = vmax.f32 %v6382_v13, 0.0  ;;  %v7982_v28 = vpop.f32.mrb[84].mxu0  ;;  %v7265_v13 = vunpack.c.h.bf16 %v7363_v17 }
 0x48d   : > { %v7318_v12 = vpack.c.bf16 %v6416_v31, %v6415_v37  ;;  %v6263_v54 = vadd.f32 %v7982_v28, %v10381_v22  ;;  %v6254_v58 = vpop.f32.mrb[85].mxu0 }
 0x48e   : > { %v7313_v5 = vpack.c.bf16 %v6414_v41, %v6413_v15  ;;  %v6255_v11 = vadd.f32 %v10381_v22, %v6254_v58  ;;  %v7983_v57 = vpop.f32.mrb[86].mxu0 }
 0x48f   : > { %7373 = vst [vmem:[%s10394_s8 + $0x48] sm:$0xff] %v7318_v12   ;;  %v6387_v25 = vadd.f32 %v7252_v1, %v6263_v54  ;;  %v6266_v18 = vadd.f32 %v7983_v57, %v10381_v22  ;;  %v6257_v52 = vpop.f32.mrb[87].mxu0 }
 0x490   : > { %7372 = vst [vmem:[%s10394_s8 + $0x40] sm:$0xff] %v7313_v5   ;;  %v6385_v29 = vadd.f32 %v7248_v34, %v6255_v11  ;;  %v6258_v46 = vadd.f32 %v10381_v22, %v6257_v52 }
 0x491   : > { %v6388_v49 = vadd.f32 %v7253_v33, %v6266_v18  ;;  %v6419_v16 = vmax.f32 %v6387_v25, 0.0 }
 0x492   : > { %v6386_v42 = vadd.f32 %v7249_v32, %v6258_v46  ;;  %v6417_v51 = vmax.f32 %v6385_v29, 0.0 }
 0x493   : > { %v6420_v9 = vmax.f32 %v6388_v49, 0.0 }
 0x494   : > { %v6418_v0 = vmax.f32 %v6386_v42, 0.0  ;;  %v7986_v39 = vpop.f32.mrb[88].mxu0 }
 0x495   : > { %v7328_v35 = vpack.c.bf16 %v6420_v9, %v6419_v16  ;;  %v6279_v60 = vadd.f32 %v7986_v39, %v10381_v22  ;;  %v6270_v62 = vpop.f32.mrb[89].mxu0 }
 0x496   : > { %v7323_v6 = vpack.c.bf16 %v6418_v0, %v6417_v51  ;;  %v6271_v8 = vadd.f32 %v10381_v22, %v6270_v62  ;;  %v7987_v40 = vpop.f32.mrb[90].mxu0 }
 0x497   : > { %7375 = vst [vmem:[%s10394_s8 + $0x58] sm:$0xff] %v7328_v35   ;;  %v6391_v20 = vadd.f32 %v7260_v2, %v6279_v60  ;;  %v6282_v50 = vadd.f32 %v7987_v40, %v10381_v22  ;;  %v6273_v4 = vpop.f32.mrb[91].mxu0 }
 0x498   : > { %7374 = vst [vmem:[%s10394_s8 + $0x50] sm:$0xff] %v7323_v6   ;;  %v6389_v38 = vadd.f32 %v7256_v63, %v6271_v8  ;;  %v6274_v43 = vadd.f32 %v10381_v22, %v6273_v4 }
 0x499   : > { %v6392_v56 = vadd.f32 %v7261_v55, %v6282_v50  ;;  %v6423_v44 = vmax.f32 %v6391_v20, 0.0 }
 0x49a   : > { %v6390_v36 = vadd.f32 %v7257_v30, %v6274_v43  ;;  %v6421_v7 = vmax.f32 %v6389_v38, 0.0 }
 0x49b   : > { %v6424_v27 = vmax.f32 %v6392_v56, 0.0 }
 0x49c   : > { %v6422_v10 = vmax.f32 %v6390_v36, 0.0  ;;  %v7990_v48 = vpop.f32.mrb[92].mxu0 }
 0x49d   : > { %v7338_v59 = vpack.c.bf16 %v6424_v27, %v6423_v44  ;;  %v6295_v23 = vadd.f32 %v7990_v48, %v10381_v22  ;;  %v6286_v19 = vpop.f32.mrb[93].mxu0 }
 0x49e   : > { %v7333_v53 = vpack.c.bf16 %v6422_v10, %v6421_v7  ;;  %v6287_v45 = vadd.f32 %v10381_v22, %v6286_v19  ;;  %v7991_v24 = vpop.f32.mrb[94].mxu0 }
 0x49f   : > { %7377 = vst [vmem:[%s10394_s8 + $0x68] sm:$0xff] %v7338_v59   ;;  %v6395_v37 = vadd.f32 %v7268_v26, %v6295_v23  ;;  %v6298_v31 = vadd.f32 %v7991_v24, %v10381_v22  ;;  %v6289_v1 = vpop.f32.mrb[95].mxu0 }
 0x4a0   : > { %7376 = vst [vmem:[%s10394_s8 + $0x60] sm:$0xff] %v7333_v53   ;;  %v6393_v15 = vadd.f32 %v7264_v47, %v6287_v45  ;;  %v6290_v41 = vadd.f32 %v10381_v22, %v6289_v1 }
 0x4a1   : > { %v6396_v28 = vadd.f32 %v7269_v61, %v6298_v31  ;;  %v6427_v12 = vmax.f32 %v6395_v37, 0.0 }
 0x4a2   : > { %v6394_v34 = vadd.f32 %v7265_v13, %v6290_v41  ;;  %v6425_v58 = vmax.f32 %v6393_v15, 0.0 }
 0x4a3   : > { %v6428_v54 = vmax.f32 %v6396_v28, 0.0 }
 0x4a4   : > { %v6426_v33 = vmax.f32 %v6394_v34, 0.0 }
 0x4a5   : > { %v7348_v5 = vpack.c.bf16 %v6428_v54, %v6427_v12 }
 0x4a6   : > { %v7343_v22 = vpack.c.bf16 %v6426_v33, %v6425_v58 }
 0x4a7   : > { %7379 = vst [vmem:[%s10394_s8 + $0x78] sm:$0xff] %v7348_v5  }
 0x4a8   : > { %7378 = vst [vmem:[%s10394_s8 + $0x70] sm:$0xff] %v7343_v22  }
 0x4a9   : > { %8434 = shalt.err (!%p8431_p3)
}
 0x4aa   : > { %s8435_s20 = scalar_lea.hbm %s10453_s15, 2048  ;;  %s8439_s29 = scalar_lea.hbm %s10509_s7, 4096 }
 0x4ab   : > { %p8436_p4 = scmp.ne.s32.totalorder %s10453_s15, %s8435_s20  ;;  %p8440_p9 = scmp.lt.u32.totalorder %s10453_s15, %s10509_s7 }
 0x4ac   : > { %p8441_p10 = scmp.lt.u32.totalorder %s8439_s29, %s8435_s20  ;;  %p8443_p12 = scmp.lt.u32.totalorder %s8435_s20, %s10453_s15 }
 0x4ad   : > { %p8437_p7 = pnand %p8436_p4, %p8567_p5 }
 0x4ae   : > { %p8442_p11 = por %p8441_p10, %p8440_p9 }
 0x4af   : > { %p8438_p8 = pneg %p8437_p7 }
 0x4b0   : > { %p8444_p13 = por %p8443_p12, %p8442_p11 }
 0x4b2   : > { %p8445_p0 = pnand %p8444_p13, %p8438_p8 }
 0x4b4   : > { %8448 = shalt.err (!%p8445_p0)
}
 0x4b5   : > { %s8487_s13 = smov 64   ;;  %s8488_s14 = smov 4  }
 0x4b6   : > { %8252 = dma.vmem_to_hbm [thread:$0]  (%p8567_p5), %s10455_s9, 2048, %s10453_s15, %s10461_s28, %s8487_s13, %s8487_s13, %s8488_s14  }
 0x4b7 PF: > { %p8258_p1 = scmp.ge.s32.totalorder %s8483_s27, 2  ;;  %s6618_s16 = sand.u32 1, %s8471_s24  }
 0x4b8   : > { %s6619_s17 = scalar_lea.sflag [#allocation4], %s6618_s16 }
 0x4b9   : > { %p8255_p2 = pnand %p8258_p1, %p8571_p6 }
 0x4bb   : > { %8466 = dma.done.wait (!%p8255_p2), %s6619_s17, 2048  }
 0x4bc   : > { %8468 = vsyncadd (!%p8255_p2), %s6619_s17, 4294965248  ;;  %p17_p3 = scmp.ge.s32.totalorder %s8554_s30, 4   ;;  %s10615_s24 = smov %s8475_s25 }
 0x4bd   : > { %s10616_s25 = smov %s8479_s26  ;;  %s10617_s26 = smov %s8565_s10 }
 0x4be   : > { %s10618_s27 = smov %s8554_s30  ;;  %19 = sbr.rel (!%p17_p3) target bundleno = 3 (0x3), region = 86 }
 0x4c5   :  { %6624 = vsyncpa [#allocation4], 1 }
 0x4c6   :  { %6626 = vsyncpa [#allocation4 + $0x1], 1 }

</bundles_post_ra>
